<compile_context>
chip_gen: v5e
topology: v5e:2x2
jax: 0.10.0
libtpu: 0.0.40
codegen_flags: <defaults>
</compile_context>

<pallas_src>
import jax
import jax.numpy as jnp
from jax.experimental import pallas as pl
from jax.experimental.pallas import tpu as pltpu

NEG_SLOPE = 0.01   # nn.LeakyReLU() default
K_IN = 28 * 28     # 784
H1 = 512
H2 = 256


def _leaky_relu(x):
    return jnp.where(x > 0, x, NEG_SLOPE * x)


def dnet_kernel(x_ref, w1_ref, b1_ref, w2_ref, b2_ref, w3_ref, b3_ref, o_ref):
    # x tile streamed as f32; cast to bf16 on the VPU (plenty of slack under MXU).
    x = x_ref[...].astype(jnp.bfloat16)                         # (TILE_B, 784)

    h1 = jnp.dot(x, w1_ref[...], preferred_element_type=jnp.float32)
    h1 = _leaky_relu(h1 + b1_ref[...])                          # (TILE_B, 512) f32

    h2 = jnp.dot(h1.astype(jnp.bfloat16), w2_ref[...],
                 preferred_element_type=jnp.float32)
    h2 = _leaky_relu(h2 + b2_ref[...])                          # (TILE_B, 256) f32

    # Layer 3: (1, 256) @ (256, TILE_B) -> lane-dense (1, TILE_B) row.
    # Tiny M=1 f32 matmul; the h2 relayout goes through the otherwise-idle XLU.
    h3 = jnp.dot(w3_ref[...], h2.T, preferred_element_type=jnp.float32)
    h3 = h3 + b3_ref[0, 0]                                      # scalar bias from SMEM

    o_ref[...] = jax.nn.sigmoid(h3)                             # (1, TILE_B) f32, dense store


def _pick_tile_b(batch):
    """Batch-tile rows: multiple of 128 (MXU M-dim), capped at 1024 (v7x VMEM),
    and chosen so there are >=2 tiles once the batch is large enough for the
    'parallel' batch axis to feed both v7x TensorCores."""
    target = -(-batch // 2) if batch >= 256 else batch
    tile = -(-target // 128) * 128
    return max(128, min(1024, tile))


def dnet_forward(x_nchw, params):
    """x_nchw: (B, 1, 28, 28) float32 -> (B,) float32 sigmoid outputs."""
    w1, b1, w2, b2, w3, b3 = params
    B = x_nchw.shape[0]

    x_flat = x_nchw.reshape(B, K_IN)           # nn.Flatten(); stays f32 (cast in-kernel)

    tile_b = _pick_tile_b(B)
    n_tiles = pl.cdiv(B, tile_b)
    B_pad = n_tiles * tile_b
    if B_pad != B:
        # TODO(synk): a ragged-tail pallas_call would avoid this extra HBM copy of x.
        x_flat = jnp.pad(x_flat, ((0, B_pad - B), (0, 0)))

    # bf16 weights for the MXU on layers 1/2; the tiny final layer stays f32.
    w1_bf = w1.astype(jnp.bfloat16)
    w2_bf = w2.astype(jnp.bfloat16)
    w3_row = w3.reshape(1, H2).astype(jnp.float32)

    flops = 2 * B_pad * (K_IN * H1 + H1 * H2 + H2 * 1)
    bytes_accessed = (x_flat.size * 4 + w1_bf.size * 2 + w2_bf.size * 2
                      + w3_row.size * 4 + (b1.size + b2.size + b3.size) * 4
                      + B_pad * 4)
    cost = pl.CostEstimate(flops=flops, transcendentals=B_pad,
                           bytes_accessed=bytes_accessed)

    out = pl.pallas_call(
        dnet_kernel,
        out_shape=jax.ShapeDtypeStruct((n_tiles, tile_b), jnp.float32),
        grid=(n_tiles,),
        in_specs=[
            pl.BlockSpec((tile_b, K_IN), lambda i: (i, 0)),     # streamed f32 batch tile
            # Constant index_maps: fetched once, VMEM-resident across grid steps.
            pl.BlockSpec((K_IN, H1), lambda i: (0, 0)),
            pl.BlockSpec((1, H1), lambda i: (0, 0)),
            pl.BlockSpec((H1, H2), lambda i: (0, 0)),
            pl.BlockSpec((1, H2), lambda i: (0, 0)),
            pl.BlockSpec((1, H2), lambda i: (0, 0)),            # w3 as a (1,256) row
            pl.BlockSpec(memory_space=pltpu.MemorySpace.SMEM),  # scalar bias b3
        ],
        out_specs=pl.BlockSpec((1, tile_b), lambda i: (i, 0)),  # lane-dense row per tile
        compiler_params=pltpu.CompilerParams(
            dimension_semantics=("parallel",),   # v7x: shard batch tiles across both TCs
            vmem_limit_bytes=32 << 20,           # ~16 MiB used at tile=1024; safe on v7x
        ),
        cost_estimate=cost,
    )(x_flat, w1_bf, b1, w2_bf, b2, w3_row, b3)

    return out.reshape(-1)[:B]                  # drop batch padding


def init_params(key):
    """Deterministic init mimicking nn.Linear's U(-1/sqrt(fan_in), 1/sqrt(fan_in))."""
    def linear(key, fan_in, fan_out):
        kw, kb = jax.random.split(key)
        bound = 1.0 / jnp.sqrt(fan_in)
        # stored as (in, out) so the kernel computes x @ W
        w = jax.random.uniform(kw, (fan_in, fan_out), jnp.float32, -bound, bound)
        b = jax.random.uniform(kb, (1, fan_out), jnp.float32, -bound, bound)
        return w, b

    k1, k2, k3 = jax.random.split(key, 3)
    w1, b1 = linear(k1, K_IN, H1)
    w2, b2 = linear(k2, H1, H2)
    w3, b3 = linear(k3, H2, 1)
    return (w1, b1, w2, b2, w3, b3)


def dnet_reference(x_nchw, params):
    """Pure-JAX reference with the same bf16-matmul / f32-accumulate numerics."""
    w1, b1, w2, b2, w3, b3 = params
    x = x_nchw.reshape(x_nchw.shape[0], -1).astype(jnp.bfloat16)
    h = jnp.dot(x, w1.astype(jnp.bfloat16), preferred_element_type=jnp.float32)
    h = _leaky_relu(h + b1)
    h = jnp.dot(h.astype(jnp.bfloat16), w2.astype(jnp.bfloat16),
                preferred_element_type=jnp.float32)
    h = _leaky_relu(h + b2)
    h = jnp.dot(h, w3, preferred_element_type=jnp.float32)      # final layer in f32
    return jax.nn.sigmoid(h + b3).reshape(-1)


if __name__ == "__main__":
    key = jax.random.PRNGKey(0)
    k_params, k_x = jax.random.split(key)

    params = init_params(k_params)
    x = jax.random.normal(k_x, (8, 1, 28, 28), jnp.float32)   # small batch, MNIST shape

    out = dnet_forward(x, params)
    out = jax.block_until_ready(out)

    ref = dnet_reference(x, params)
    assert out.shape == (8,), out.shape
    assert jnp.allclose(out, ref, atol=5e-3, rtol=5e-3), (out, ref)

    print("KERNEL_OK")
</pallas_src>

<mosaic_0001>
module attributes {stable_mosaic.version = 11 : i64} {
  func.func @dnet_kernel(%arg0: i32, %arg1: memref<128x784xf32, #tpu.memory_space<vmem>>, %arg2: memref<784x512xbf16, #tpu.memory_space<vmem>>, %arg3: memref<1x512xf32, #tpu.memory_space<vmem>>, %arg4: memref<512x256xbf16, #tpu.memory_space<vmem>>, %arg5: memref<1x256xf32, #tpu.memory_space<vmem>>, %arg6: memref<1x256xf32, #tpu.memory_space<vmem>>, %arg7: memref<1x1xf32, #tpu.memory_space<smem>>, %arg8: memref<1x128xf32, #tpu.memory_space<vmem>>) attributes {dimension_semantics = [#tpu.dimension_semantics<parallel>], iteration_bounds = array<i64: 1>, scalar_prefetch = 0 : i64, scratch_operands = 0 : i64, tpu.core_type = #tpu.core_type<tc>, window_params = [{transform_indices = @transform_0, window_bounds = array<i64: 128, 784>}, {pipeline_mode = #tpu.pipeline_mode<synchronous>, transform_indices = @transform_1, window_bounds = array<i64: 784, 512>}, {pipeline_mode = #tpu.pipeline_mode<synchronous>, transform_indices = @transform_2, window_bounds = array<i64: 1, 512>}, {pipeline_mode = #tpu.pipeline_mode<synchronous>, transform_indices = @transform_3, window_bounds = array<i64: 512, 256>}, {pipeline_mode = #tpu.pipeline_mode<synchronous>, transform_indices = @transform_4, window_bounds = array<i64: 1, 256>}, {pipeline_mode = #tpu.pipeline_mode<synchronous>, transform_indices = @transform_5, window_bounds = array<i64: 1, 256>}, {transform_indices = @transform_6, window_bounds = array<i64: 1, 1>}, {transform_indices = @transform_7, window_bounds = array<i64: 1, 128>}]} {
    %c0 = arith.constant 0 : index
    %c0_0 = arith.constant 0 : index
    %0 = vector.load %arg1[%c0, %c0_0] : memref<128x784xf32, #tpu.memory_space<vmem>>, vector<128x784xf32>
    %1 = arith.truncf %0 : vector<128x784xf32> to vector<128x784xbf16>
    %c0_1 = arith.constant 0 : index
    %c0_2 = arith.constant 0 : index
    %2 = vector.load %arg2[%c0_1, %c0_2] : memref<784x512xbf16, #tpu.memory_space<vmem>>, vector<784x512xbf16>
    %cst = arith.constant dense<0.000000e+00> : vector<128x512xf32>
    %3 = tpu.matmul %1, %2, %cst {dimension_numbers = #tpu.dot_dimension_numbers<[1], [0], [0], [1], [0, 0, 1, 1], [], []>} : vector<128x784xbf16>, vector<784x512xbf16>, vector<128x512xf32> -> vector<128x512xf32>
    %c0_3 = arith.constant 0 : index
    %c0_4 = arith.constant 0 : index
    %4 = vector.load %arg3[%c0_3, %c0_4] : memref<1x512xf32, #tpu.memory_space<vmem>>, vector<1x512xf32>
    %5 = vector.broadcast %4 : vector<1x512xf32> to vector<128x512xf32>
    %6 = arith.addf %3, %5 : vector<128x512xf32>
    %cst_5 = arith.constant 0.000000e+00 : f32
    %7 = vector.broadcast %cst_5 : f32 to vector<128x512xf32>
    %8 = arith.cmpf ogt, %6, %7 : vector<128x512xf32>
    %cst_6 = arith.constant 0.00999999977 : f32
    %9 = vector.broadcast %cst_6 : f32 to vector<128x512xf32>
    %10 = arith.mulf %9, %6 : vector<128x512xf32>
    %11 = arith.select %8, %6, %10 : vector<128x512xi1>, vector<128x512xf32>
    %12 = arith.truncf %11 : vector<128x512xf32> to vector<128x512xbf16>
    %c0_7 = arith.constant 0 : index
    %c0_8 = arith.constant 0 : index
    %13 = vector.load %arg4[%c0_7, %c0_8] : memref<512x256xbf16, #tpu.memory_space<vmem>>, vector<512x256xbf16>
    %cst_9 = arith.constant dense<0.000000e+00> : vector<128x256xf32>
    %14 = tpu.matmul %12, %13, %cst_9 {dimension_numbers = #tpu.dot_dimension_numbers<[1], [0], [0], [1], [0, 0, 1, 1], [], []>} : vector<128x512xbf16>, vector<512x256xbf16>, vector<128x256xf32> -> vector<128x256xf32>
    %c0_10 = arith.constant 0 : index
    %c0_11 = arith.constant 0 : index
    %15 = vector.load %arg5[%c0_10, %c0_11] : memref<1x256xf32, #tpu.memory_space<vmem>>, vector<1x256xf32>
    %16 = vector.broadcast %15 : vector<1x256xf32> to vector<128x256xf32>
    %17 = arith.addf %14, %16 : vector<128x256xf32>
    %cst_12 = arith.constant 0.000000e+00 : f32
    %18 = vector.broadcast %cst_12 : f32 to vector<128x256xf32>
    %19 = arith.cmpf ogt, %17, %18 : vector<128x256xf32>
    %cst_13 = arith.constant 0.00999999977 : f32
    %20 = vector.broadcast %cst_13 : f32 to vector<128x256xf32>
    %21 = arith.mulf %20, %17 : vector<128x256xf32>
    %22 = arith.select %19, %17, %21 : vector<128x256xi1>, vector<128x256xf32>
    %c0_14 = arith.constant 0 : index
    %c0_15 = arith.constant 0 : index
    %23 = vector.load %arg6[%c0_14, %c0_15] : memref<1x256xf32, #tpu.memory_space<vmem>>, vector<1x256xf32>
    %24 = tpu.transpose %22, [1, 0] : vector<128x256xf32> -> vector<256x128xf32>
    %cst_16 = arith.constant dense<0.000000e+00> : vector<1x128xf32>
    %25 = tpu.matmul %23, %24, %cst_16 {dimension_numbers = #tpu.dot_dimension_numbers<[1], [0], [0], [1], [0, 0, 1, 1], [], []>} : vector<1x256xf32>, vector<256x128xf32>, vector<1x128xf32> -> vector<1x128xf32>
    %c0_17 = arith.constant 0 : index
    %c0_18 = arith.constant 0 : index
    %26 = memref.load %arg7[%c0_17, %c0_18] : memref<1x1xf32, #tpu.memory_space<smem>>
    %27 = vector.broadcast %26 : f32 to vector<1x128xf32>
    %28 = arith.addf %25, %27 : vector<1x128xf32>
    %29 = arith.negf %28 : vector<1x128xf32>
    %30 = math.exp %29 : vector<1x128xf32>
    %cst_19 = arith.constant 1.000000e+00 : f32
    %31 = vector.broadcast %cst_19 : f32 to vector<1x128xf32>
    %32 = arith.addf %31, %30 : vector<1x128xf32>
    %33 = arith.divf %31, %32 : vector<1x128xf32>
    %c0_20 = arith.constant 0 : index
    %c0_21 = arith.constant 0 : index
    %34 = vector.load %arg8[%c0_20, %c0_21] : memref<1x128xf32, #tpu.memory_space<vmem>>, vector<1x128xf32>
    tpu.vector_store %arg8[%c0_20, %c0_21], %33 {strides = array<i32>} : memref<1x128xf32, #tpu.memory_space<vmem>>, vector<1x128xf32>,
    return
  }
  func.func @transform_0(%arg0: i32) -> (i32, i32) {
    %c0_i32 = arith.constant 0 : i32
    %c0_i32_0 = arith.constant 0 : i32
    return %arg0, %c0_i32 : i32, i32
  }
  func.func @transform_1(%arg0: i32) -> (i32, i32) {
    %c0_i32 = arith.constant 0 : i32
    %c0_i32_0 = arith.constant 0 : i32
    %c0_i32_1 = arith.constant 0 : i32
    return %c0_i32, %c0_i32_0 : i32, i32
  }
  func.func @transform_2(%arg0: i32) -> (i32, i32) {
    %c0_i32 = arith.constant 0 : i32
    %c0_i32_0 = arith.constant 0 : i32
    %c0_i32_1 = arith.constant 0 : i32
    return %c0_i32, %c0_i32_0 : i32, i32
  }
  func.func @transform_3(%arg0: i32) -> (i32, i32) {
    %c0_i32 = arith.constant 0 : i32
    %c0_i32_0 = arith.constant 0 : i32
    %c0_i32_1 = arith.constant 0 : i32
    return %c0_i32, %c0_i32_0 : i32, i32
  }
  func.func @transform_4(%arg0: i32) -> (i32, i32) {
    %c0_i32 = arith.constant 0 : i32
    %c0_i32_0 = arith.constant 0 : i32
    %c0_i32_1 = arith.constant 0 : i32
    return %c0_i32, %c0_i32_0 : i32, i32
  }
  func.func @transform_5(%arg0: i32) -> (i32, i32) {
    %c0_i32 = arith.constant 0 : i32
    %c0_i32_0 = arith.constant 0 : i32
    %c0_i32_1 = arith.constant 0 : i32
    return %c0_i32, %c0_i32_0 : i32, i32
  }
  func.func @transform_6(%arg0: i32) -> (i32, i32) {
    %c0_i32 = arith.constant 0 : i32
    %c0_i32_0 = arith.constant 0 : i32
    %c0_i32_1 = arith.constant 0 : i32
    return %c0_i32, %c0_i32_0 : i32, i32
  }
  func.func @transform_7(%arg0: i32) -> (i32, i32) {
    %c0_i32 = arith.constant 0 : i32
    %c0_i32_0 = arith.constant 0 : i32
    return %arg0, %c0_i32 : i32, i32
  }
}

</mosaic_0001>

<bundles_post_ra>
// kernel: tpu_custom_call.1
= control target key start
LH: loop header
LB: loop body
LE: loop exit
PB: predicated region body
PF: predicated region fallthrough
CT: control target
= control target key end

     0   :  { %13 = vsyncpa [#allocation4], 0  ;;  %s8004_s0 = inlined_call_operand.vmem [shape: f32[128,784], index: 0, kind: input, shape index: {}]   ;;  %s8005_s1 = inlined_call_operand.vmem [shape: bf16[784,512], index: 1, kind: input, shape index: {}]   ;;  %s8006_s2 = inlined_call_operand.vmem [shape: f32[1,512], index: 2, kind: input, shape index: {}]   ;;  %s8007_s3 = inlined_call_operand.hbm [shape: bf16[512,256], index: 3, kind: input, shape index: {}]   ;;  %s8008_s4 = inlined_call_operand.vmem [shape: f32[1,256], index: 4, kind: input, shape index: {}]   ;;  %s8009_s5 = inlined_call_operand.vmem [shape: f32[1,256], index: 5, kind: input, shape index: {}]   ;;  %s8010_s6 = inlined_call_operand.<no memory space> [shape: f32[1,1], index: 6, kind: input, shape index: {}]   ;;  %s8011_s7 = inlined_call_operand.hbm [shape: f32[1,128], index: 7, kind: output, shape index: {}]  }
   0x1   :  { %14 = vsyncpa [#allocation5], 0  ;;  %s25_s26 = sshll.u32 %s8007_s3, 4  ;;  %s5378_s27 = smov [#allocation3]   ;;  %s26_s26 = int_to_ptr.hbm [resolvable:$true] %s25_s26 }
   0x2   :  { %s27_s28 = sshll.u32 %s5378_s27, 4  ;;  %s5379_s29 = smov 128   ;;  %s28_s28 = int_to_ptr.vmem [resolvable:$true] %s27_s28 }
   0x3   :  { %s5380_s30 = smov 8  }
   0x4   :  { %33 = dma.hbm_to_vmem [thread:$0]  %s26_s26, 8192, %s28_s28, [#allocation4], %s5379_s29, %s5379_s29, %s5380_s30  }
   0x5   :  { %5374 = dma.done.wait [#allocation4], 8192  }
   0x6   :  { %5375 = vsyncadd [#allocation4], 4294959104  ;;  %v4097_v0 = vld [vmem:[%s8005_s1 + $0xe0] sm:$0xf]  ;;  %v5086_v1 = vld [vmem:[%s8005_s1 + $0xec] sm:$0xf0] }
   0x7   :  { %v4225_v2 = vld [vmem:[%s8005_s1 + $0x1e0] sm:$0xf]  ;;  %v4098_v3 = vor.u32 %v5086_v1, %v4097_v0  ;;  %v5118_v4 = vld [vmem:[%s8005_s1 + $0x1ec] sm:$0xf0]  ;;  %vm1399_vm0 = vcmask 130048   ;;  %s5381_s21 = smov [#allocation6]  }
   0x8   :  { %v4353_v5 = vld [vmem:[%s8005_s1 + $0x2e0] sm:$0xf]  ;;  %v5150_v6 = vld [vmem:[%s8005_s1 + $0x2ec] sm:$0xf0]  ;;  %v4226_v7 = vor.u32 %v5118_v4, %v4225_v2  ;;  %s3971_s22 = sshll.u32 %s5381_s21, 4  ;;  %s3973_s24 = sshll.u32 %s8011_s7, 4  ;;  %s3972_s22 = int_to_ptr.vmem [resolvable:$true] %s3971_s22  ;;  %s3974_s24 = int_to_ptr.hbm [resolvable:$true] %s3973_s24 }
   0x9   :  { %v4354_v8 = vor.u32 %v5150_v6, %v4353_v5  ;;  %v4481_v9 = vld [vmem:[%s8005_s1 + $0x3e0] sm:$0xf]  ;;  %v5182_v10 = vld [vmem:[%s8005_s1 + $0x3ec] sm:$0xf0]  ;;  %1424 = vmatpush.bf16.msra.mxu0 %v4098_v3 }
   0xa   :  { %v4081_v11 = vld [vmem:[%s8005_s1 + $0xc0] sm:$0xf]  ;;  %v4482_v12 = vor.u32 %v5182_v10, %v4481_v9  ;;  %v5082_v13 = vld [vmem:[%s8005_s1 + $0xcc] sm:$0xf0]  ;;  %1473 = vmatpush.bf16.msra.mxu1 %v4226_v7 }
   0xb   :  { %v4209_v14 = vld [vmem:[%s8005_s1 + $0x1c0] sm:$0xf]  ;;  %v5114_v15 = vld [vmem:[%s8005_s1 + $0x1cc] sm:$0xf0]  ;;  %1522 = vmatpush.bf16.msra.mxu2 %v4354_v8  ;;  %v4082_v16 = vor.u32 %v5082_v13, %v4081_v11 }
   0xc   :  { %v4210_v17 = vor.u32 %v5114_v15, %v4209_v14  ;;  %v4337_v18 = vld [vmem:[%s8005_s1 + $0x2c0] sm:$0xf]  ;;  %v5146_v19 = vld [vmem:[%s8005_s1 + $0x2cc] sm:$0xf0]  ;;  %1571 = vmatpush.bf16.msra.mxu3 %v4482_v12 }
   0xd   :  { %v4465_v20 = vld [vmem:[%s8005_s1 + $0x3c0] sm:$0xf]  ;;  %v4338_v21 = vor.u32 %v5146_v19, %v4337_v18  ;;  %v5178_v22 = vld [vmem:[%s8005_s1 + $0x3cc] sm:$0xf0]  ;;  %1425 = vmatpush.bf16.msra.mxu0 %v4082_v16 }
   0xe   :  { %v4065_v23 = vld [vmem:[%s8005_s1 + $0xa0] sm:$0xf]  ;;  %v5078_v24 = vld [vmem:[%s8005_s1 + $0xac] sm:$0xf0]  ;;  %v4466_v25 = vor.u32 %v5178_v22, %v4465_v20  ;;  %1474 = vmatpush.bf16.msra.mxu1 %v4210_v17 }
   0xf   :  { %v4193_v26 = vld [vmem:[%s8005_s1 + $0x1a0] sm:$0xf]  ;;  %v5110_v27 = vld [vmem:[%s8005_s1 + $0x1ac] sm:$0xf0]  ;;  %v4066_v29 = vor.u32 %v5078_v24, %v4065_v23  ;;  %1523 = vmatpush.bf16.msra.mxu2 %v4338_v21 }
  0x10   :  { %v4321_v28 = vld [vmem:[%s8005_s1 + $0x2a0] sm:$0xf]  ;;  %v5142_v30 = vld [vmem:[%s8005_s1 + $0x2ac] sm:$0xf0]  ;;  %v4194_v33 = vor.u32 %v5110_v27, %v4193_v26  ;;  %1572 = vmatpush.bf16.msra.mxu3 %v4466_v25 }
  0x11   :  { %v4449_v31 = vld [vmem:[%s8005_s1 + $0x3a0] sm:$0xf]  ;;  %v5174_v32 = vld [vmem:[%s8005_s1 + $0x3ac] sm:$0xf0]  ;;  %v4322_v34 = vor.u32 %v5142_v30, %v4321_v28  ;;  %1426 = vmatpush.bf16.msra.mxu0 %v4066_v29  ;;  %v52_v30 = vld [vmem:[%s8004_s0 + $0x38] sm:$0xff] }
  0x12   :  { %v4049_v35 = vld [vmem:[%s8005_s1 + $0x80] sm:$0xf]  ;;  %v5074_v36 = vld [vmem:[%s8005_s1 + $0x8c] sm:$0xf0]  ;;  %v4450_v38 = vor.u32 %v5174_v32, %v4449_v31  ;;  %1475 = vmatpush.bf16.msra.mxu1 %v4194_v33  ;;  %v46_v31 = vld [vmem:[%s8004_s0 + $0x8] sm:$0xff] }
  0x13   :  { %v4177_v37 = vld [vmem:[%s8005_s1 + $0x180] sm:$0xf]  ;;  %v5106_v39 = vld [vmem:[%s8005_s1 + $0x18c] sm:$0xf0]  ;;  %v4050_v44 = vor.u32 %v5074_v36, %v4049_v35  ;;  %1524 = vmatpush.bf16.msra.mxu2 %v4322_v34  ;;  %v54_v36 = vld [vmem:[%s8004_s0 + $0x48] sm:$0xff] }
  0x14   :  { %v4305_v40 = vld [vmem:[%s8005_s1 + $0x280] sm:$0xf]  ;;  %v5138_v41 = vld [vmem:[%s8005_s1 + $0x28c] sm:$0xf0]  ;;  %v4178_v45 = vor.u32 %v5106_v39, %v4177_v37  ;;  %1573 = vmatpush.bf16.msra.mxu3 %v4450_v38  ;;  %v48_v38 = vld [vmem:[%s8004_s0 + $0x18] sm:$0xff] }
  0x15   :  { %v4433_v42 = vld [vmem:[%s8005_s1 + $0x380] sm:$0xf]  ;;  %v5170_v43 = vld [vmem:[%s8005_s1 + $0x38c] sm:$0xf0]  ;;  %v4306_v46 = vor.u32 %v5138_v41, %v4305_v40  ;;  %1427 = vmatpush.bf16.msra.mxu0 %v4050_v44 }
  0x16   :  { %v4033_v47 = vld [vmem:[%s8005_s1 + $0x60] sm:$0xf]  ;;  %v5070_v48 = vld [vmem:[%s8005_s1 + $0x6c] sm:$0xf0]  ;;  %v4434_v50 = vor.u32 %v5170_v43, %v4433_v42  ;;  %1476 = vmatpush.bf16.msra.mxu1 %v4178_v45  ;;  %v66_v45 = vld [vmem:[%s8004_s0 + $0xa8] sm:$0xff] }
  0x17   :  { %v4161_v49 = vld [vmem:[%s8005_s1 + $0x160] sm:$0xf]  ;;  %v5102_v51 = vld [vmem:[%s8005_s1 + $0x16c] sm:$0xf0]  ;;  %v4034_v56 = vor.u32 %v5070_v48, %v4033_v47  ;;  %1525 = vmatpush.bf16.msra.mxu2 %v4306_v46  ;;  %v60_v46 = vld [vmem:[%s8004_s0 + $0x78] sm:$0xff] }
  0x18   :  { %v4289_v52 = vld [vmem:[%s8005_s1 + $0x260] sm:$0xf]  ;;  %v5134_v53 = vld [vmem:[%s8005_s1 + $0x26c] sm:$0xf0]  ;;  %v4162_v57 = vor.u32 %v5102_v51, %v4161_v49  ;;  %1574 = vmatpush.bf16.msra.mxu3 %v4434_v50  ;;  %v68_v49 = vld [vmem:[%s8004_s0 + $0xb8] sm:$0xff] }
  0x19   :  { %v4417_v54 = vld [vmem:[%s8005_s1 + $0x360] sm:$0xf]  ;;  %v5166_v55 = vld [vmem:[%s8005_s1 + $0x36c] sm:$0xf0]  ;;  %v4290_v58 = vor.u32 %v5134_v53, %v4289_v52  ;;  %1428 = vmatpush.bf16.msra.mxu0 %v4034_v56  ;;  %v62_v50 = vld [vmem:[%s8004_s0 + $0x88] sm:$0xff] }
  0x1a   :  { %v4017_v59 = vld [vmem:[%s8005_s1 + $0x40] sm:$0xf]  ;;  %v5066_v60 = vld [vmem:[%s8005_s1 + $0x4c] sm:$0xf0]  ;;  %v4418_v62 = vor.u32 %v5166_v55, %v4417_v54  ;;  %1477 = vmatpush.bf16.msra.mxu1 %v4162_v57  ;;  %v80_v57 = vld [vmem:[%s8004_s0 + $0x118] sm:$0xff] }
  0x1b   :  { %v4145_v61 = vld [vmem:[%s8005_s1 + $0x140] sm:$0xf]  ;;  %v5098_v63 = vld [vmem:[%s8005_s1 + $0x14c] sm:$0xf0]  ;;  %v4018_v4 = vor.u32 %v5066_v60, %v4017_v59  ;;  %1526 = vmatpush.bf16.msra.mxu2 %v4290_v58  ;;  %v74_v58 = vld [vmem:[%s8004_s0 + $0xe8] sm:$0xff] }
  0x1c   :  { %v4273_v0 = vld [vmem:[%s8005_s1 + $0x240] sm:$0xf]  ;;  %v5130_v1 = vld [vmem:[%s8005_s1 + $0x24c] sm:$0xf0]  ;;  %v4146_v5 = vor.u32 %v5098_v63, %v4145_v61  ;;  %1575 = vmatpush.bf16.msra.mxu3 %v4418_v62  ;;  %v82_v61 = vld [vmem:[%s8004_s0 + $0x128] sm:$0xff] }
  0x1d   :  { %v4401_v2 = vld [vmem:[%s8005_s1 + $0x340] sm:$0xf]  ;;  %v5162_v3 = vld [vmem:[%s8005_s1 + $0x34c] sm:$0xf0]  ;;  %v4274_v6 = vor.u32 %v5130_v1, %v4273_v0  ;;  %1429 = vmatpush.bf16.msra.mxu0 %v4018_v4  ;;  %v76_v62 = vld [vmem:[%s8004_s0 + $0xf8] sm:$0xff] }
  0x1e   :  { %v4001_v7 = vld [vmem:[%s8005_s1 + $0x20] sm:$0xf]  ;;  %v5062_v8 = vld [vmem:[%s8005_s1 + $0x2c] sm:$0xf0]  ;;  %v4402_v10 = vor.u32 %v5162_v3, %v4401_v2  ;;  %1478 = vmatpush.bf16.msra.mxu1 %v4146_v5 }
  0x1f   :  { %v4129_v9 = vld [vmem:[%s8005_s1 + $0x120] sm:$0xf]  ;;  %v5094_v11 = vld [vmem:[%s8005_s1 + $0x12c] sm:$0xf0]  ;;  %v4002_v16 = vor.u32 %v5062_v8, %v4001_v7  ;;  %1527 = vmatpush.bf16.msra.mxu2 %v4274_v6 }
  0x20   :  { %v4257_v12 = vld [vmem:[%s8005_s1 + $0x220] sm:$0xf]  ;;  %v5126_v13 = vld [vmem:[%s8005_s1 + $0x22c] sm:$0xf0]  ;;  %v4130_v17 = vor.u32 %v5094_v11, %v4129_v9  ;;  %1576 = vmatpush.bf16.msra.mxu3 %v4402_v10  ;;  %v5084_v9 = vld [vmem:[%s8005_s1 + $0xe4] sm:$0xf] }
  0x21   :  { %v4385_v14 = vld [vmem:[%s8005_s1 + $0x320] sm:$0xf]  ;;  %v5158_v15 = vld [vmem:[%s8005_s1 + $0x32c] sm:$0xf0]  ;;  %v4258_v18 = vor.u32 %v5126_v13, %v4257_v12  ;;  %1430 = vmatpush.bf16.msra.mxu0 %v4002_v16  ;;  %v4099_v10 = vld [vmem:[%s8005_s1 + $0xf0] sm:$0xf0] }
  0x22   :  { %v3985_v19 = vld [vmem:[%s8005_s1] sm:$0xf]  ;;  %v5058_v20 = vld [vmem:[%s8005_s1 + $0xc] sm:$0xf0]  ;;  %v4386_v22 = vor.u32 %v5158_v15, %v4385_v14  ;;  %1479 = vmatpush.bf16.msra.mxu1 %v4130_v17  ;;  %v4102_v12 = vor.u32 %v5084_v9, %v4099_v10  ;;  %v94_v17 = vld [vmem:[%s8004_s0 + $0x188] sm:$0xff] }
  0x23   :  { %v4113_v21 = vld [vmem:[%s8005_s1 + $0x100] sm:$0xf]  ;;  %v5090_v23 = vld [vmem:[%s8005_s1 + $0x10c] sm:$0xf0]  ;;  %v3986_v28 = vor.u32 %v5058_v20, %v3985_v19  ;;  %1528 = vmatpush.bf16.msra.mxu2 %v4258_v18  ;;  %v88_v18 = vld [vmem:[%s8004_s0 + $0x158] sm:$0xff] }
  0x24   :  { %v4241_v24 = vld [vmem:[%s8005_s1 + $0x200] sm:$0xf]  ;;  %v5122_v25 = vld [vmem:[%s8005_s1 + $0x20c] sm:$0xf0]  ;;  %v4114_v32 = vor.u32 %v5090_v23, %v4113_v21  ;;  %1577 = vmatpush.bf16.msra.mxu3 %v4386_v22  ;;  %v96_v21 = vld [vmem:[%s8004_s0 + $0x198] sm:$0xff] }
  0x25   :  { %v4369_v26 = vld [vmem:[%s8005_s1 + $0x300] sm:$0xf]  ;;  %v5154_v27 = vld [vmem:[%s8005_s1 + $0x30c] sm:$0xf0]  ;;  %v4242_v33 = vor.u32 %v5122_v25, %v4241_v24  ;;  %1431 = vmatpush.bf16.msra.mxu0 %v3986_v28  ;;  %v90_v22 = vld [vmem:[%s8004_s0 + $0x168] sm:$0xff] }
  0x26   :  { %v45_v29 = vld [vmem:[%s8004_s0] sm:$0xff]  ;;  %v47_v35 = vld [vmem:[%s8004_s0 + $0x10] sm:$0xff]  ;;  %v4370_v37 = vor.u32 %v5154_v27, %v4369_v26  ;;  %1480 = vmatpush.bf16.msra.mxu1 %v4114_v32 }
  0x27   :  { %v53_v34 = vld [vmem:[%s8004_s0 + $0x40] sm:$0xff]  ;;  %v55_v39 = vld [vmem:[%s8004_s0 + $0x50] sm:$0xff]  ;;  %v5641_v40 = vpack.c.bf16 %v52_v30, %v45_v29  ;;  %v5645_v42 = vpack.c.bf16 %v54_v36, %v47_v35  ;;  %1529 = vmatpush.bf16.msra.mxu2 %v4242_v33 }
  0x28   :  { %v5643_v41 = vpack.c.bf16 %v53_v34, %v46_v31  ;;  %v5647_v43 = vpack.c.bf16 %v55_v39, %v48_v38  ;;  %1578 = vmatpush.bf16.msra.mxu3 %v4370_v37  ;;  %v59_v44 = vld [vmem:[%s8004_s0 + $0x70] sm:$0xff]  ;;  %v61_v48 = vld [vmem:[%s8004_s0 + $0x80] sm:$0xff]  ;;  %v108_v38 = vld [vmem:[%s8004_s0 + $0x1f8] sm:$0xff] }
  0x29   :  { %8095 = vst [vmem:[#allocation9_spill] sm:$0xff] %v5641_v40  ;;  %1432 = vmatmul.bf16.vlgmr.msra.gmra.mxu0 %v5641_v40  ;;  %v67_v47 = vld [vmem:[%s8004_s0 + $0xb0] sm:$0xff]  ;;  %v69_v51 = vld [vmem:[%s8004_s0 + $0xc0] sm:$0xff]  ;;  %v5677_v52 = vpack.c.bf16 %v66_v45, %v59_v44  ;;  %v5681_v54 = vpack.c.bf16 %v68_v49, %v61_v48  ;;  %v102_v39 = vld [vmem:[%s8004_s0 + $0x1c8] sm:$0xff] }
  0x2a   :  { %8096 = vst [vmem:[#allocation10_spill] sm:$0xff] %v5643_v41  ;;  %1481 = vmatmul.bf16.vlgmr.msra.gmra.mxu1 %v5643_v41  ;;  %1530 = vmatmul.bf16.vlgmr.msra.gmra.mxu2 %v5645_v42  ;;  %v5679_v53 = vpack.c.bf16 %v67_v47, %v60_v46  ;;  %v5683_v55 = vpack.c.bf16 %v69_v51, %v62_v50  ;;  %v73_v56 = vld [vmem:[%s8004_s0 + $0xe0] sm:$0xff]  ;;  %v75_v60 = vld [vmem:[%s8004_s0 + $0xf0] sm:$0xff]  ;;  %v110_v46 = vld [vmem:[%s8004_s0 + $0x208] sm:$0xff] }
  0x2b   :  { %1579 = vmatmul.bf16.vlgmr.msra.gmra.mxu3 %v5647_v43  ;;  %8097 = vst [vmem:[#allocation11_spill] sm:$0xff] %v5677_v52  ;;  %v81_v59 = vld [vmem:[%s8004_s0 + $0x120] sm:$0xff]  ;;  %v83_v63 = vld [vmem:[%s8004_s0 + $0x130] sm:$0xff]  ;;  %v5713_v0 = vpack.c.bf16 %v80_v57, %v73_v56  ;;  %v5717_v2 = vpack.c.bf16 %v82_v61, %v75_v60  ;;  %v104_v47 = vld [vmem:[%s8004_s0 + $0x1d8] sm:$0xff] }
  0x2c   :  { %8098 = vst [vmem:[#allocation12_spill] sm:$0xff] %v5679_v53  ;;  %v5715_v1 = vpack.c.bf16 %v81_v59, %v74_v58  ;;  %v5719_v3 = vpack.c.bf16 %v83_v63, %v76_v62  ;;  %v4753_v4 = vld [vmem:[%s8005_s1 + $0x600] sm:$0xf]  ;;  %v5250_v5 = vld [vmem:[%s8005_s1 + $0x60c] sm:$0xf0]  ;;  %1767 = vmatpush.bf16.msrb.mxu3 %v4102_v12 }
  0x2d   :  { %8099 = vst [vmem:[#allocation13_spill] sm:$0xff] %v5713_v0  ;;  %v4609_v6 = vld [vmem:[%s8005_s1 + $0x4e0] sm:$0xf]  ;;  %v4754_v7 = vor.u32 %v5250_v5, %v4753_v4  ;;  %v5214_v8 = vld [vmem:[%s8005_s1 + $0x4ec] sm:$0xf0] }
  0x2e   :  { %8100 = vst [vmem:[#allocation14_spill] sm:$0xff] %v5715_v1  ;;  %v4610_v11 = vor.u32 %v5214_v8, %v4609_v6  ;;  %v4737_v13 = vld [vmem:[%s8005_s1 + $0x5e0] sm:$0xf]  ;;  %v5246_v14 = vld [vmem:[%s8005_s1 + $0x5ec] sm:$0xf0] }
  0x2f   :  { %1725 = vmatpush.bf16.msrb.mxu2 %v4754_v7  ;;  %v4738_v15 = vor.u32 %v5246_v14, %v4737_v13  ;;  %v87_v16 = vld [vmem:[%s8004_s0 + $0x150] sm:$0xff]  ;;  %v89_v20 = vld [vmem:[%s8004_s0 + $0x160] sm:$0xff] }
  0x30   :  { %1620 = vmatpush.bf16.msrb.mxu0 %v4610_v11  ;;  %v95_v19 = vld [vmem:[%s8004_s0 + $0x190] sm:$0xff]  ;;  %v97_v23 = vld [vmem:[%s8004_s0 + $0x1a0] sm:$0xff]  ;;  %v5773_v24 = vpack.c.bf16 %v94_v17, %v87_v16  ;;  %v5777_v26 = vpack.c.bf16 %v96_v21, %v89_v20  ;;  %v122_v16 = vld [vmem:[%s8004_s0 + $0x268] sm:$0xff] }
  0x31   :  { %1669 = vmatpush.bf16.msrb.mxu1 %v4738_v15  ;;  %v5775_v25 = vpack.c.bf16 %v95_v19, %v88_v18  ;;  %v5779_v27 = vpack.c.bf16 %v97_v23, %v90_v22  ;;  %v4593_v28 = vld [vmem:[%s8005_s1 + $0x4c0] sm:$0xf]  ;;  %v5210_v29 = vld [vmem:[%s8005_s1 + $0x4cc] sm:$0xf0]  ;;  %v5080_v30 = vld [vmem:[%s8005_s1 + $0xc4] sm:$0xf] }
  0x32   :  { %8101 = vst [vmem:[#allocation15_spill] sm:$0xff] %v5773_v24  ;;  %v4594_v31 = vor.u32 %v5210_v29, %v4593_v28  ;;  %v4083_v32 = vld [vmem:[%s8005_s1 + $0xd0] sm:$0xf0]  ;;  %v4721_v33 = vld [vmem:[%s8005_s1 + $0x5c0] sm:$0xf]  ;;  %v116_v17 = vld [vmem:[%s8004_s0 + $0x238] sm:$0xff] }
  0x33   :  { %8102 = vst [vmem:[#allocation16_spill] sm:$0xff] %v5775_v25  ;;  %v5242_v34 = vld [vmem:[%s8005_s1 + $0x5cc] sm:$0xf0]  ;;  %v4086_v35 = vor.u32 %v5080_v30, %v4083_v32  ;;  %v101_v37 = vld [vmem:[%s8004_s0 + $0x1c0] sm:$0xff]  ;;  %v4067_v61 = vld [vmem:[%s8005_s1 + $0xb0] sm:$0xf0] }
  0x34   :  { %v4722_v36 = vor.u32 %v5242_v34, %v4721_v33  ;;  %1621 = vmatpush.bf16.msrb.mxu0 %v4594_v31  ;;  %v109_v44 = vld [vmem:[%s8004_s0 + $0x200] sm:$0xff]  ;;  %v103_v45 = vld [vmem:[%s8004_s0 + $0x1d0] sm:$0xff]  ;;  %v5827_v49 = vpack.c.bf16 %v108_v38, %v101_v37  ;;  %v124_v20 = vld [vmem:[%s8004_s0 + $0x278] sm:$0xff] }
  0x35   :  { %1768 = vmatpush.bf16.msrb.mxu3 %v4086_v35  ;;  %v111_v48 = vld [vmem:[%s8004_s0 + $0x210] sm:$0xff]  ;;  %v5829_v50 = vpack.c.bf16 %v109_v44, %v102_v39  ;;  %v5831_v51 = vpack.c.bf16 %v110_v46, %v103_v45  ;;  %v4577_v57 = vld [vmem:[%s8005_s1 + $0x4a0] sm:$0xf]  ;;  %v5076_v59 = vld [vmem:[%s8005_s1 + $0xa4] sm:$0xf] }
  0x36   :  { %1670 = vmatpush.bf16.msrb.mxu1 %v4722_v36  ;;  %8103 = vst [vmem:[#allocation17_spill] sm:$0xff] %v5827_v49  ;;  %v5833_v56 = vpack.c.bf16 %v111_v48, %v104_v47  ;;  %v5206_v58 = vld [vmem:[%s8005_s1 + $0x4ac] sm:$0xf0]  ;;  %v4705_v62 = vld [vmem:[%s8005_s1 + $0x5a0] sm:$0xf]  ;;  %v4070_v4 = vor.u32 %v5076_v59, %v4067_v61  ;;  %v118_v21 = vld [vmem:[%s8004_s0 + $0x248] sm:$0xff] }
  0x37   :  { %8104 = vst [vmem:[#allocation18_spill] sm:$0xff] %v5829_v50  ;;  %v4578_v60 = vor.u32 %v5206_v58, %v4577_v57  ;;  %v5238_v63 = vld [vmem:[%s8005_s1 + $0x5ac] sm:$0xf0]  ;;  %v4561_v6 = vld [vmem:[%s8005_s1 + $0x480] sm:$0xf] }
  0x38   :  { %v4706_v5 = vor.u32 %v5238_v63, %v4705_v62  ;;  %v5202_v7 = vld [vmem:[%s8005_s1 + $0x48c] sm:$0xf0]  ;;  %v4689_v8 = vld [vmem:[%s8005_s1 + $0x580] sm:$0xf]  ;;  %v5072_v11 = vld [vmem:[%s8005_s1 + $0x84] sm:$0xf] }
  0x39   :  { %1437 = vmatmul.bf16.gmra.mxu0 %v5677_v52  ;;  %v4562_v9 = vor.u32 %v5202_v7, %v4561_v6  ;;  %v5234_v10 = vld [vmem:[%s8005_s1 + $0x58c] sm:$0xf0]  ;;  %v4051_v12 = vld [vmem:[%s8005_s1 + $0x90] sm:$0xf0]  ;;  %1769 = vmatpush.bf16.msrb.mxu3 %v4070_v4  ;;  %v117_v19 = vld [vmem:[%s8004_s0 + $0x240] sm:$0xff] }
  0x3a   :  { %1486 = vmatmul.bf16.gmra.mxu1 %v5679_v53  ;;  %1535 = vmatmul.bf16.gmra.mxu2 %v5681_v54  ;;  %v4690_v13 = vor.u32 %v5234_v10, %v4689_v8  ;;  %v4054_v14 = vor.u32 %v5072_v11, %v4051_v12  ;;  %v115_v15 = vld [vmem:[%s8004_s0 + $0x230] sm:$0xff]  ;;  %v125_v22 = vld [vmem:[%s8004_s0 + $0x280] sm:$0xff]  ;;  %v5903_v29 = vpack.c.bf16 %v124_v20, %v117_v19  ;;  %v130_v10 = vld [vmem:[%s8004_s0 + $0x2a8] sm:$0xff] }
  0x3b   :  { %1584 = vmatmul.bf16.gmra.mxu3 %v5683_v55  ;;  %1622 = vmatpush.bf16.msrb.mxu0 %v4578_v60  ;;  %v123_v18 = vld [vmem:[%s8004_s0 + $0x270] sm:$0xff]  ;;  %v5899_v23 = vpack.c.bf16 %v122_v16, %v115_v15  ;;  %v5905_v30 = vpack.c.bf16 %v125_v22, %v118_v21  ;;  %v4545_v31 = vld [vmem:[%s8005_s1 + $0x460] sm:$0xf]  ;;  %v5068_v36 = vld [vmem:[%s8005_s1 + $0x64] sm:$0xf] }
  0x3c   :  { %1671 = vmatpush.bf16.msrb.mxu1 %v4706_v5  ;;  %v5901_v28 = vpack.c.bf16 %v123_v18, %v116_v17  ;;  %v5198_v32 = vld [vmem:[%s8005_s1 + $0x46c] sm:$0xf0]  ;;  %v4673_v33 = vld [vmem:[%s8005_s1 + $0x560] sm:$0xf]  ;;  %v4035_v37 = vld [vmem:[%s8005_s1 + $0x70] sm:$0xf0] }
  0x3d   :  { %1770 = vmatpush.bf16.msrb.mxu3 %v4054_v14  ;;  %8105 = vst [vmem:[#allocation19_spill] sm:$0xff] %v5899_v23  ;;  %v4546_v34 = vor.u32 %v5198_v32, %v4545_v31  ;;  %v5230_v35 = vld [vmem:[%s8005_s1 + $0x56c] sm:$0xf0]  ;;  %v4038_v39 = vor.u32 %v5068_v36, %v4035_v37  ;;  %v4529_v44 = vld [vmem:[%s8005_s1 + $0x440] sm:$0xf]  ;;  %v138_v15 = vld [vmem:[%s8004_s0 + $0x2e8] sm:$0xff] }
  0x3e   :  { %8106 = vst [vmem:[#allocation20_spill] sm:$0xff] %v5901_v28  ;;  %v4674_v38 = vor.u32 %v5230_v35, %v4673_v33  ;;  %v5194_v45 = vld [vmem:[%s8005_s1 + $0x44c] sm:$0xf0]  ;;  %v4657_v46 = vld [vmem:[%s8005_s1 + $0x540] sm:$0xf]  ;;  %v132_v16 = vld [vmem:[%s8004_s0 + $0x2b8] sm:$0xff] }
  0x3f   :  { %1623 = vmatpush.bf16.msrb.mxu0 %v4562_v9  ;;  %8107 = vst [vmem:[#allocation21_spill] sm:$0xff] %v5905_v30  ;;  %v4530_v47 = vor.u32 %v5194_v45, %v4529_v44  ;;  %v5226_v48 = vld [vmem:[%s8005_s1 + $0x54c] sm:$0xf0]  ;;  %v5064_v57 = vld [vmem:[%s8005_s1 + $0x44] sm:$0xf]  ;;  %v136_v9 = vld [vmem:[%s8004_s0 + $0x2d8] sm:$0xff] }
  0x40   :  { %1672 = vmatpush.bf16.msrb.mxu1 %v4690_v13  ;;  %v4019_v58 = vld [vmem:[%s8005_s1 + $0x50] sm:$0xf0]  ;;  %v4658_v59 = vor.u32 %v5226_v48, %v4657_v46  ;;  %v4513_v61 = vld [vmem:[%s8005_s1 + $0x420] sm:$0xf]  ;;  %v5190_v62 = vld [vmem:[%s8005_s1 + $0x42c] sm:$0xf0] }
  0x41   :  { %1771 = vmatpush.bf16.msrb.mxu3 %v4038_v39  ;;  %v4022_v60 = vor.u32 %v5064_v57, %v4019_v58  ;;  %v4641_v63 = vld [vmem:[%s8005_s1 + $0x520] sm:$0xf]  ;;  %v5222_v4 = vld [vmem:[%s8005_s1 + $0x52c] sm:$0xf0]  ;;  %v5060_v5 = vld [vmem:[%s8005_s1 + $0x24] sm:$0xf]  ;;  %v4514_v7 = vor.u32 %v5190_v62, %v4513_v61 }
  0x42   :  { %v4003_v6 = vld [vmem:[%s8005_s1 + $0x30] sm:$0xf0]  ;;  %v129_v8 = vld [vmem:[%s8004_s0 + $0x2a0] sm:$0xff]  ;;  %v4642_v11 = vor.u32 %v5222_v4, %v4641_v63  ;;  %v5186_v20 = vld [vmem:[%s8005_s1 + $0x40c] sm:$0xf0] }
  0x43   :  { %1624 = vmatpush.bf16.msrb.mxu0 %v4546_v34  ;;  %v4006_v12 = vor.u32 %v5060_v5, %v4003_v6  ;;  %v137_v13 = vld [vmem:[%s8004_s0 + $0x2e0] sm:$0xff]  ;;  %v131_v14 = vld [vmem:[%s8004_s0 + $0x2b0] sm:$0xff]  ;;  %v5989_v18 = vpack.c.bf16 %v136_v9, %v129_v8  ;;  %v150_v44 = vld [vmem:[%s8004_s0 + $0x348] sm:$0xff] }
  0x44   :  { %1673 = vmatpush.bf16.msrb.mxu1 %v4674_v38  ;;  %v139_v17 = vld [vmem:[%s8004_s0 + $0x2f0] sm:$0xff]  ;;  %v4497_v19 = vld [vmem:[%s8005_s1 + $0x400] sm:$0xf]  ;;  %v6000_v22 = vpack.c.bf16 %v137_v13, %v130_v10  ;;  %v6002_v31 = vpack.c.bf16 %v138_v15, %v131_v14  ;;  %v5056_v33 = vld [vmem:[%s8005_s1 + $0x4] sm:$0xf] }
  0x45   :  { %1772 = vmatpush.bf16.msrb.mxu3 %v4022_v60  ;;  %v4625_v21 = vld [vmem:[%s8005_s1 + $0x500] sm:$0xf]  ;;  %v5218_v32 = vld [vmem:[%s8005_s1 + $0x50c] sm:$0xf0]  ;;  %v3987_v34 = vld [vmem:[%s8005_s1 + $0x10] sm:$0xf0]  ;;  %v6013_v35 = vpack.c.bf16 %v139_v17, %v132_v16  ;;  %v4498_v36 = vor.u32 %v5186_v20, %v4497_v19 }
  0x46   :  { %v4626_v37 = vor.u32 %v5218_v32, %v4625_v21  ;;  %v3990_v38 = vor.u32 %v5056_v33, %v3987_v34  ;;  %v143_v39 = vld [vmem:[%s8004_s0 + $0x310] sm:$0xff]  ;;  %v144_v45 = vld [vmem:[%s8004_s0 + $0x318] sm:$0xff]  ;;  %v146_v57 = vld [vmem:[%s8004_s0 + $0x328] sm:$0xff] }
  0x47   :  { %1625 = vmatpush.bf16.msrb.mxu0 %v4530_v47  ;;  %8108 = vst [vmem:[#allocation22_spill] sm:$0xff] %v6013_v35  ;;  %v151_v46 = vld [vmem:[%s8004_s0 + $0x350] sm:$0xff]  ;;  %v145_v47 = vld [vmem:[%s8004_s0 + $0x320] sm:$0xff]  ;;  %v152_v48 = vld [vmem:[%s8004_s0 + $0x358] sm:$0xff] }
  0x48   :  { %1674 = vmatpush.bf16.msrb.mxu1 %v4658_v59  ;;  %v153_v58 = vld [vmem:[%s8004_s0 + $0x360] sm:$0xff]  ;;  %v6043_v59 = vpack.c.bf16 %v150_v44, %v143_v39  ;;  %v6045_v60 = vpack.c.bf16 %v151_v46, %v144_v45  ;;  %v6047_v61 = vpack.c.bf16 %v152_v48, %v145_v47  ;;  %v56_v5 = vld [vmem:[%s8004_s0 + $0x58] sm:$0xff]  ;;  %v50_v6 = vld [vmem:[%s8004_s0 + $0x28] sm:$0xff] }
  0x49   :  { %1442 = vmatmul.bf16.gmra.mxu0 %v5713_v0  ;;  %1773 = vmatpush.bf16.msrb.mxu3 %v4006_v12  ;;  %v6049_v62 = vpack.c.bf16 %v153_v58, %v146_v57  ;;  %v409_v63 = vld [vmem:[%s8006_s2] sm:$0xf]  ;;  %v51_v9 = vld [vmem:[%s8004_s0 + $0x30] sm:$0xff]  ;;  %v58_v10 = vld [vmem:[%s8004_s0 + $0x68] sm:$0xff] }
  0x4a   :  { %1491 = vmatmul.bf16.gmra.mxu1 %v5715_v1  ;;  %1540 = vmatmul.bf16.gmra.mxu2 %v5717_v2  ;;  %8109 = vst [vmem:[#allocation23_spill] sm:$0xff] %v6043_v59  ;;  %v49_v4 = vld [vmem:[%s8004_s0 + $0x20] sm:$0xff]  ;;  %v6082_v14 = vpack.c.bf16 %v58_v10, %v51_v9  ;;  %v70_v39 = vld [vmem:[%s8004_s0 + $0xc8] sm:$0xff]  ;;  %v64_v44 = vld [vmem:[%s8004_s0 + $0x98] sm:$0xff] }
  0x4b   :  { %1589 = vmatmul.bf16.gmra.mxu3 %v5719_v3  ;;  %1626 = vmatpush.bf16.msrb.mxu0 %v4514_v7  ;;  %8110 = vst [vmem:[#allocation24_spill] sm:$0xff] %v6045_v60  ;;  %v6067_v7 = vperm.slane %v409_v63, 0  ;;  %v57_v8 = vld [vmem:[%s8004_s0 + $0x60] sm:$0xff]  ;;  %v71_v45 = vld [vmem:[%s8004_s0 + $0xd0] sm:$0xff]  ;;  %v72_v47 = vld [vmem:[%s8004_s0 + $0xd8] sm:$0xff] }
  0x4c   :  { %1675 = vmatpush.bf16.msrb.mxu1 %v4642_v11  ;;  %8111 = vst [vmem:[#allocation25_spill] sm:$0xff] %v6047_v61  ;;  %v6078_v11 = vpack.c.bf16 %v56_v5, %v49_v4  ;;  %v6080_v13 = vpack.c.bf16 %v57_v8, %v50_v6  ;;  %v65_v46 = vld [vmem:[%s8004_s0 + $0xa0] sm:$0xff]  ;;  %v6113_v5 = vpack.c.bf16 %v71_v45, %v64_v44  ;;  %v79_v44 = vld [vmem:[%s8004_s0 + $0x110] sm:$0xff]  ;;  %v86_v45 = vld [vmem:[%s8004_s0 + $0x148] sm:$0xff] }
  0x4d   :  { %1774 = vmatpush.bf16.msrb.mxu3 %v3990_v38  ;;  %8112 = vst [vmem:[#allocation26_spill] sm:$0xff] %v6049_v62  ;;  %v63_v38 = vld [vmem:[%s8004_s0 + $0x90] sm:$0xff]  ;;  %v6115_v6 = vpack.c.bf16 %v72_v47, %v65_v46 }
  0x4e   :  { %8113 = vst [vmem:[#allocation27_spill] sm:$0xff] %v6080_v13  ;;  %v6111_v57 = vpack.c.bf16 %v70_v39, %v63_v38  ;;  %v78_v38 = vld [vmem:[%s8004_s0 + $0x108] sm:$0xff]  ;;  %v85_v39 = vld [vmem:[%s8004_s0 + $0x140] sm:$0xff] }
  0x4f   :  { %1627 = vmatpush.bf16.msrb.mxu0 %v4498_v36  ;;  %8114 = vst [vmem:[#allocation28_spill] sm:$0xff] %v6082_v14 }
  0x50   :  { %1676 = vmatpush.bf16.msrb.mxu1 %v4626_v37  ;;  %8115 = vst [vmem:[#allocation29_spill] sm:$0xff] %v6113_v5 }
  0x51   :  { %8116 = vst [vmem:[#allocation30_spill] sm:$0xff] %v6115_v6 }
  0x59   :  { %1447 = vmatmul.bf16.gmra.mxu0 %v5773_v24 }
  0x5a   :  { %1496 = vmatmul.bf16.gmra.mxu1 %v5775_v25  ;;  %1545 = vmatmul.bf16.gmra.mxu2 %v5777_v26 }
  0x5b   :  { %1594 = vmatmul.bf16.gmra.mxu3 %v5779_v27 }
  0x69   :  { %1452 = vmatmul.bf16.gmra.mxu0 %v5827_v49 }
  0x6a   :  { %1501 = vmatmul.bf16.gmra.mxu1 %v5829_v50  ;;  %1550 = vmatmul.bf16.gmra.mxu2 %v5831_v51 }
  0x6b   :  { %1599 = vmatmul.bf16.gmra.mxu3 %v5833_v56 }
  0x79   :  { %1457 = vmatmul.bf16.gmra.mxu0 %v5899_v23 }
  0x7a   :  { %1506 = vmatmul.bf16.gmra.mxu1 %v5901_v28  ;;  %1555 = vmatmul.bf16.gmra.mxu2 %v5903_v29 }
  0x7b   :  { %1604 = vmatmul.bf16.gmra.mxu3 %v5905_v30 }
  0x89   :  { %1462 = vmatmul.bf16.gmra.mxu0 %v5989_v18 }
  0x8a   :  { %1511 = vmatmul.bf16.gmra.mxu1 %v6000_v22  ;;  %1560 = vmatmul.bf16.gmra.mxu2 %v6002_v31 }
  0x8b   :  { %1609 = vmatmul.bf16.gmra.mxu3 %v6013_v35 }
  0x99   :  { %1467 = vmatmul.bf16.gmra.mxu0 %v6043_v59 }
  0x9a   :  { %1516 = vmatmul.bf16.gmra.mxu1 %v6045_v60  ;;  %1565 = vmatmul.bf16.gmra.mxu2 %v6047_v61 }
  0x9b   :  { %1614 = vmatmul.bf16.gmra.mxu3 %v6049_v62 }
  0xa6   :  { %v1433_v12 = vpop.f32.mrf.mxu0 }
  0xa7   :  { %v1434_v15 = vadd.f32 %v1433_v12, %v6067_v7  ;;  %v1482_v16 = vpop.f32.mrf.mxu1 }
  0xa9   :  { %v1483_v17 = vadd.f32 %v1482_v16, %v1434_v15  ;;  %1628 = vmatmul.bf16.vlgmr.msrb.gmra.mxu0 %v6078_v11 }
  0xaa   :  { %1677 = vmatmul.bf16.vlgmr.msrb.gmra.mxu1 %v6080_v13  ;;  %4767 = vmatmul.msk.bf16.vlgmr.msrb.gmra.mxu2 %vm1399_vm0, %v6082_v14 }
  0xab   :  { %1775 = vmatmul.bf16.vlgmr.msrb.gmra.mxu3 %v5641_v40 }
  0xad   :  { %v1531_v19 = vpop.f32.mrf.mxu2 }
  0xae   :  { %v1532_v20 = vadd.f32 %v1531_v19, %v1483_v17  ;;  %v1580_v21 = vpop.f32.mrf.mxu3  ;;  %v1435_v32 = vpop.f32.mrf.mxu0 }
  0xaf   :  { %v1436_v33 = vadd.f32 %v1435_v32, %v6067_v7  ;;  %v1484_v34 = vpop.f32.mrf.mxu1 }
  0xb0   :  { %v6091_v36 = vadd.f32 %v1580_v21, %v1532_v20 }
  0xb1   :  { %v1485_v37 = vadd.f32 %v1484_v34, %v1436_v33  ;;  %v77_v34 = vld [vmem:[%s8004_s0 + $0x100] sm:$0xff] }
  0xb5   :  { %v1533_v48 = vpop.f32.mrf.mxu2 }
  0xb6   :  { %v1534_v58 = vadd.f32 %v1533_v48, %v1485_v37  ;;  %v1582_v63 = vpop.f32.mrf.mxu3  ;;  %v1438_v4 = vpop.f32.mrf.mxu0  ;;  %v84_v37 = vld [vmem:[%s8004_s0 + $0x138] sm:$0xff] }
  0xb7   :  { %v1439_v8 = vadd.f32 %v1438_v4, %v6067_v7  ;;  %v1487_v9 = vpop.f32.mrf.mxu1  ;;  %v6146_v47 = vpack.c.bf16 %v84_v37, %v77_v34  ;;  %v6148_v4 = vpack.c.bf16 %v85_v39, %v78_v38 }
  0xb8   :  { %v6118_v10 = vadd.f32 %v1582_v63, %v1534_v58 }
  0xb9   :  { %v1488_v12 = vadd.f32 %v1487_v9, %v1439_v8  ;;  %1633 = vmatmul.bf16.gmra.mxu0 %v6111_v57  ;;  %8117 = vst [vmem:[#allocation31_spill] sm:$0xff] %v6148_v4  ;;  %v6150_v8 = vpack.c.bf16 %v86_v45, %v79_v44  ;;  %v5116_v45 = vld [vmem:[%s8005_s1 + $0x1e4] sm:$0xf] }
  0xba   :  { %1682 = vmatmul.bf16.gmra.mxu1 %v6113_v5  ;;  %4768 = vmatmul.msk.bf16.gmra.mxu2 %vm1399_vm0, %v6115_v6 }
  0xbb   :  { %1780 = vmatmul.bf16.gmra.mxu3 %v5677_v52  ;;  %8118 = vst [vmem:[#allocation32_spill] sm:$0xff] %v6150_v8 }
  0xbd   :  { %v1536_v15 = vpop.f32.mrf.mxu2 }
  0xbe   :  { %v1537_v16 = vadd.f32 %v1536_v15, %v1488_v12  ;;  %v1585_v17 = vpop.f32.mrf.mxu3  ;;  %v1440_v19 = vpop.f32.mrf.mxu0 }
  0xbf   :  { %v1441_v20 = vadd.f32 %v1440_v19, %v6067_v7  ;;  %v1489_v21 = vpop.f32.mrf.mxu1  ;;  %v4483_v19 = vld [vmem:[%s8005_s1 + $0x3f0] sm:$0xf0] }
  0xc0   :  { %v6126_v32 = vadd.f32 %v1585_v17, %v1537_v16  ;;  %v5180_v17 = vld [vmem:[%s8005_s1 + $0x3e4] sm:$0xf] }
  0xc1   :  { %v1490_v33 = vadd.f32 %v1489_v21, %v1441_v20  ;;  %v4486_v20 = vor.u32 %v5180_v17, %v4483_v19  ;;  %v91_v17 = vld [vmem:[%s8004_s0 + $0x170] sm:$0xff]  ;;  %v98_v19 = vld [vmem:[%s8004_s0 + $0x1a8] sm:$0xff] }
  0xc3   :  { %1914 = vmatpush.bf16.msra.mxu2 %v4486_v20  ;;  %v92_v20 = vld [vmem:[%s8004_s0 + $0x178] sm:$0xff] }
  0xc5   :  { %v1538_v46 = vpop.f32.mrf.mxu2 }
  0xc6   :  { %v1539_v48 = vadd.f32 %v1538_v46, %v1490_v33  ;;  %v1587_v58 = vpop.f32.mrf.mxu3  ;;  %v1443_v63 = vpop.f32.mrf.mxu0  ;;  %v4227_v46 = vld [vmem:[%s8005_s1 + $0x1f0] sm:$0xf0] }
  0xc7   :  { %v1444_v9 = vadd.f32 %v1443_v63, %v6067_v7  ;;  %v1492_v12 = vpop.f32.mrf.mxu1  ;;  %v4230_v63 = vor.u32 %v5116_v45, %v4227_v46  ;;  %v6205_v45 = vpack.c.bf16 %v98_v19, %v91_v17 }
  0xc8   :  { %v6153_v15 = vadd.f32 %v1587_v58, %v1539_v48  ;;  %v5212_v48 = vld [vmem:[%s8005_s1 + $0x4e4] sm:$0xf] }
  0xc9   :  { %v1493_v16 = vadd.f32 %v1492_v12, %v1444_v9  ;;  %1638 = vmatmul.bf16.gmra.mxu0 %v6146_v47  ;;  %v4611_v9 = vld [vmem:[%s8005_s1 + $0x4f0] sm:$0xf0]  ;;  %v5148_v12 = vld [vmem:[%s8005_s1 + $0x2e4] sm:$0xf] }
  0xca   :  { %1687 = vmatmul.bf16.gmra.mxu1 %v6148_v4  ;;  %4769 = vmatmul.msk.bf16.gmra.mxu2 %vm1399_vm0, %v6150_v8 }
  0xcb   :  { %1785 = vmatmul.bf16.gmra.mxu3 %v5713_v0  ;;  %1816 = vmatpush.bf16.msra.mxu0 %v4230_v63  ;;  %v4467_v63 = vld [vmem:[%s8005_s1 + $0x3d0] sm:$0xf0] }
  0xcd   :  { %v1541_v21 = vpop.f32.mrf.mxu2 }
  0xce   :  { %v1542_v33 = vadd.f32 %v1541_v21, %v1493_v16  ;;  %v1590_v34 = vpop.f32.mrf.mxu3  ;;  %v1445_v37 = vpop.f32.mrf.mxu0  ;;  %v4355_v16 = vld [vmem:[%s8005_s1 + $0x2f0] sm:$0xf0]  ;;  %v4614_v21 = vor.u32 %v5212_v48, %v4611_v9 }
  0xcf   :  { %v1446_v38 = vadd.f32 %v1445_v37, %v6067_v7  ;;  %v1494_v39 = vpop.f32.mrf.mxu1  ;;  %v93_v37 = vld [vmem:[%s8004_s0 + $0x180] sm:$0xff] }
  0xd0   :  { %v6167_v44 = vadd.f32 %v1590_v34, %v1542_v33  ;;  %v4358_v33 = vor.u32 %v5148_v12, %v4355_v16  ;;  %v99_v34 = vld [vmem:[%s8004_s0 + $0x1b0] sm:$0xff]  ;;  %1963 = vmatpush.bf16.msra.mxu3 %v4614_v21 }
  0xd1   :  { %v1495_v58 = vadd.f32 %v1494_v39, %v1446_v38  ;;  %v100_v38 = vld [vmem:[%s8004_s0 + $0x1b8] sm:$0xff]  ;;  %v6207_v12 = vpack.c.bf16 %v99_v34, %v92_v20 }
  0xd2   :  { %1865 = vmatpush.bf16.msra.mxu1 %v4358_v33  ;;  %v6209_v16 = vpack.c.bf16 %v100_v38, %v93_v37  ;;  %v5112_v37 = vld [vmem:[%s8005_s1 + $0x1c4] sm:$0xf]  ;;  %v4211_v38 = vld [vmem:[%s8005_s1 + $0x1d0] sm:$0xf0] }
  0xd3   :  { %8119 = vst [vmem:[#allocation33_spill] sm:$0xff] %v6207_v12 }
  0xd4   :  { %8120 = vst [vmem:[#allocation34_spill] sm:$0xff] %v6209_v16 }
  0xd5   :  { %v1543_v39 = vpop.f32.mrf.mxu2 }
  0xd6   :  { %v1544_v46 = vadd.f32 %v1543_v39, %v1495_v58  ;;  %v1592_v48 = vpop.f32.mrf.mxu3  ;;  %v1448_v9 = vpop.f32.mrf.mxu0  ;;  %v5176_v58 = vld [vmem:[%s8005_s1 + $0x3c4] sm:$0xf] }
  0xd7   :  { %v1449_v0 = vadd.f32 %v1448_v9, %v6067_v7  ;;  %v1497_v8 = vpop.f32.mrf.mxu1  ;;  %v4470_v17 = vor.u32 %v5176_v58, %v4467_v63  ;;  %v5144_v9 = vld [vmem:[%s8005_s1 + $0x2c4] sm:$0xf]  ;;  %v4339_v58 = vld [vmem:[%s8005_s1 + $0x2d0] sm:$0xf0] }
  0xd8   :  { %v6212_v4 = vadd.f32 %v1592_v48, %v1544_v46  ;;  %v4214_v46 = vor.u32 %v5112_v37, %v4211_v38  ;;  %v4595_v48 = vld [vmem:[%s8005_s1 + $0x4d0] sm:$0xf0]  ;;  %v105_v63 = vld [vmem:[%s8004_s0 + $0x1e0] sm:$0xff] }
  0xd9   :  { %v1498_v52 = vadd.f32 %v1497_v8, %v1449_v0  ;;  %1643 = vmatmul.bf16.gmra.mxu0 %v6205_v45  ;;  %1915 = vmatpush.bf16.msra.mxu2 %v4470_v17  ;;  %v112_v17 = vld [vmem:[%s8004_s0 + $0x218] sm:$0xff] }
  0xda   :  { %1692 = vmatmul.bf16.gmra.mxu1 %v6207_v12  ;;  %4770 = vmatmul.msk.bf16.gmra.mxu2 %vm1399_vm0, %v6209_v16  ;;  %v6264_v38 = vpack.c.bf16 %v112_v17, %v105_v63 }
  0xdb   :  { %1790 = vmatmul.bf16.gmra.mxu3 %v5773_v24  ;;  %1817 = vmatpush.bf16.msra.mxu0 %v4214_v46  ;;  %v4451_v46 = vld [vmem:[%s8005_s1 + $0x3b0] sm:$0xf0] }
  0xdc   :  { %8121 = vst [vmem:[#allocation35_spill] sm:$0xff] %v6264_v38 }
  0xdd   :  { %v1546_v19 = vpop.f32.mrf.mxu2 }
  0xde   :  { %v1547_v0 = vadd.f32 %v1546_v19, %v1498_v52  ;;  %v1595_v8 = vpop.f32.mrf.mxu3  ;;  %v1450_v20 = vpop.f32.mrf.mxu0  ;;  %v5208_v52 = vld [vmem:[%s8005_s1 + $0x4c4] sm:$0xf]  ;;  %v106_v19 = vld [vmem:[%s8004_s0 + $0x1e8] sm:$0xff] }
  0xdf   :  { %v1451_v21 = vadd.f32 %v1450_v20, %v6067_v7  ;;  %v1499_v33 = vpop.f32.mrf.mxu1  ;;  %v113_v20 = vld [vmem:[%s8004_s0 + $0x220] sm:$0xff] }
  0xe0   :  { %v6226_v34 = vadd.f32 %v1595_v8, %v1547_v0  ;;  %v4598_v0 = vor.u32 %v5208_v52, %v4595_v48  ;;  %v4342_v8 = vor.u32 %v5144_v9, %v4339_v58  ;;  %v6266_v58 = vpack.c.bf16 %v113_v20, %v106_v19 }
  0xe1   :  { %v1500_v39 = vadd.f32 %v1499_v33, %v1451_v21  ;;  %v107_v21 = vld [vmem:[%s8004_s0 + $0x1f0] sm:$0xff]  ;;  %v114_v33 = vld [vmem:[%s8004_s0 + $0x228] sm:$0xff] }
  0xe2   :  { %1964 = vmatpush.bf16.msra.mxu3 %v4598_v0  ;;  %1866 = vmatpush.bf16.msra.mxu1 %v4342_v8  ;;  %8122 = vst [vmem:[#allocation36_spill] sm:$0xff] %v6266_v58  ;;  %v6268_v24 = vpack.c.bf16 %v114_v33, %v107_v21  ;;  %v5108_v21 = vld [vmem:[%s8005_s1 + $0x1a4] sm:$0xf]  ;;  %v4195_v33 = vld [vmem:[%s8005_s1 + $0x1b0] sm:$0xf0] }
  0xe4   :  { %8123 = vst [vmem:[#allocation37_spill] sm:$0xff] %v6268_v24 }
  0xe5   :  { %v1548_v37 = vpop.f32.mrf.mxu2 }
  0xe6   :  { %v1549_v52 = vadd.f32 %v1548_v37, %v1500_v39  ;;  %v1597_v48 = vpop.f32.mrf.mxu3  ;;  %v1453_v9 = vpop.f32.mrf.mxu0  ;;  %v5172_v39 = vld [vmem:[%s8005_s1 + $0x3a4] sm:$0xf] }
  0xe7   :  { %v1454_v16 = vadd.f32 %v1453_v9, %v6067_v7  ;;  %v1502_v12 = vpop.f32.mrf.mxu1  ;;  %v4454_v63 = vor.u32 %v5172_v39, %v4451_v46  ;;  %v5140_v9 = vld [vmem:[%s8005_s1 + $0x2a4] sm:$0xf]  ;;  %v4323_v39 = vld [vmem:[%s8005_s1 + $0x2b0] sm:$0xf0] }
  0xe8   :  { %v6271_v6 = vadd.f32 %v1597_v48, %v1549_v52  ;;  %v4198_v52 = vor.u32 %v5108_v21, %v4195_v33  ;;  %v4579_v48 = vld [vmem:[%s8005_s1 + $0x4b0] sm:$0xf0] }
  0xe9   :  { %v1503_v5 = vadd.f32 %v1502_v12, %v1454_v16  ;;  %1648 = vmatmul.bf16.gmra.mxu0 %v6264_v38  ;;  %1916 = vmatpush.bf16.msra.mxu2 %v4454_v63  ;;  %v119_v46 = vld [vmem:[%s8004_s0 + $0x250] sm:$0xff]  ;;  %v126_v63 = vld [vmem:[%s8004_s0 + $0x288] sm:$0xff] }
  0xea   :  { %1697 = vmatmul.bf16.gmra.mxu1 %v6266_v58  ;;  %4771 = vmatmul.msk.bf16.gmra.mxu2 %vm1399_vm0, %v6268_v24  ;;  %v6323_v33 = vpack.c.bf16 %v126_v63, %v119_v46  ;;  %v4307_v63 = vld [vmem:[%s8005_s1 + $0x290] sm:$0xf0]  ;;  %v5168_v24 = vld [vmem:[%s8005_s1 + $0x384] sm:$0xf] }
  0xeb   :  { %1795 = vmatmul.bf16.gmra.mxu3 %v5827_v49  ;;  %1818 = vmatpush.bf16.msra.mxu0 %v4198_v52  ;;  %v4435_v58 = vld [vmem:[%s8005_s1 + $0x390] sm:$0xf0] }
  0xec   :  { %8124 = vst [vmem:[#allocation38_spill] sm:$0xff] %v6323_v33 }
  0xed   :  { %v1551_v17 = vpop.f32.mrf.mxu2 }
  0xee   :  { %v1552_v12 = vadd.f32 %v1551_v17, %v1503_v5  ;;  %v1600_v16 = vpop.f32.mrf.mxu3  ;;  %v1455_v19 = vpop.f32.mrf.mxu0  ;;  %v5204_v5 = vld [vmem:[%s8005_s1 + $0x4a4] sm:$0xf]  ;;  %v120_v17 = vld [vmem:[%s8004_s0 + $0x258] sm:$0xff] }
  0xef   :  { %v1456_v0 = vadd.f32 %v1455_v19, %v6067_v7  ;;  %v1504_v8 = vpop.f32.mrf.mxu1  ;;  %v127_v19 = vld [vmem:[%s8004_s0 + $0x290] sm:$0xff] }
  0xf0   :  { %v6285_v20 = vadd.f32 %v1600_v16, %v1552_v12  ;;  %v4582_v12 = vor.u32 %v5204_v5, %v4579_v48  ;;  %v4326_v16 = vor.u32 %v5140_v9, %v4323_v39  ;;  %v5104_v5 = vld [vmem:[%s8005_s1 + $0x184] sm:$0xf]  ;;  %v4179_v48 = vld [vmem:[%s8005_s1 + $0x190] sm:$0xf0] }
  0xf1   :  { %v1505_v37 = vadd.f32 %v1504_v8, %v1456_v0  ;;  %v121_v0 = vld [vmem:[%s8004_s0 + $0x260] sm:$0xff]  ;;  %v128_v8 = vld [vmem:[%s8004_s0 + $0x298] sm:$0xff]  ;;  %v4182_v46 = vor.u32 %v5104_v5, %v4179_v48 }
  0xf2   :  { %1965 = vmatpush.bf16.msra.mxu3 %v4582_v12  ;;  %1867 = vmatpush.bf16.msra.mxu1 %v4326_v16  ;;  %v5136_v9 = vld [vmem:[%s8005_s1 + $0x284] sm:$0xf]  ;;  %v6334_v12 = vpack.c.bf16 %v127_v19, %v120_v17  ;;  %v6336_v16 = vpack.c.bf16 %v128_v8, %v121_v0  ;;  %v4438_v19 = vor.u32 %v5168_v24, %v4435_v58  ;;  %v4563_v8 = vld [vmem:[%s8005_s1 + $0x490] sm:$0xf0] }
  0xf3   :  { %v4310_v17 = vor.u32 %v5136_v9, %v4307_v63  ;;  %v5200_v0 = vld [vmem:[%s8005_s1 + $0x484] sm:$0xf]  ;;  %1819 = vmatpush.bf16.msra.mxu0 %v4182_v46  ;;  %v4419_v46 = vld [vmem:[%s8005_s1 + $0x370] sm:$0xf0] }
  0xf4   :  { %8125 = vst [vmem:[#allocation39_spill] sm:$0xff] %v6334_v12  ;;  %v4566_v48 = vor.u32 %v5200_v0, %v4563_v8  ;;  %v5100_v24 = vld [vmem:[%s8005_s1 + $0x164] sm:$0xf]  ;;  %1917 = vmatpush.bf16.msra.mxu2 %v4438_v19 }
  0xf5   :  { %v1553_v21 = vpop.f32.mrf.mxu2  ;;  %8126 = vst [vmem:[#allocation40_spill] sm:$0xff] %v6336_v16  ;;  %v5132_v58 = vld [vmem:[%s8005_s1 + $0x264] sm:$0xf] }
  0xf6   :  { %v1554_v39 = vadd.f32 %v1553_v21, %v1505_v37  ;;  %v1602_v49 = vpop.f32.mrf.mxu3  ;;  %v1458_v52 = vpop.f32.mrf.mxu0  ;;  %1868 = vmatpush.bf16.msra.mxu1 %v4310_v17  ;;  %1966 = vmatpush.bf16.msra.mxu3 %v4566_v48  ;;  %v4547_v17 = vld [vmem:[%s8005_s1 + $0x470] sm:$0xf0]  ;;  %v5096_v8 = vld [vmem:[%s8005_s1 + $0x144] sm:$0xf] }
  0xf7   :  { %v1459_v37 = vadd.f32 %v1458_v52, %v6067_v7  ;;  %v1507_v21 = vpop.f32.mrf.mxu1  ;;  %v5164_v52 = vld [vmem:[%s8005_s1 + $0x364] sm:$0xf]  ;;  %v4147_v48 = vld [vmem:[%s8005_s1 + $0x150] sm:$0xf0] }
  0xf8   :  { %v6354_v5 = vadd.f32 %v1602_v49, %v1554_v39  ;;  %v4163_v49 = vld [vmem:[%s8005_s1 + $0x170] sm:$0xf0] }
  0xf9   :  { %v1508_v40 = vadd.f32 %v1507_v21, %v1459_v37  ;;  %1653 = vmatmul.bf16.gmra.mxu0 %v6323_v33  ;;  %v4166_v9 = vor.u32 %v5100_v24, %v4163_v49  ;;  %v4291_v39 = vld [vmem:[%s8005_s1 + $0x270] sm:$0xf0]  ;;  %v4422_v37 = vor.u32 %v5164_v52, %v4419_v46  ;;  %v5196_v21 = vld [vmem:[%s8005_s1 + $0x464] sm:$0xf]  ;;  %v4150_v52 = vor.u32 %v5096_v8, %v4147_v48 }
  0xfa   :  { %1702 = vmatmul.bf16.gmra.mxu1 %v6334_v12  ;;  %4772 = vmatmul.msk.bf16.gmra.mxu2 %vm1399_vm0, %v6336_v16  ;;  %v4294_v63 = vor.u32 %v5132_v58, %v4291_v39  ;;  %v4550_v0 = vor.u32 %v5196_v21, %v4547_v17  ;;  %v5128_v24 = vld [vmem:[%s8005_s1 + $0x244] sm:$0xf]  ;;  %v4403_v21 = vld [vmem:[%s8005_s1 + $0x350] sm:$0xf0] }
  0xfb   :  { %1800 = vmatmul.bf16.gmra.mxu3 %v5899_v23  ;;  %1820 = vmatpush.bf16.msra.mxu0 %v4166_v9  ;;  %v4275_v9 = vld [vmem:[%s8005_s1 + $0x250] sm:$0xf0]  ;;  %v5160_v46 = vld [vmem:[%s8005_s1 + $0x344] sm:$0xf] }
  0xfc   :  { %1869 = vmatpush.bf16.msra.mxu1 %v4294_v63  ;;  %1918 = vmatpush.bf16.msra.mxu2 %v4422_v37  ;;  %v5192_v63 = vld [vmem:[%s8005_s1 + $0x444] sm:$0xf]  ;;  %v4531_v8 = vld [vmem:[%s8005_s1 + $0x450] sm:$0xf0]  ;;  %v140_v37 = vld [vmem:[%s8004_s0 + $0x2f8] sm:$0xff] }
  0xfd   :  { %v1556_v19 = vpop.f32.mrf.mxu2  ;;  %v133_v16 = vld [vmem:[%s8004_s0 + $0x2c0] sm:$0xff]  ;;  %1967 = vmatpush.bf16.msra.mxu3 %v4550_v0 }
  0xfe   :  { %v1557_v49 = vadd.f32 %v1556_v19, %v1508_v40  ;;  %v1605_v58 = vpop.f32.mrf.mxu3  ;;  %v1460_v39 = vpop.f32.mrf.mxu0  ;;  %v4278_v40 = vor.u32 %v5128_v24, %v4275_v9  ;;  %v4406_v19 = vor.u32 %v5160_v46, %v4403_v21  ;;  %v4534_v24 = vor.u32 %v5192_v63, %v4531_v8  ;;  %v134_v9 = vld [vmem:[%s8004_s0 + $0x2c8] sm:$0xff]  ;;  %v5092_v46 = vld [vmem:[%s8005_s1 + $0x124] sm:$0xf]  ;;  %v4387_v63 = vld [vmem:[%s8005_s1 + $0x330] sm:$0xf0] }
  0xff   :  { %v1461_v17 = vadd.f32 %v1460_v39, %v6067_v7  ;;  %v1509_v23 = vpop.f32.mrf.mxu1  ;;  %1821 = vmatpush.bf16.msra.mxu0 %v4150_v52  ;;  %v5124_v0 = vld [vmem:[%s8005_s1 + $0x224] sm:$0xf]  ;;  %v142_v8 = vld [vmem:[%s8004_s0 + $0x308] sm:$0xff]  ;;  %v6454_v62 = vpack.c.bf16 %v140_v37, %v133_v16  ;;  %v4243_v37 = vld [vmem:[%s8005_s1 + $0x210] sm:$0xf0] }
 0x100   :  { %v6410_v48 = vadd.f32 %v1605_v58, %v1557_v49  ;;  %v141_v49 = vld [vmem:[%s8004_s0 + $0x300] sm:$0xff]  ;;  %v135_v58 = vld [vmem:[%s8004_s0 + $0x2d0] sm:$0xff]  ;;  %1870 = vmatpush.bf16.msra.mxu1 %v4278_v40  ;;  %1919 = vmatpush.bf16.msra.mxu2 %v4406_v19 }
 0x101   :  { %v1510_v39 = vadd.f32 %v1509_v23, %v1461_v17  ;;  %v4131_v23 = vld [vmem:[%s8005_s1 + $0x130] sm:$0xf0]  ;;  %v5156_v52 = vld [vmem:[%s8005_s1 + $0x324] sm:$0xf]  ;;  %1968 = vmatpush.bf16.msra.mxu3 %v4534_v24  ;;  %8127 = vst [vmem:[#allocation41_spill] sm:$0xff] %v6454_v62  ;;  %v6467_v16 = vpack.c.bf16 %v142_v8, %v135_v58 }
 0x102   :  { %v4134_v21 = vor.u32 %v5092_v46, %v4131_v23  ;;  %v4259_v17 = vld [vmem:[%s8005_s1 + $0x230] sm:$0xf0]  ;;  %v4390_v40 = vor.u32 %v5156_v52, %v4387_v63  ;;  %v5188_v46 = vld [vmem:[%s8005_s1 + $0x424] sm:$0xf] }
 0x103   :  { %v4262_v12 = vor.u32 %v5124_v0, %v4259_v17  ;;  %v4515_v23 = vld [vmem:[%s8005_s1 + $0x430] sm:$0xf0]  ;;  %v5088_v19 = vld [vmem:[%s8005_s1 + $0x104] sm:$0xf] }
 0x104   :  { %v4518_v14 = vor.u32 %v5188_v46, %v4515_v23  ;;  %1822 = vmatpush.bf16.msra.mxu0 %v4134_v21  ;;  %v4115_v0 = vld [vmem:[%s8005_s1 + $0x110] sm:$0xf0]  ;;  %v5120_v17 = vld [vmem:[%s8005_s1 + $0x204] sm:$0xf]  ;;  %v6465_v46 = vpack.c.bf16 %v141_v49, %v134_v9  ;;  %1920 = vmatpush.bf16.msra.mxu2 %v4390_v40 }
 0x105   :  { %v1558_v13 = vpop.f32.mrf.mxu2  ;;  %1871 = vmatpush.bf16.msra.mxu1 %v4262_v12  ;;  %v5152_v21 = vld [vmem:[%s8005_s1 + $0x304] sm:$0xf]  ;;  %v4371_v23 = vld [vmem:[%s8005_s1 + $0x310] sm:$0xf0]  ;;  %v4118_v9 = vor.u32 %v5088_v19, %v4115_v0  ;;  %v4246_v8 = vor.u32 %v5120_v17, %v4243_v37 }
 0x106   :  { %v1559_v52 = vadd.f32 %v1558_v13, %v1510_v39  ;;  %v1607_v63 = vpop.f32.mrf.mxu3  ;;  %v1463_v24 = vpop.f32.mrf.mxu0  ;;  %v5184_v12 = vld [vmem:[%s8005_s1 + $0x404] sm:$0xf]  ;;  %v4499_v49 = vld [vmem:[%s8005_s1 + $0x410] sm:$0xf0]  ;;  %1969 = vmatpush.bf16.msra.mxu3 %v4518_v14  ;;  %v4374_v61 = vor.u32 %v5152_v21, %v4371_v23  ;;  %v154_v23 = vld [vmem:[%s8004_s0 + $0x368] sm:$0xff] }
 0x107   :  { %v1464_v13 = vadd.f32 %v1463_v24, %v6067_v7  ;;  %v1512_v39 = vpop.f32.mrf.mxu1  ;;  %v4502_v24 = vor.u32 %v5184_v12, %v4499_v49  ;;  %v147_v21 = vld [vmem:[%s8004_s0 + $0x330] sm:$0xff] }
 0x108   :  { %v6485_v58 = vadd.f32 %v1607_v63, %v1559_v52  ;;  %1823 = vmatpush.bf16.msra.mxu0 %v4118_v9  ;;  %1921 = vmatpush.bf16.msra.mxu2 %v4374_v61  ;;  %v155_v61 = vld [vmem:[%s8004_s0 + $0x370] sm:$0xff]  ;;  %v6513_v12 = vpack.c.bf16 %v154_v23, %v147_v21 }
 0x109   :  { %v1513_v60 = vadd.f32 %v1512_v39, %v1464_v13  ;;  %1658 = vmatmul.bf16.gmra.mxu0 %v6454_v62  ;;  %1872 = vmatpush.bf16.msra.mxu1 %v4246_v8  ;;  %v149_v13 = vld [vmem:[%s8004_s0 + $0x340] sm:$0xff]  ;;  %v156_v39 = vld [vmem:[%s8004_s0 + $0x378] sm:$0xff] }
 0x10a   :  { %1707 = vmatmul.bf16.gmra.mxu1 %v6465_v46  ;;  %4773 = vmatmul.msk.bf16.gmra.mxu2 %vm1399_vm0, %v6467_v16  ;;  %8128 = vst [vmem:[#allocation42_spill] sm:$0xff] %v6513_v12 }
 0x10b   :  { %1805 = vmatmul.bf16.gmra.mxu3 %v5989_v18 }
 0x10c   :  { %1970 = vmatpush.bf16.msra.mxu3 %v4502_v24 }
 0x10d   :  { %v1561_v40 = vpop.f32.mrf.mxu2 }
 0x10e   :  { %v1562_v19 = vadd.f32 %v1561_v40, %v1513_v60  ;;  %v1610_v14 = vpop.f32.mrf.mxu3  ;;  %v1465_v0 = vpop.f32.mrf.mxu0  ;;  %v148_v60 = vld [vmem:[%s8004_s0 + $0x338] sm:$0xff] }
 0x10f   :  { %v1466_v17 = vadd.f32 %v1465_v0, %v6067_v7  ;;  %v1514_v52 = vpop.f32.mrf.mxu1  ;;  %v6515_v40 = vpack.c.bf16 %v155_v61, %v148_v60 }
 0x110   :  { %v6493_v63 = vadd.f32 %v1610_v14, %v1562_v19  ;;  %v6517_v19 = vpack.c.bf16 %v156_v39, %v149_v13 }
 0x111   :  { %v1515_v37 = vadd.f32 %v1514_v52, %v1466_v17  ;;  %8129 = vst [vmem:[#allocation43_spill] sm:$0xff] %v6515_v40 }
 0x112   :  { %8130 = vst [vmem:[#allocation44_spill] sm:$0xff] %v6517_v19 }
 0x115   :  { %v1563_v9 = vpop.f32.mrf.mxu2 }
 0x116   :  { %v1564_v49 = vadd.f32 %v1563_v9, %v1515_v37  ;;  %v1612_v8 = vpop.f32.mrf.mxu3  ;;  %v1468_v24 = vpop.f32.mrf.mxu0 }
 0x117   :  { %v1469_v14 = vadd.f32 %v1468_v24, %v6067_v7  ;;  %v1517_v0 = vpop.f32.mrf.mxu1 }
 0x118   :  { %v6520_v17 = vadd.f32 %v1612_v8, %v1564_v49 }
 0x119   :  { %v1518_v52 = vadd.f32 %v1517_v0, %v1469_v14  ;;  %1663 = vmatmul.bf16.gmra.mxu0 %v6513_v12 }
 0x11a   :  { %1712 = vmatmul.bf16.gmra.mxu1 %v6515_v40  ;;  %4774 = vmatmul.msk.bf16.gmra.mxu2 %vm1399_vm0, %v6517_v19 }
 0x11b   :  { %1810 = vmatmul.bf16.gmra.mxu3 %v6043_v59 }
 0x11d   :  { %v1566_v37 = vpop.f32.mrf.mxu2 }
 0x11e   :  { %v1567_v21 = vadd.f32 %v1566_v37, %v1518_v52  ;;  %v1615_v23 = vpop.f32.mrf.mxu3  ;;  %v1470_v60 = vpop.f32.mrf.mxu0 }
 0x11f   :  { %v1471_v61 = vadd.f32 %v1470_v60, %v6067_v7  ;;  %v1519_v13 = vpop.f32.mrf.mxu1 }
 0x120   :  { %v6528_v39 = vadd.f32 %v1615_v23, %v1567_v21 }
 0x121   :  { %v1520_v9 = vadd.f32 %v1519_v13, %v1471_v61 }
 0x125   :  { %v1568_v49 = vpop.f32.mrf.mxu2 }
 0x126   :  { %v1569_v8 = vadd.f32 %v1568_v49, %v1520_v9  ;;  %v1617_v24 = vpop.f32.mrf.mxu3  ;;  %v1629_v14 = vpop.f32.mrf.mxu0 }
 0x127   :  { %v1630_v0 = vadd.f32 %v1629_v14, %v6091_v36  ;;  %v1678_v40 = vpop.f32.mrf.mxu1 }
 0x128   :  { %v6531_v19 = vadd.f32 %v1617_v24, %v1569_v8 }
 0x129   :  { %v1679_v59 = vadd.f32 %v1678_v40, %v1630_v0  ;;  %1824 = vmatmul.bf16.vlgmr.msra.gmra.mxu0 %v5643_v41 }
 0x12a   :  { %1873 = vmatmul.bf16.vlgmr.msra.gmra.mxu1 %v5645_v42  ;;  %1922 = vmatmul.bf16.vlgmr.msra.gmra.mxu2 %v5647_v43 }
 0x12b   :  { %1971 = vmatmul.bf16.vlgmr.msra.gmra.mxu3 %v6078_v11 }
 0x12d   :  { %v1727_v7 = vpop.f32.mrf.mxu2 }
 0x12e   :  { %v1728_v52 = vadd.f32 %v1727_v7, %v1679_v59  ;;  %v6537_v37 = vpop.f32.mrf.mxu3  ;;  %v1631_v21 = vpop.f32.mrf.mxu0 }
 0x12f   :  { %v1632_v23 = vadd.f32 %v1631_v21, %v6118_v10  ;;  %v1680_v36 = vpop.f32.mrf.mxu1 }
 0x130   :  { %v2860_v13 = vmul.f32 0.01, %v1728_v52  ;;  %vm2796_vm1 = vcmp.gt.f32.partialorder %v1728_v52, 0.0 }
 0x131   :  { %v1681_v60 = vadd.f32 %v1680_v36, %v1632_v23 }
 0x132   :  { %v2924_v0 = vsel %vm2796_vm1, %v1728_v52, %v2860_v13 }
 0x135   :  { %v1729_v61 = vpop.f32.mrf.mxu2 }
 0x136   :  { %v1730_v40 = vadd.f32 %v1729_v61, %v1681_v60  ;;  %v6540_v9 = vpop.f32.mrf.mxu3  ;;  %v1634_v49 = vpop.f32.mrf.mxu0 }
 0x137   :  { %v1635_v8 = vadd.f32 %v1634_v49, %v6126_v32  ;;  %v1683_v24 = vpop.f32.mrf.mxu1 }
 0x138   :  { %vm2800_vm2 = vcmp.gt.f32.partialorder %v1730_v40, 0.0  ;;  %v2864_v14 = vmul.f32 0.01, %v1730_v40 }
 0x139   :  { %v1684_v59 = vadd.f32 %v1683_v24, %v1635_v8  ;;  %1829 = vmatmul.bf16.gmra.mxu0 %v5679_v53 }
 0x13a   :  { %v2928_v7 = vsel %vm2800_vm2, %v1730_v40, %v2864_v14  ;;  %1878 = vmatmul.bf16.gmra.mxu1 %v5681_v54  ;;  %1927 = vmatmul.bf16.gmra.mxu2 %v5683_v55 }
 0x13b   :  { %v6546_v10 = vpack.c.bf16 %v2928_v7, %v2924_v0  ;;  %1976 = vmatmul.bf16.gmra.mxu3 %v6111_v57 }
 0x13d   :  { %8131 = vst [vmem:[#allocation45_spill] sm:$0xff] %v6546_v10  ;;  %v1732_v21 = vpop.f32.mrf.mxu2 }
 0x13e   :  { %v1733_v23 = vadd.f32 %v1732_v21, %v1684_v59  ;;  %v6549_v36 = vpop.f32.mrf.mxu3  ;;  %v1636_v32 = vpop.f32.mrf.mxu0 }
 0x13f   :  { %v1637_v60 = vadd.f32 %v1636_v32, %v6153_v15  ;;  %v1685_v61 = vpop.f32.mrf.mxu1  ;;  %v4105_v32 = vld [vmem:[%s8005_s1 + $0xe8] sm:$0xf] }
 0x140   :  { %v2868_v52 = vmul.f32 0.01, %v1733_v23  ;;  %vm2804_vm3 = vcmp.gt.f32.partialorder %v1733_v23, 0.0 }
 0x141   :  { %v1686_v49 = vadd.f32 %v1685_v61, %v1637_v60 }
 0x142   :  { %v2932_v15 = vsel %vm2804_vm3, %v1733_v23, %v2868_v52 }
 0x145   :  { %v1734_v8 = vpop.f32.mrf.mxu2 }
 0x146   :  { %v1735_v13 = vadd.f32 %v1734_v8, %v1686_v49  ;;  %v6552_v40 = vpop.f32.mrf.mxu3  ;;  %v1639_v24 = vpop.f32.mrf.mxu0 }
 0x147   :  { %v1640_v14 = vadd.f32 %v1639_v24, %v6167_v44  ;;  %v1688_v0 = vpop.f32.mrf.mxu1  ;;  %v5087_v44 = vld [vmem:[%s8005_s1 + $0xf4] sm:$0xf0] }
 0x148   :  { %vm2808_vm4 = vcmp.gt.f32.partialorder %v1735_v13, 0.0  ;;  %v2872_v7 = vmul.f32 0.01, %v1735_v13  ;;  %v4106_v61 = vor.u32 %v5087_v44, %v4105_v32  ;;  %v5248_v32 = vld [vmem:[%s8005_s1 + $0x604] sm:$0xf] }
 0x149   :  { %v1689_v59 = vadd.f32 %v1688_v0, %v1640_v14  ;;  %1834 = vmatmul.bf16.gmra.mxu0 %v5715_v1  ;;  %v4755_v44 = vld [vmem:[%s8005_s1 + $0x610] sm:$0xf0] }
 0x14a   :  { %1883 = vmatmul.bf16.gmra.mxu1 %v5717_v2  ;;  %1932 = vmatmul.bf16.gmra.mxu2 %v5719_v3  ;;  %v2936_v21 = vsel %vm2808_vm4, %v1735_v13, %v2872_v7  ;;  %v5244_v13 = vld [vmem:[%s8005_s1 + $0x5e4] sm:$0xf]  ;;  %v4739_v7 = vld [vmem:[%s8005_s1 + $0x5f0] sm:$0xf0] }
 0x14b   :  { %1981 = vmatmul.bf16.gmra.mxu3 %v6146_v47  ;;  %v6565_v60 = vpack.c.bf16 %v2936_v21, %v2932_v15  ;;  %2110 = vmatpush.bf16.msrb.mxu2 %v4106_v61  ;;  %v5119_v15 = vld [vmem:[%s8005_s1 + $0x1f4] sm:$0xf0]  ;;  %v4742_v21 = vor.u32 %v5244_v13, %v4739_v7  ;;  %v4758_v61 = vor.u32 %v5248_v32, %v4755_v44 }
 0x14d   :  { %8132 = vst [vmem:[#allocation46_spill] sm:$0xff] %v6565_v60  ;;  %v1737_v49 = vpop.f32.mrf.mxu2  ;;  %2012 = vmatpush.bf16.msrb.mxu0 %v4742_v21  ;;  %2068 = vmatpush.bf16.msrb.mxu1 %v4758_v61 }
 0x14e   :  { %v1738_v8 = vadd.f32 %v1737_v49, %v1689_v59  ;;  %v6567_v24 = vpop.f32.mrf.mxu3  ;;  %v1641_v14 = vpop.f32.mrf.mxu0  ;;  %v4233_v59 = vld [vmem:[%s8005_s1 + $0x1e8] sm:$0xf] }
 0x14f   :  { %v1642_v23 = vadd.f32 %v1641_v14, %v6212_v4  ;;  %v1690_v52 = vpop.f32.mrf.mxu1  ;;  %v4234_v4 = vor.u32 %v5119_v15, %v4233_v59 }
 0x150   :  { %v2876_v14 = vmul.f32 0.01, %v1738_v8  ;;  %vm2812_vm5 = vcmp.gt.f32.partialorder %v1738_v8, 0.0 }
 0x151   :  { %v1691_v0 = vadd.f32 %v1690_v52, %v1642_v23  ;;  %2159 = vmatpush.bf16.msrb.mxu3 %v4234_v4 }
 0x152   :  { %v2940_v21 = vsel %vm2812_vm5, %v1738_v8, %v2876_v14 }
 0x155   :  { %v1739_v49 = vpop.f32.mrf.mxu2 }
 0x156   :  { %v1740_v23 = vadd.f32 %v1739_v49, %v1691_v0  ;;  %v6588_v52 = vpop.f32.mrf.mxu3  ;;  %v1644_v60 = vpop.f32.mrf.mxu0  ;;  %v4089_v0 = vld [vmem:[%s8005_s1 + $0xc8] sm:$0xf] }
 0x157   :  { %v1645_v13 = vadd.f32 %v1644_v60, %v6226_v34  ;;  %v1693_v7 = vpop.f32.mrf.mxu1  ;;  %v5083_v34 = vld [vmem:[%s8005_s1 + $0xd4] sm:$0xf0] }
 0x158   :  { %vm2816_vm6 = vcmp.gt.f32.partialorder %v1740_v23, 0.0  ;;  %v2880_v59 = vmul.f32 0.01, %v1740_v23  ;;  %v4090_v32 = vor.u32 %v5083_v34, %v4089_v0 }
 0x159   :  { %v1694_v15 = vadd.f32 %v1693_v7, %v1645_v13  ;;  %1839 = vmatmul.bf16.gmra.mxu0 %v5775_v25 }
 0x15a   :  { %1888 = vmatmul.bf16.gmra.mxu1 %v5777_v26  ;;  %1937 = vmatmul.bf16.gmra.mxu2 %v5779_v27  ;;  %v2944_v4 = vsel %vm2816_vm6, %v1740_v23, %v2880_v59  ;;  %v5240_v23 = vld [vmem:[%s8005_s1 + $0x5c4] sm:$0xf]  ;;  %v4723_v59 = vld [vmem:[%s8005_s1 + $0x5d0] sm:$0xf0] }
 0x15b   :  { %1986 = vmatmul.bf16.gmra.mxu3 %v6205_v45  ;;  %v6601_v60 = vpack.c.bf16 %v2944_v4, %v2940_v21  ;;  %2111 = vmatpush.bf16.msrb.mxu2 %v4090_v32  ;;  %v5115_v21 = vld [vmem:[%s8005_s1 + $0x1d4] sm:$0xf0]  ;;  %v4726_v4 = vor.u32 %v5240_v23, %v4723_v59 }
 0x15d   :  { %8133 = vst [vmem:[#allocation47_spill] sm:$0xff] %v6601_v60  ;;  %v1742_v44 = vpop.f32.mrf.mxu2  ;;  %2013 = vmatpush.bf16.msrb.mxu0 %v4726_v4 }
 0x15e   :  { %v1743_v61 = vadd.f32 %v1742_v44, %v1694_v15  ;;  %v6603_v49 = vpop.f32.mrf.mxu3  ;;  %v1646_v13 = vpop.f32.mrf.mxu0  ;;  %v4217_v15 = vld [vmem:[%s8005_s1 + $0x1c8] sm:$0xf] }
 0x15f   :  { %v1647_v8 = vadd.f32 %v1646_v13, %v6271_v6  ;;  %v1695_v14 = vpop.f32.mrf.mxu1  ;;  %v4218_v6 = vor.u32 %v5115_v21, %v4217_v15 }
 0x160   :  { %v2884_v34 = vmul.f32 0.01, %v1743_v61  ;;  %vm2820_vm7 = vcmp.gt.f32.partialorder %v1743_v61, 0.0 }
 0x161   :  { %v1696_v7 = vadd.f32 %v1695_v14, %v1647_v8  ;;  %2160 = vmatpush.bf16.msrb.mxu3 %v4218_v6 }
 0x162   :  { %v2948_v23 = vsel %vm2820_vm7, %v1743_v61, %v2884_v34  ;;  %v5236_v34 = vld [vmem:[%s8005_s1 + $0x5a4] sm:$0xf] }
 0x165   :  { %v1744_v0 = vpop.f32.mrf.mxu2 }
 0x166   :  { %v1745_v32 = vadd.f32 %v1744_v0, %v1696_v7  ;;  %v6618_v44 = vpop.f32.mrf.mxu3  ;;  %v1649_v13 = vpop.f32.mrf.mxu0  ;;  %v4073_v7 = vld [vmem:[%s8005_s1 + $0xa8] sm:$0xf] }
 0x167   :  { %v1650_v8 = vadd.f32 %v1649_v13, %v6285_v20  ;;  %v1698_v14 = vpop.f32.mrf.mxu1  ;;  %v5079_v20 = vld [vmem:[%s8005_s1 + $0xb4] sm:$0xf0] }
 0x168   :  { %vm2824_vm8 = vcmp.gt.f32.partialorder %v1745_v32, 0.0  ;;  %v2888_v60 = vmul.f32 0.01, %v1745_v32  ;;  %v4074_v21 = vor.u32 %v5079_v20, %v4073_v7  ;;  %v5232_v20 = vld [vmem:[%s8005_s1 + $0x584] sm:$0xf] }
 0x169   :  { %v1699_v10 = vadd.f32 %v1698_v14, %v1650_v8  ;;  %1844 = vmatmul.bf16.gmra.mxu0 %v5829_v50  ;;  %v4707_v8 = vld [vmem:[%s8005_s1 + $0x5b0] sm:$0xf0]  ;;  %v5111_v14 = vld [vmem:[%s8005_s1 + $0x1b4] sm:$0xf0] }
 0x16a   :  { %1893 = vmatmul.bf16.gmra.mxu1 %v5831_v51  ;;  %1942 = vmatmul.bf16.gmra.mxu2 %v5833_v56  ;;  %v2952_v59 = vsel %vm2824_vm8, %v1745_v32, %v2888_v60 }
 0x16b   :  { %1991 = vmatmul.bf16.gmra.mxu3 %v6264_v38  ;;  %v6631_v15 = vpack.c.bf16 %v2952_v59, %v2948_v23  ;;  %2112 = vmatpush.bf16.msrb.mxu2 %v4074_v21  ;;  %v4710_v23 = vor.u32 %v5236_v34, %v4707_v8  ;;  %v4691_v21 = vld [vmem:[%s8005_s1 + $0x590] sm:$0xf0]  ;;  %v5075_v8 = vld [vmem:[%s8005_s1 + $0x94] sm:$0xf0] }
 0x16c   :  { %v4694_v34 = vor.u32 %v5232_v20, %v4691_v21  ;;  %v4675_v38 = vld [vmem:[%s8005_s1 + $0x570] sm:$0xf0] }
 0x16d   :  { %8134 = vst [vmem:[#allocation48_spill] sm:$0xff] %v6631_v15  ;;  %v1747_v4 = vpop.f32.mrf.mxu2  ;;  %2014 = vmatpush.bf16.msrb.mxu0 %v4710_v23  ;;  %v5228_v15 = vld [vmem:[%s8005_s1 + $0x564] sm:$0xf] }
 0x16e   :  { %v1748_v6 = vadd.f32 %v1747_v4, %v1699_v10  ;;  %v6633_v0 = vpop.f32.mrf.mxu3  ;;  %v1651_v13 = vpop.f32.mrf.mxu0  ;;  %v4201_v10 = vld [vmem:[%s8005_s1 + $0x1a8] sm:$0xf] }
 0x16f   :  { %v1652_v60 = vadd.f32 %v1651_v13, %v6354_v5  ;;  %v1700_v61 = vpop.f32.mrf.mxu1  ;;  %v4202_v5 = vor.u32 %v5111_v14, %v4201_v10  ;;  %v4057_v4 = vld [vmem:[%s8005_s1 + $0x88] sm:$0xf]  ;;  %v5107_v14 = vld [vmem:[%s8005_s1 + $0x194] sm:$0xf0] }
 0x170   :  { %v2892_v59 = vmul.f32 0.01, %v1748_v6  ;;  %v4185_v10 = vld [vmem:[%s8005_s1 + $0x188] sm:$0xf]  ;;  %vm2828_vm9 = vcmp.gt.f32.partialorder %v1748_v6, 0.0 }
 0x171   :  { %v1701_v32 = vadd.f32 %v1700_v61, %v1652_v60  ;;  %2161 = vmatpush.bf16.msrb.mxu3 %v4202_v5  ;;  %v4058_v5 = vor.u32 %v5075_v8, %v4057_v4  ;;  %2015 = vmatpush.bf16.msrb.mxu0 %v4694_v34  ;;  %v4186_v20 = vor.u32 %v5107_v14, %v4185_v10  ;;  %v4169_v34 = vld [vmem:[%s8005_s1 + $0x168] sm:$0xf]  ;;  %v5103_v8 = vld [vmem:[%s8005_s1 + $0x174] sm:$0xf0] }
 0x172   :  { %v4678_v4 = vor.u32 %v5228_v15, %v4675_v38  ;;  %v2956_v10 = vsel %vm2828_vm9, %v1748_v6, %v2892_v59  ;;  %v4170_v15 = vor.u32 %v5103_v8, %v4169_v34  ;;  %v4659_v6 = vld [vmem:[%s8005_s1 + $0x550] sm:$0xf0]  ;;  %v4025_v59 = vld [vmem:[%s8005_s1 + $0x48] sm:$0xf]  ;;  %v5099_v34 = vld [vmem:[%s8005_s1 + $0x154] sm:$0xf0] }
 0x173   :  { %2113 = vmatpush.bf16.msrb.mxu2 %v4058_v5  ;;  %v5224_v5 = vld [vmem:[%s8005_s1 + $0x544] sm:$0xf] }
 0x175   :  { %v1749_v7 = vpop.f32.mrf.mxu2  ;;  %2162 = vmatpush.bf16.msrb.mxu3 %v4186_v20  ;;  %2016 = vmatpush.bf16.msrb.mxu0 %v4678_v4  ;;  %v5067_v4 = vld [vmem:[%s8005_s1 + $0x54] sm:$0xf0] }
 0x176   :  { %v1750_v13 = vadd.f32 %v1749_v7, %v1701_v32  ;;  %v6657_v60 = vpop.f32.mrf.mxu3  ;;  %v1654_v61 = vpop.f32.mrf.mxu0 }
 0x177   :  { %v1655_v23 = vadd.f32 %v1654_v61, %v6410_v48  ;;  %v1703_v32 = vpop.f32.mrf.mxu1  ;;  %v4041_v48 = vld [vmem:[%s8005_s1 + $0x68] sm:$0xf]  ;;  %v5071_v61 = vld [vmem:[%s8005_s1 + $0x74] sm:$0xf0] }
 0x178   :  { %vm2832_vm10 = vcmp.gt.f32.partialorder %v1750_v13, 0.0  ;;  %v2896_v7 = vmul.f32 0.01, %v1750_v13 }
 0x179   :  { %v1704_v21 = vadd.f32 %v1703_v32, %v1655_v23  ;;  %1849 = vmatmul.bf16.gmra.mxu0 %v5901_v28  ;;  %v4042_v23 = vor.u32 %v5071_v61, %v4041_v48  ;;  %v4662_v48 = vor.u32 %v5224_v5, %v4659_v6  ;;  %v4153_v61 = vld [vmem:[%s8005_s1 + $0x148] sm:$0xf]  ;;  %2163 = vmatpush.bf16.msrb.mxu3 %v4170_v15  ;;  %v4643_v5 = vld [vmem:[%s8005_s1 + $0x530] sm:$0xf0]  ;;  %v5063_v15 = vld [vmem:[%s8005_s1 + $0x34] sm:$0xf0] }
 0x17a   :  { %1898 = vmatmul.bf16.gmra.mxu1 %v5903_v29  ;;  %1947 = vmatmul.bf16.gmra.mxu2 %v5905_v30  ;;  %v2960_v14 = vsel %vm2832_vm10, %v1750_v13, %v2896_v7  ;;  %v4009_v6 = vld [vmem:[%s8005_s1 + $0x28] sm:$0xf] }
 0x17b   :  { %1996 = vmatmul.bf16.gmra.mxu3 %v6323_v33  ;;  %v6693_v38 = vpack.c.bf16 %v2960_v14, %v2956_v10  ;;  %2114 = vmatpush.bf16.msrb.mxu2 %v4042_v23  ;;  %v4154_v14 = vor.u32 %v5099_v34, %v4153_v61 }
 0x17c   :  { %2017 = vmatpush.bf16.msrb.mxu0 %v4662_v48  ;;  %v4010_v48 = vor.u32 %v5063_v15, %v4009_v6  ;;  %v4121_v15 = vld [vmem:[%s8005_s1 + $0x108] sm:$0xf] }
 0x17d   :  { %8135 = vst [vmem:[#allocation49_spill] sm:$0xff] %v6693_v38  ;;  %v1752_v32 = vpop.f32.mrf.mxu2  ;;  %2164 = vmatpush.bf16.msrb.mxu3 %v4154_v14 }
 0x17e   :  { %v1753_v13 = vadd.f32 %v1752_v32, %v1704_v21  ;;  %v6704_v7 = vpop.f32.mrf.mxu3  ;;  %v1656_v20 = vpop.f32.mrf.mxu0  ;;  %v4026_v21 = vor.u32 %v5067_v4, %v4025_v59  ;;  %v5220_v32 = vld [vmem:[%s8005_s1 + $0x524] sm:$0xf]  ;;  %v4137_v59 = vld [vmem:[%s8005_s1 + $0x128] sm:$0xf] }
 0x17f   :  { %v1657_v8 = vadd.f32 %v1656_v20, %v6485_v58  ;;  %v1705_v10 = vpop.f32.mrf.mxu1  ;;  %v4646_v58 = vor.u32 %v5220_v32, %v4643_v5  ;;  %v5095_v20 = vld [vmem:[%s8005_s1 + $0x134] sm:$0xf0] }
 0x180   :  { %2115 = vmatpush.bf16.msrb.mxu2 %v4026_v21  ;;  %v2900_v4 = vmul.f32 0.01, %v1753_v13  ;;  %v4138_v61 = vor.u32 %v5095_v20, %v4137_v59  ;;  %v3993_v21 = vld [vmem:[%s8005_s1 + $0x8] sm:$0xf]  ;;  %v5091_v59 = vld [vmem:[%s8005_s1 + $0x114] sm:$0xf0] }
 0x181   :  { %v1706_v23 = vadd.f32 %v1705_v10, %v1657_v8  ;;  %2018 = vmatpush.bf16.msrb.mxu0 %v4646_v58  ;;  %v5216_v8 = vld [vmem:[%s8005_s1 + $0x504] sm:$0xf]  ;;  %v4627_v10 = vld [vmem:[%s8005_s1 + $0x510] sm:$0xf0]  ;;  %v5059_v58 = vld [vmem:[%s8005_s1 + $0x14] sm:$0xf0] }
 0x182   :  { %v4630_v6 = vor.u32 %v5216_v8, %v4627_v10  ;;  %vm2836_vm11 = vcmp.gt.f32.partialorder %v1753_v13, 0.0  ;;  %2165 = vmatpush.bf16.msrb.mxu3 %v4138_v61  ;;  %v4122_v8 = vor.u32 %v5091_v59, %v4121_v15 }
 0x183   :  { %v2964_v38 = vsel %vm2836_vm11, %v1753_v13, %v2900_v4 }
 0x184   :  { %2116 = vmatpush.bf16.msrb.mxu2 %v4010_v48  ;;  %v3994_v48 = vor.u32 %v5059_v58, %v3993_v21 }
 0x185   :  { %v1754_v34 = vpop.f32.mrf.mxu2  ;;  %2019 = vmatpush.bf16.msrb.mxu0 %v4630_v6 }
 0x186   :  { %v1755_v32 = vadd.f32 %v1754_v34, %v1706_v23  ;;  %v6743_v5 = vpop.f32.mrf.mxu3  ;;  %v1659_v14 = vpop.f32.mrf.mxu0  ;;  %2166 = vmatpush.bf16.msrb.mxu3 %v4122_v8  ;;  %v8138_v8 = vld [vmem:[#allocation25_spill] sm:$0xff] }
 0x187   :  { %v1660_v20 = vadd.f32 %v1659_v14, %v6493_v63  ;;  %v1708_v23 = vpop.f32.mrf.mxu1 }
 0x188   :  { %vm2840_vm12 = vcmp.gt.f32.partialorder %v1755_v32, 0.0  ;;  %v2904_v34 = vmul.f32 0.01, %v1755_v32  ;;  %2117 = vmatpush.bf16.msrb.mxu2 %v3994_v48 }
 0x189   :  { %v1709_v10 = vadd.f32 %v1708_v23, %v1660_v20  ;;  %1854 = vmatmul.bf16.gmra.mxu0 %v6000_v22 }
 0x18a   :  { %1903 = vmatmul.bf16.gmra.mxu1 %v6002_v31  ;;  %1952 = vmatmul.bf16.gmra.mxu2 %v6013_v35  ;;  %v2968_v33 = vsel %vm2840_vm12, %v1755_v32, %v2904_v34  ;;  %v8137_v34 = vld [vmem:[#allocation24_spill] sm:$0xff] }
 0x18b   :  { %2001 = vmatmul.bf16.gmra.mxu3 %v6454_v62  ;;  %v6759_v63 = vpack.c.bf16 %v2968_v33, %v2964_v38 }
 0x18d   :  { %8136 = vst [vmem:[#allocation50_spill] sm:$0xff] %v6759_v63  ;;  %v1757_v21 = vpop.f32.mrf.mxu2  ;;  %v8141_v63 = vld [vmem:[#allocation27_spill] sm:$0xff] }
 0x18e   :  { %v1758_v14 = vadd.f32 %v1757_v21, %v1709_v10  ;;  %v6761_v61 = vpop.f32.mrf.mxu3  ;;  %v1661_v6 = vpop.f32.mrf.mxu0 }
 0x18f   :  { %v1662_v58 = vadd.f32 %v1661_v6, %v6520_v17  ;;  %v1710_v15 = vpop.f32.mrf.mxu1  ;;  %v8139_v17 = vld [vmem:[#allocation26_spill] sm:$0xff] }
 0x190   :  { %v2908_v23 = vmul.f32 0.01, %v1758_v14  ;;  %vm2844_vm13 = vcmp.gt.f32.partialorder %v1758_v14, 0.0 }
 0x191   :  { %v1711_v59 = vadd.f32 %v1710_v15, %v1662_v58 }
 0x192   :  { %v2972_v10 = vsel %vm2844_vm13, %v1758_v14, %v2908_v23 }
 0x195   :  { %v1759_v20 = vpop.f32.mrf.mxu2 }
 0x196   :  { %v1760_v48 = vadd.f32 %v1759_v20, %v1711_v59  ;;  %v6764_v35 = vpop.f32.mrf.mxu3  ;;  %v1664_v13 = vpop.f32.mrf.mxu0 }
 0x197   :  { %v1665_v33 = vadd.f32 %v1664_v13, %v6528_v39  ;;  %v1713_v38 = vpop.f32.mrf.mxu1 }
 0x198   :  { %vm2848_vm14 = vcmp.gt.f32.partialorder %v1760_v48, 0.0  ;;  %v2912_v4 = vmul.f32 0.01, %v1760_v48 }
 0x199   :  { %v1714_v32 = vadd.f32 %v1713_v38, %v1665_v33  ;;  %1859 = vmatmul.bf16.gmra.mxu0 %v8137_v34  ;;  %v6779_v33 = vld [vmem:[%s8006_s2] sm:$0xf] }
 0x19a   :  { %1908 = vmatmul.bf16.gmra.mxu1 %v8138_v8  ;;  %1957 = vmatmul.bf16.gmra.mxu2 %v8139_v17  ;;  %v2976_v21 = vsel %vm2848_vm14, %v1760_v48, %v2912_v4  ;;  %v6782_v14 = vperm.slane %v6779_v33, 1 }
 0x19b   :  { %2006 = vmatmul.bf16.gmra.mxu3 %v6513_v12  ;;  %v6771_v6 = vpack.c.bf16 %v2976_v21, %v2972_v10  ;;  %v8142_v12 = vld [vmem:[#allocation28_spill] sm:$0xff] }
 0x19c   :  { %v1777_v48 = vadd.f32 %v6537_v37, %v6782_v14 }
 0x19d   :  { %8140 = vst [vmem:[#allocation51_spill] sm:$0xff] %v6771_v6  ;;  %v1762_v58 = vpop.f32.mrf.mxu2 }
 0x19e   :  { %v1763_v15 = vadd.f32 %v1762_v58, %v1714_v32  ;;  %v6773_v59 = vpop.f32.mrf.mxu3  ;;  %v1666_v39 = vpop.f32.mrf.mxu0 }
 0x19f   :  { %v1667_v20 = vadd.f32 %v1666_v39, %v6531_v19  ;;  %v1715_v13 = vpop.f32.mrf.mxu1 }
 0x1a0   :  { %v2916_v4 = vmul.f32 0.01, %v1763_v15  ;;  %vm2852_vm15 = vcmp.gt.f32.partialorder %v1763_v15, 0.0 }
 0x1a1   :  { %v1716_v23 = vadd.f32 %v1715_v13, %v1667_v20  ;;  %v8143_v20 = vld [vmem:[#allocation9_spill] sm:$0xff] }
 0x1a2   :  { %v2980_v37 = vsel %vm2852_vm15, %v1763_v15, %v2916_v4  ;;  %v1782_v15 = vadd.f32 %v6549_v36, %v6782_v14  ;;  %v1784_v36 = vadd.f32 %v6552_v40, %v6782_v14 }
 0x1a5   :  { %v1764_v38 = vpop.f32.mrf.mxu2 }
 0x1a6   :  { %v1765_v32 = vadd.f32 %v1764_v38, %v1716_v23  ;;  %v6786_v10 = vpop.f32.mrf.mxu3  ;;  %v1825_v21 = vpop.f32.mrf.mxu0 }
 0x1a7   :  { %v1826_v19 = vadd.f32 %v1825_v21, %v1777_v48  ;;  %v1874_v58 = vpop.f32.mrf.mxu1  ;;  %v1779_v48 = vadd.f32 %v6540_v9, %v6782_v14 }
 0x1a8   :  { %vm2856_vm1 = vcmp.gt.f32.partialorder %v1765_v32, 0.0  ;;  %v2920_v39 = vmul.f32 0.01, %v1765_v32 }
 0x1a9   :  { %v1875_v6 = vadd.f32 %v1874_v58, %v1826_v19  ;;  %2020 = vmatmul.bf16.vlgmr.msrb.gmra.mxu0 %v8141_v63 }
 0x1aa   :  { %4775 = vmatmul.msk.bf16.vlgmr.msrb.gmra.mxu1 %vm1399_vm0, %v8142_v12  ;;  %2118 = vmatmul.bf16.vlgmr.msrb.gmra.mxu2 %v8143_v20  ;;  %v2984_v13 = vsel %vm2856_vm1, %v1765_v32, %v2920_v39  ;;  %v8152_v20 = vld [vmem:[#allocation34_spill] sm:$0xff] }
 0x1ab   :  { %2167 = vmatmul.bf16.vlgmr.msrb.gmra.mxu3 %v5643_v41  ;;  %v6793_v23 = vpack.c.bf16 %v2984_v13, %v2980_v37 }
 0x1ad   :  { %8144 = vst [vmem:[#allocation27_spill] sm:$0xff] %v6793_v23  ;;  %v1923_v38 = vpop.f32.mrf.mxu2 }
 0x1ae   :  { %v1924_v21 = vadd.f32 %v1923_v38, %v1875_v6  ;;  %v1972_v17 = vpop.f32.mrf.mxu3  ;;  %v1827_v19 = vpop.f32.mrf.mxu0  ;;  %v8145_v6 = vld [vmem:[#allocation29_spill] sm:$0xff]  ;;  %v8146_v38 = vld [vmem:[#allocation30_spill] sm:$0xff] }
 0x1af   :  { %v1828_v58 = vadd.f32 %v1827_v19, %v1779_v48  ;;  %v1876_v8 = vpop.f32.mrf.mxu1 }
 0x1b0   :  { %v6797_v62 = vadd.f32 %v1972_v17, %v1924_v21  ;;  %v8147_v17 = vld [vmem:[#allocation11_spill] sm:$0xff] }
 0x1b1   :  { %v1877_v12 = vadd.f32 %v1876_v8, %v1828_v58 }
 0x1b5   :  { %v1925_v4 = vpop.f32.mrf.mxu2 }
 0x1b6   :  { %v1926_v32 = vadd.f32 %v1925_v4, %v1877_v12  ;;  %v1974_v39 = vpop.f32.mrf.mxu3  ;;  %v1830_v37 = vpop.f32.mrf.mxu0  ;;  %v1787_v4 = vadd.f32 %v6567_v24, %v6782_v14  ;;  %v4617_v24 = vld [vmem:[%s8005_s1 + $0x4e8] sm:$0xf] }
 0x1b7   :  { %v1831_v13 = vadd.f32 %v1830_v37, %v1782_v15  ;;  %v1879_v23 = vpop.f32.mrf.mxu1 }
 0x1b8   :  { %v6801_v41 = vadd.f32 %v1974_v39, %v1926_v32 }
 0x1b9   :  { %v1880_v9 = vadd.f32 %v1879_v23, %v1831_v13  ;;  %2025 = vmatmul.bf16.gmra.mxu0 %v8145_v6 }
 0x1ba   :  { %4776 = vmatmul.msk.bf16.gmra.mxu1 %vm1399_vm0, %v8146_v38  ;;  %2123 = vmatmul.bf16.gmra.mxu2 %v8147_v17 }
 0x1bb   :  { %2172 = vmatmul.bf16.gmra.mxu3 %v5679_v53 }
 0x1bd   :  { %v1928_v12 = vpop.f32.mrf.mxu2 }
 0x1be   :  { %v1929_v8 = vadd.f32 %v1928_v12, %v1880_v9  ;;  %v1977_v48 = vpop.f32.mrf.mxu3  ;;  %v1832_v21 = vpop.f32.mrf.mxu0  ;;  %v8148_v9 = vld [vmem:[#allocation31_spill] sm:$0xff]  ;;  %v8149_v12 = vld [vmem:[#allocation32_spill] sm:$0xff] }
 0x1bf   :  { %v1833_v19 = vadd.f32 %v1832_v21, %v1784_v36  ;;  %v1881_v58 = vpop.f32.mrf.mxu1  ;;  %v8150_v36 = vld [vmem:[#allocation13_spill] sm:$0xff] }
 0x1c0   :  { %v6810_v15 = vadd.f32 %v1977_v48, %v1929_v8  ;;  %v5215_v8 = vld [vmem:[%s8005_s1 + $0x4f4] sm:$0xf0] }
 0x1c1   :  { %v1882_v23 = vadd.f32 %v1881_v58, %v1833_v19  ;;  %v4618_v48 = vor.u32 %v5215_v8, %v4617_v24  ;;  %v5247_v24 = vld [vmem:[%s8005_s1 + $0x5f4] sm:$0xf0]  ;;  %v4489_v8 = vld [vmem:[%s8005_s1 + $0x3e8] sm:$0xf] }
 0x1c3   :  { %2306 = vmatpush.bf16.msra.mxu2 %v4618_v48  ;;  %v5183_v48 = vld [vmem:[%s8005_s1 + $0x3f4] sm:$0xf0] }
 0x1c5   :  { %v1930_v32 = vpop.f32.mrf.mxu2 }
 0x1c6   :  { %v1931_v39 = vadd.f32 %v1930_v32, %v1882_v23  ;;  %v1979_v37 = vpop.f32.mrf.mxu3  ;;  %v1835_v13 = vpop.f32.mrf.mxu0 }
 0x1c7   :  { %v1836_v53 = vadd.f32 %v1835_v13, %v1787_v4  ;;  %v1884_v17 = vpop.f32.mrf.mxu1 }
 0x1c8   :  { %v6814_v38 = vadd.f32 %v1979_v37, %v1931_v39  ;;  %v4361_v39 = vld [vmem:[%s8005_s1 + $0x2e8] sm:$0xf]  ;;  %v5151_v37 = vld [vmem:[%s8005_s1 + $0x2f4] sm:$0xf0] }
 0x1c9   :  { %v1885_v40 = vadd.f32 %v1884_v17, %v1836_v53  ;;  %2030 = vmatmul.bf16.gmra.mxu0 %v8148_v9  ;;  %v1789_v53 = vadd.f32 %v6588_v52, %v6782_v14  ;;  %v4745_v52 = vld [vmem:[%s8005_s1 + $0x5e8] sm:$0xf] }
 0x1ca   :  { %4777 = vmatmul.msk.bf16.gmra.mxu1 %vm1399_vm0, %v8149_v12  ;;  %2128 = vmatmul.bf16.gmra.mxu2 %v8150_v36  ;;  %v8151_v12 = vld [vmem:[#allocation33_spill] sm:$0xff] }
 0x1cb   :  { %2177 = vmatmul.bf16.gmra.mxu3 %v5715_v1 }
 0x1cd   :  { %v1933_v17 = vpop.f32.mrf.mxu2 }
 0x1ce   :  { %v1934_v21 = vadd.f32 %v1933_v17, %v1885_v40  ;;  %v1982_v19 = vpop.f32.mrf.mxu3  ;;  %v1837_v58 = vpop.f32.mrf.mxu0  ;;  %v4362_v40 = vor.u32 %v5151_v37, %v4361_v39  ;;  %v4490_v17 = vor.u32 %v5183_v48, %v4489_v8 }
 0x1cf   :  { %v1838_v23 = vadd.f32 %v1837_v58, %v1789_v53  ;;  %v1886_v4 = vpop.f32.mrf.mxu1  ;;  %v4746_v53 = vor.u32 %v5247_v24, %v4745_v52  ;;  %v8153_v52 = vld [vmem:[#allocation15_spill] sm:$0xff]  ;;  %v1794_v24 = vadd.f32 %v6618_v44, %v6782_v14  ;;  %v4729_v44 = vld [vmem:[%s8005_s1 + $0x5c8] sm:$0xf] }
 0x1d0   :  { %v6829_v32 = vadd.f32 %v1982_v19, %v1934_v21  ;;  %2208 = vmatpush.bf16.msra.mxu0 %v4362_v40  ;;  %2257 = vmatpush.bf16.msra.mxu1 %v4490_v17  ;;  %v1792_v21 = vadd.f32 %v6603_v49, %v6782_v14  ;;  %v4601_v49 = vld [vmem:[%s8005_s1 + $0x4c8] sm:$0xf] }
 0x1d1   :  { %v1887_v13 = vadd.f32 %v1886_v4, %v1838_v23  ;;  %2355 = vmatpush.bf16.msra.mxu3 %v4746_v53 }
 0x1d5   :  { %v1935_v19 = vpop.f32.mrf.mxu2 }
 0x1d6   :  { %v1936_v58 = vadd.f32 %v1935_v19, %v1887_v13  ;;  %v1984_v23 = vpop.f32.mrf.mxu3  ;;  %v1840_v4 = vpop.f32.mrf.mxu0  ;;  %v5211_v13 = vld [vmem:[%s8005_s1 + $0x4d4] sm:$0xf0] }
 0x1d7   :  { %v1841_v39 = vadd.f32 %v1840_v4, %v1792_v21  ;;  %v1889_v37 = vpop.f32.mrf.mxu1  ;;  %v4602_v40 = vor.u32 %v5211_v13, %v4601_v49  ;;  %v5147_v4 = vld [vmem:[%s8005_s1 + $0x2d4] sm:$0xf0]  ;;  %v4473_v49 = vld [vmem:[%s8005_s1 + $0x3c8] sm:$0xf] }
 0x1d8   :  { %v6851_v1 = vadd.f32 %v1984_v23, %v1936_v58  ;;  %v4345_v23 = vld [vmem:[%s8005_s1 + $0x2c8] sm:$0xf]  ;;  %v5179_v13 = vld [vmem:[%s8005_s1 + $0x3d4] sm:$0xf0] }
 0x1d9   :  { %v1890_v36 = vadd.f32 %v1889_v37, %v1841_v39  ;;  %2035 = vmatmul.bf16.gmra.mxu0 %v8151_v12  ;;  %2307 = vmatpush.bf16.msra.mxu2 %v4602_v40  ;;  %v4346_v39 = vor.u32 %v5147_v4, %v4345_v23  ;;  %v5243_v37 = vld [vmem:[%s8005_s1 + $0x5d4] sm:$0xf0] }
 0x1da   :  { %4778 = vmatmul.msk.bf16.gmra.mxu1 %vm1399_vm0, %v8152_v20  ;;  %2133 = vmatmul.bf16.gmra.mxu2 %v8153_v52  ;;  %v4730_v40 = vor.u32 %v5243_v37, %v4729_v44  ;;  %v8154_v52 = vld [vmem:[#allocation36_spill] sm:$0xff]  ;;  %v8155_v20 = vld [vmem:[#allocation37_spill] sm:$0xff]  ;;  %v1799_v37 = vadd.f32 %v6657_v60, %v6782_v14 }
 0x1db   :  { %2182 = vmatmul.bf16.gmra.mxu3 %v5775_v25  ;;  %2209 = vmatpush.bf16.msra.mxu0 %v4346_v39  ;;  %v8156_v44 = vld [vmem:[#allocation17_spill] sm:$0xff] }
 0x1dc   :  { %2356 = vmatpush.bf16.msra.mxu3 %v4730_v40  ;;  %v4713_v60 = vld [vmem:[%s8005_s1 + $0x5a8] sm:$0xf] }
 0x1dd   :  { %v1938_v8 = vpop.f32.mrf.mxu2 }
 0x1de   :  { %v1939_v48 = vadd.f32 %v1938_v8, %v1890_v36  ;;  %v1987_v53 = vpop.f32.mrf.mxu3  ;;  %v1842_v17 = vpop.f32.mrf.mxu0  ;;  %v1797_v8 = vadd.f32 %v6633_v0, %v6782_v14  ;;  %v4585_v0 = vld [vmem:[%s8005_s1 + $0x4a8] sm:$0xf] }
 0x1df   :  { %v1843_v21 = vadd.f32 %v1842_v17, %v1794_v24  ;;  %v1891_v19 = vpop.f32.mrf.mxu1  ;;  %v4474_v24 = vor.u32 %v5179_v13, %v4473_v49 }
 0x1e0   :  { %v6866_v58 = vadd.f32 %v1987_v53, %v1939_v48 }
 0x1e1   :  { %v1892_v36 = vadd.f32 %v1891_v19, %v1843_v21  ;;  %2258 = vmatpush.bf16.msra.mxu1 %v4474_v24 }
 0x1e5   :  { %v1940_v48 = vpop.f32.mrf.mxu2 }
 0x1e6   :  { %v1941_v53 = vadd.f32 %v1940_v48, %v1892_v36  ;;  %v1989_v17 = vpop.f32.mrf.mxu3  ;;  %v1845_v21 = vpop.f32.mrf.mxu0  ;;  %v5207_v36 = vld [vmem:[%s8005_s1 + $0x4b4] sm:$0xf0] }
 0x1e7   :  { %v1846_v19 = vadd.f32 %v1845_v21, %v1797_v8  ;;  %v1894_v23 = vpop.f32.mrf.mxu1  ;;  %v4586_v39 = vor.u32 %v5207_v36, %v4585_v0  ;;  %v5143_v21 = vld [vmem:[%s8005_s1 + $0x2b4] sm:$0xf0]  ;;  %v4457_v0 = vld [vmem:[%s8005_s1 + $0x3a8] sm:$0xf] }
 0x1e8   :  { %v6888_v4 = vadd.f32 %v1989_v17, %v1941_v53  ;;  %v4329_v17 = vld [vmem:[%s8005_s1 + $0x2a8] sm:$0xf]  ;;  %v5175_v36 = vld [vmem:[%s8005_s1 + $0x3b4] sm:$0xf0] }
 0x1e9   :  { %v1895_v25 = vadd.f32 %v1894_v23, %v1846_v19  ;;  %2040 = vmatmul.bf16.gmra.mxu0 %v8154_v52  ;;  %2308 = vmatpush.bf16.msra.mxu2 %v4586_v39  ;;  %v4330_v19 = vor.u32 %v5143_v21, %v4329_v17  ;;  %v5239_v23 = vld [vmem:[%s8005_s1 + $0x5b4] sm:$0xf0] }
 0x1ea   :  { %4779 = vmatmul.msk.bf16.gmra.mxu1 %vm1399_vm0, %v8155_v20  ;;  %2138 = vmatmul.bf16.gmra.mxu2 %v8156_v44  ;;  %v4714_v39 = vor.u32 %v5239_v23, %v4713_v60  ;;  %v5203_v23 = vld [vmem:[%s8005_s1 + $0x494] sm:$0xf0] }
 0x1eb   :  { %2187 = vmatmul.bf16.gmra.mxu3 %v5829_v50  ;;  %2210 = vmatpush.bf16.msra.mxu0 %v4330_v19  ;;  %v4569_v19 = vld [vmem:[%s8005_s1 + $0x488] sm:$0xf]  ;;  %v8157_v44 = vld [vmem:[#allocation39_spill] sm:$0xff] }
 0x1ec   :  { %2357 = vmatpush.bf16.msra.mxu3 %v4714_v39 }
 0x1ed   :  { %v1943_v49 = vpop.f32.mrf.mxu2 }
 0x1ee   :  { %v1944_v13 = vadd.f32 %v1943_v49, %v1895_v25  ;;  %v1992_v40 = vpop.f32.mrf.mxu3  ;;  %v1847_v24 = vpop.f32.mrf.mxu0  ;;  %v1802_v49 = vadd.f32 %v6704_v7, %v6782_v14  ;;  %v5171_v7 = vld [vmem:[%s8005_s1 + $0x394] sm:$0xf0] }
 0x1ef   :  { %v1848_v8 = vadd.f32 %v1847_v24, %v1799_v37  ;;  %v1896_v48 = vpop.f32.mrf.mxu1  ;;  %v4458_v37 = vor.u32 %v5175_v36, %v4457_v0  ;;  %v5139_v24 = vld [vmem:[%s8005_s1 + $0x294] sm:$0xf0] }
 0x1f0   :  { %v6903_v53 = vadd.f32 %v1992_v40, %v1944_v13  ;;  %v4313_v40 = vld [vmem:[%s8005_s1 + $0x288] sm:$0xf] }
 0x1f1   :  { %v1897_v25 = vadd.f32 %v1896_v48, %v1848_v8  ;;  %2259 = vmatpush.bf16.msra.mxu1 %v4458_v37  ;;  %v4441_v8 = vld [vmem:[%s8005_s1 + $0x388] sm:$0xf]  ;;  %v4314_v60 = vor.u32 %v5139_v24, %v4313_v40  ;;  %v4570_v37 = vor.u32 %v5203_v23, %v4569_v19  ;;  %v5199_v23 = vld [vmem:[%s8005_s1 + $0x474] sm:$0xf0] }
 0x1f2   :  { %v4442_v39 = vor.u32 %v5171_v7, %v4441_v8  ;;  %v5135_v8 = vld [vmem:[%s8005_s1 + $0x274] sm:$0xf0]  ;;  %v4553_v19 = vld [vmem:[%s8005_s1 + $0x468] sm:$0xf] }
 0x1f3   :  { %2211 = vmatpush.bf16.msra.mxu0 %v4314_v60  ;;  %v5167_v7 = vld [vmem:[%s8005_s1 + $0x374] sm:$0xf0]  ;;  %2309 = vmatpush.bf16.msra.mxu2 %v4570_v37  ;;  %v4281_v37 = vld [vmem:[%s8005_s1 + $0x248] sm:$0xf] }
 0x1f5   :  { %v1945_v13 = vpop.f32.mrf.mxu2  ;;  %2260 = vmatpush.bf16.msra.mxu1 %v4442_v39  ;;  %v4681_v39 = vld [vmem:[%s8005_s1 + $0x568] sm:$0xf] }
 0x1f6   :  { %v1946_v48 = vadd.f32 %v1945_v13, %v1897_v25  ;;  %v1994_v17 = vpop.f32.mrf.mxu3  ;;  %v1850_v21 = vpop.f32.mrf.mxu0  ;;  %v4697_v25 = vld [vmem:[%s8005_s1 + $0x588] sm:$0xf]  ;;  %v5235_v13 = vld [vmem:[%s8005_s1 + $0x594] sm:$0xf0] }
 0x1f7   :  { %v1851_v0 = vadd.f32 %v1850_v21, %v1802_v49  ;;  %v1899_v36 = vpop.f32.mrf.mxu1  ;;  %v4698_v24 = vor.u32 %v5235_v13, %v4697_v25  ;;  %v4297_v49 = vld [vmem:[%s8005_s1 + $0x268] sm:$0xf]  ;;  %v5231_v25 = vld [vmem:[%s8005_s1 + $0x574] sm:$0xf0] }
 0x1f8   :  { %v6949_v40 = vadd.f32 %v1994_v17, %v1946_v48  ;;  %v4425_v21 = vld [vmem:[%s8005_s1 + $0x368] sm:$0xf]  ;;  %v8158_v48 = vld [vmem:[#allocation40_spill] sm:$0xff]  ;;  %v8159_v17 = vld [vmem:[#allocation19_spill] sm:$0xff]  ;;  %v4298_v60 = vor.u32 %v5135_v8, %v4297_v49  ;;  %v4682_v13 = vor.u32 %v5231_v25, %v4681_v39  ;;  %v1804_v49 = vadd.f32 %v6743_v5, %v6782_v14 }
 0x1f9   :  { %v1900_v50 = vadd.f32 %v1899_v36, %v1851_v0  ;;  %2045 = vmatmul.bf16.gmra.mxu0 %v8157_v44  ;;  %v4426_v0 = vor.u32 %v5167_v7, %v4425_v21  ;;  %v4554_v36 = vor.u32 %v5199_v23, %v4553_v19  ;;  %2358 = vmatpush.bf16.msra.mxu3 %v4698_v24  ;;  %v5131_v21 = vld [vmem:[%s8005_s1 + $0x254] sm:$0xf0]  ;;  %v4409_v7 = vld [vmem:[%s8005_s1 + $0x348] sm:$0xf] }
 0x1fa   :  { %4780 = vmatmul.msk.bf16.gmra.mxu1 %vm1399_vm0, %v8158_v48  ;;  %2143 = vmatmul.bf16.gmra.mxu2 %v8159_v17  ;;  %v4282_v23 = vor.u32 %v5131_v21, %v4281_v37  ;;  %v5163_v5 = vld [vmem:[%s8005_s1 + $0x354] sm:$0xf0] }
 0x1fb   :  { %2192 = vmatmul.bf16.gmra.mxu3 %v5901_v28  ;;  %2212 = vmatpush.bf16.msra.mxu0 %v4298_v60  ;;  %v5195_v39 = vld [vmem:[%s8005_s1 + $0x454] sm:$0xf0]  ;;  %v4410_v17 = vor.u32 %v5163_v5, %v4409_v7  ;;  %v4393_v7 = vld [vmem:[%s8005_s1 + $0x328] sm:$0xf] }
 0x1fc   :  { %2261 = vmatpush.bf16.msra.mxu1 %v4426_v0  ;;  %v4537_v0 = vld [vmem:[%s8005_s1 + $0x448] sm:$0xf]  ;;  %2310 = vmatpush.bf16.msra.mxu2 %v4554_v36  ;;  %v5227_v37 = vld [vmem:[%s8005_s1 + $0x554] sm:$0xf0] }
 0x1fd   :  { %v1948_v8 = vpop.f32.mrf.mxu2  ;;  %2359 = vmatpush.bf16.msra.mxu3 %v4682_v13  ;;  %v4265_v36 = vld [vmem:[%s8005_s1 + $0x228] sm:$0xf]  ;;  %v5159_v13 = vld [vmem:[%s8005_s1 + $0x334] sm:$0xf0] }
 0x1fe   :  { %v1949_v24 = vadd.f32 %v1948_v8, %v1900_v50  ;;  %v1997_v60 = vpop.f32.mrf.mxu3  ;;  %v1852_v19 = vpop.f32.mrf.mxu0  ;;  %v4538_v50 = vor.u32 %v5195_v39, %v4537_v0  ;;  %v4665_v8 = vld [vmem:[%s8005_s1 + $0x548] sm:$0xf]  ;;  %v5223_v5 = vld [vmem:[%s8005_s1 + $0x534] sm:$0xf0]  ;;  %v1807_v39 = vadd.f32 %v6761_v61, %v6782_v14 }
 0x1ff   :  { %v1853_v25 = vadd.f32 %v1852_v19, %v1804_v49  ;;  %v1901_v28 = vpop.f32.mrf.mxu1  ;;  %2213 = vmatpush.bf16.msra.mxu0 %v4282_v23  ;;  %v4666_v48 = vor.u32 %v5227_v37, %v4665_v8  ;;  %v5127_v49 = vld [vmem:[%s8005_s1 + $0x234] sm:$0xf0]  ;;  %v4649_v23 = vld [vmem:[%s8005_s1 + $0x528] sm:$0xf] }
 0x200   :  { %v7006_v21 = vadd.f32 %v1997_v60, %v1949_v24  ;;  %2262 = vmatpush.bf16.msra.mxu1 %v4410_v17  ;;  %v4266_v19 = vor.u32 %v5127_v49, %v4265_v36  ;;  %v5191_v17 = vld [vmem:[%s8005_s1 + $0x434] sm:$0xf0]  ;;  %2311 = vmatpush.bf16.msra.mxu2 %v4538_v50  ;;  %v4394_v24 = vor.u32 %v5159_v13, %v4393_v7  ;;  %v4249_v50 = vld [vmem:[%s8005_s1 + $0x208] sm:$0xf] }
 0x201   :  { %v1902_v20 = vadd.f32 %v1901_v28, %v1853_v25  ;;  %v4521_v28 = vld [vmem:[%s8005_s1 + $0x428] sm:$0xf]  ;;  %2360 = vmatpush.bf16.msra.mxu3 %v4666_v48  ;;  %v4650_v0 = vor.u32 %v5223_v5, %v4649_v23  ;;  %v5123_v8 = vld [vmem:[%s8005_s1 + $0x214] sm:$0xf0] }
 0x202   :  { %v4522_v60 = vor.u32 %v5191_v17, %v4521_v28  ;;  %v4377_v37 = vld [vmem:[%s8005_s1 + $0x308] sm:$0xf]  ;;  %v4250_v7 = vor.u32 %v5123_v8, %v4249_v50  ;;  %v5155_v61 = vld [vmem:[%s8005_s1 + $0x314] sm:$0xf0] }
 0x203   :  { %2214 = vmatpush.bf16.msra.mxu0 %v4266_v19  ;;  %v4505_v19 = vld [vmem:[%s8005_s1 + $0x408] sm:$0xf]  ;;  %v5187_v13 = vld [vmem:[%s8005_s1 + $0x414] sm:$0xf0] }
 0x204   :  { %2263 = vmatpush.bf16.msra.mxu1 %v4394_v24  ;;  %2312 = vmatpush.bf16.msra.mxu2 %v4522_v60  ;;  %v4378_v24 = vor.u32 %v5155_v61, %v4377_v37  ;;  %v4633_v23 = vld [vmem:[%s8005_s1 + $0x508] sm:$0xf]  ;;  %v5219_v5 = vld [vmem:[%s8005_s1 + $0x514] sm:$0xf0]  ;;  %v1809_v60 = vadd.f32 %v6764_v35, %v6782_v14 }
 0x205   :  { %v1950_v25 = vpop.f32.mrf.mxu2  ;;  %2361 = vmatpush.bf16.msra.mxu3 %v4650_v0  ;;  %v4634_v50 = vor.u32 %v5219_v5, %v4633_v23 }
 0x206   :  { %v1951_v48 = vadd.f32 %v1950_v25, %v1902_v20  ;;  %v1999_v36 = vpop.f32.mrf.mxu3  ;;  %v1855_v49 = vpop.f32.mrf.mxu0  ;;  %v4506_v20 = vor.u32 %v5187_v13, %v4505_v19  ;;  %v1812_v19 = vadd.f32 %v6773_v59, %v6782_v14  ;;  %v1814_v59 = vadd.f32 %v6786_v10, %v6782_v14 }
 0x207   :  { %v1856_v28 = vadd.f32 %v1855_v49, %v1807_v39  ;;  %v1904_v17 = vpop.f32.mrf.mxu1  ;;  %2215 = vmatpush.bf16.msra.mxu0 %v4250_v7  ;;  %v7089_v14 = vperm.slane %v6779_v33, 2 }
 0x208   :  { %v7058_v25 = vadd.f32 %v1999_v36, %v1951_v48  ;;  %2264 = vmatpush.bf16.msra.mxu1 %v4378_v24  ;;  %2313 = vmatpush.bf16.msra.mxu2 %v4506_v20 }
 0x209   :  { %v1905_v8 = vadd.f32 %v1904_v17, %v1856_v28  ;;  %2050 = vmatmul.bf16.gmra.mxu0 %v6465_v46  ;;  %2362 = vmatpush.bf16.msra.mxu3 %v4634_v50  ;;  %v8160_v50 = vld [vmem:[#allocation43_spill] sm:$0xff] }
 0x20a   :  { %4781 = vmatmul.msk.bf16.gmra.mxu1 %vm1399_vm0, %v6467_v16  ;;  %2148 = vmatmul.bf16.gmra.mxu2 %v5989_v18 }
 0x20b   :  { %2197 = vmatmul.bf16.gmra.mxu3 %v6000_v22 }
 0x20d   :  { %v1953_v39 = vpop.f32.mrf.mxu2 }
 0x20e   :  { %v1954_v0 = vadd.f32 %v1953_v39, %v1905_v8  ;;  %v2002_v37 = vpop.f32.mrf.mxu3  ;;  %v1857_v48 = vpop.f32.mrf.mxu0  ;;  %v8161_v8 = vld [vmem:[#allocation44_spill] sm:$0xff] }
 0x20f   :  { %v1858_v36 = vadd.f32 %v1857_v48, %v1809_v60  ;;  %v1906_v49 = vpop.f32.mrf.mxu1  ;;  %v8162_v60 = vld [vmem:[#allocation23_spill] sm:$0xff] }
 0x210   :  { %v7067_v7 = vadd.f32 %v2002_v37, %v1954_v0 }
 0x211   :  { %v1907_v61 = vadd.f32 %v1906_v49, %v1858_v36 }
 0x215   :  { %v1955_v13 = vpop.f32.mrf.mxu2 }
 0x216   :  { %v1956_v28 = vadd.f32 %v1955_v13, %v1907_v61  ;;  %v2004_v17 = vpop.f32.mrf.mxu3  ;;  %v1860_v24 = vpop.f32.mrf.mxu0 }
 0x217   :  { %v1861_v20 = vadd.f32 %v1860_v24, %v1812_v19  ;;  %v1909_v23 = vpop.f32.mrf.mxu1 }
 0x218   :  { %v7071_v5 = vadd.f32 %v2004_v17, %v1956_v28 }
 0x219   :  { %v1910_v35 = vadd.f32 %v1909_v23, %v1861_v20  ;;  %2055 = vmatmul.bf16.gmra.mxu0 %v8160_v50 }
 0x21a   :  { %4782 = vmatmul.msk.bf16.gmra.mxu1 %vm1399_vm0, %v8161_v8  ;;  %2153 = vmatmul.bf16.gmra.mxu2 %v8162_v60 }
 0x21b   :  { %2202 = vmatmul.bf16.gmra.mxu3 %v8137_v34 }
 0x21d   :  { %v1958_v39 = vpop.f32.mrf.mxu2 }
 0x21e   :  { %v1959_v0 = vadd.f32 %v1958_v39, %v1910_v35  ;;  %v2007_v37 = vpop.f32.mrf.mxu3  ;;  %v1862_v48 = vpop.f32.mrf.mxu0 }
 0x21f   :  { %v1863_v36 = vadd.f32 %v1862_v48, %v1814_v59  ;;  %v1911_v49 = vpop.f32.mrf.mxu1 }
 0x220   :  { %v7080_v61 = vadd.f32 %v2007_v37, %v1959_v0 }
 0x221   :  { %v1912_v19 = vadd.f32 %v1911_v49, %v1863_v36 }
 0x225   :  { %v1960_v13 = vpop.f32.mrf.mxu2 }
 0x226   :  { %v1961_v28 = vadd.f32 %v1960_v13, %v1912_v19  ;;  %v2009_v17 = vpop.f32.mrf.mxu3  ;;  %v2021_v24 = vpop.f32.mrf.mxu0 }
 0x227   :  { %v2022_v20 = vadd.f32 %v2021_v24, %v6797_v62  ;;  %v2070_v23 = vpop.f32.mrf.mxu1 }
 0x228   :  { %v7083_v34 = vadd.f32 %v2009_v17, %v1961_v28 }
 0x229   :  { %v2071_v60 = vadd.f32 %v2070_v23, %v2022_v20  ;;  %2216 = vmatmul.bf16.vlgmr.msra.gmra.mxu0 %v5645_v42 }
 0x22a   :  { %2265 = vmatmul.bf16.vlgmr.msra.gmra.mxu1 %v5647_v43  ;;  %2314 = vmatmul.bf16.vlgmr.msra.gmra.mxu2 %v6078_v11 }
 0x22b   :  { %2363 = vmatmul.bf16.vlgmr.msra.gmra.mxu3 %v8141_v63  ;;  %v2861_v48 = vmul.f32 0.01, %v2071_v60  ;;  %vm2797_vm2 = vcmp.gt.f32.partialorder %v2071_v60, 0.0 }
 0x22d   :  { %v2119_v10 = vpop.f32.mrf.mxu2  ;;  %v2925_v19 = vsel %vm2797_vm2, %v2071_v60, %v2861_v48 }
 0x22e   :  { %v2120_v35 = vadd.f32 %v2119_v10, %v7089_v14  ;;  %v2168_v59 = vpop.f32.mrf.mxu3  ;;  %v2023_v62 = vpop.f32.mrf.mxu0 }
 0x22f   :  { %v2024_v39 = vadd.f32 %v2023_v62, %v6801_v41  ;;  %v2072_v0 = vpop.f32.mrf.mxu1 }
 0x230   :  { %v7094_v37 = vadd.f32 %v2168_v59, %v2120_v35 }
 0x231   :  { %v2073_v36 = vadd.f32 %v2072_v0, %v2024_v39 }
 0x233   :  { %vm2801_vm3 = vcmp.gt.f32.partialorder %v2073_v36, 0.0  ;;  %v2865_v49 = vmul.f32 0.01, %v2073_v36 }
 0x235   :  { %v2929_v33 = vsel %vm2801_vm3, %v2073_v36, %v2865_v49  ;;  %v2121_v13 = vpop.f32.mrf.mxu2 }
 0x236   :  { %v7096_v28 = vpack.c.bf16 %v2929_v33, %v2925_v19  ;;  %v2122_v17 = vadd.f32 %v2121_v13, %v7089_v14  ;;  %v2170_v24 = vpop.f32.mrf.mxu3  ;;  %v2026_v20 = vpop.f32.mrf.mxu0 }
 0x237   :  { %v2027_v23 = vadd.f32 %v2026_v20, %v6810_v15  ;;  %v2075_v41 = vpop.f32.mrf.mxu1 }
 0x238   :  { %8163 = vst [vmem:[#allocation29_spill] sm:$0xff] %v7096_v28  ;;  %v7100_v10 = vadd.f32 %v2170_v24, %v2122_v17 }
 0x239   :  { %v2076_v35 = vadd.f32 %v2075_v41, %v2027_v23  ;;  %2221 = vmatmul.bf16.gmra.mxu0 %v5681_v54 }
 0x23a   :  { %2270 = vmatmul.bf16.gmra.mxu1 %v5683_v55  ;;  %2319 = vmatmul.bf16.gmra.mxu2 %v6111_v57 }
 0x23b   :  { %2368 = vmatmul.bf16.gmra.mxu3 %v8145_v6  ;;  %v2869_v36 = vmul.f32 0.01, %v2076_v35  ;;  %vm2805_vm4 = vcmp.gt.f32.partialorder %v2076_v35, 0.0 }
 0x23d   :  { %v2124_v60 = vpop.f32.mrf.mxu2  ;;  %v2933_v13 = vsel %vm2805_vm4, %v2076_v35, %v2869_v36  ;;  %v5117_v35 = vld [vmem:[%s8005_s1 + $0x1ec] sm:$0xf] }
 0x23e   :  { %v2125_v59 = vadd.f32 %v2124_v60, %v7089_v14  ;;  %v2173_v62 = vpop.f32.mrf.mxu3  ;;  %v2028_v39 = vpop.f32.mrf.mxu0 }
 0x23f   :  { %v2029_v0 = vadd.f32 %v2028_v39, %v6814_v38  ;;  %v2077_v15 = vpop.f32.mrf.mxu1 }
 0x240   :  { %v7108_v48 = vadd.f32 %v2173_v62, %v2125_v59 }
 0x241   :  { %v2078_v49 = vadd.f32 %v2077_v15, %v2029_v0 }
 0x243   :  { %vm2809_vm5 = vcmp.gt.f32.partialorder %v2078_v49, 0.0  ;;  %v2873_v19 = vmul.f32 0.01, %v2078_v49 }
 0x245   :  { %v2126_v33 = vpop.f32.mrf.mxu2  ;;  %v2937_v17 = vsel %vm2809_vm5, %v2078_v49, %v2873_v19 }
 0x246   :  { %v2127_v24 = vadd.f32 %v2126_v33, %v7089_v14  ;;  %v2175_v20 = vpop.f32.mrf.mxu3  ;;  %v2031_v23 = vpop.f32.mrf.mxu0  ;;  %v7111_v41 = vpack.c.bf16 %v2937_v17, %v2933_v13  ;;  %v4761_v17 = vld [vmem:[%s8005_s1 + $0x608] sm:$0xf] }
 0x247   :  { %v2032_v60 = vadd.f32 %v2031_v23, %v6829_v32  ;;  %v2080_v38 = vpop.f32.mrf.mxu1  ;;  %v4235_v32 = vld [vmem:[%s8005_s1 + $0x1f8] sm:$0xf0] }
 0x248   :  { %8164 = vst [vmem:[#allocation31_spill] sm:$0xff] %v7111_v41  ;;  %v7114_v39 = vadd.f32 %v2175_v20, %v2127_v24  ;;  %v4238_v0 = vor.u32 %v5117_v35, %v4235_v32  ;;  %v5251_v24 = vld [vmem:[%s8005_s1 + $0x614] sm:$0xf0]  ;;  %v5149_v20 = vld [vmem:[%s8005_s1 + $0x2ec] sm:$0xf] }
 0x249   :  { %v2081_v59 = vadd.f32 %v2080_v38, %v2032_v60  ;;  %2226 = vmatmul.bf16.gmra.mxu0 %v5717_v2  ;;  %v4762_v38 = vor.u32 %v5251_v24, %v4761_v17 }
 0x24a   :  { %2275 = vmatmul.bf16.gmra.mxu1 %v5719_v3  ;;  %2324 = vmatmul.bf16.gmra.mxu2 %v6146_v47 }
 0x24b   :  { %2373 = vmatmul.bf16.gmra.mxu3 %v8148_v9  ;;  %2502 = vmatpush.bf16.msrb.mxu2 %v4238_v0  ;;  %v2877_v23 = vmul.f32 0.01, %v2081_v59  ;;  %vm2813_vm6 = vcmp.gt.f32.partialorder %v2081_v59, 0.0  ;;  %v4107_v0 = vld [vmem:[%s8005_s1 + $0xf8] sm:$0xf0] }
 0x24c   :  { %2411 = vmatpush.bf16.msrb.mxu0 %v4762_v38 }
 0x24d   :  { %v2129_v62 = vpop.f32.mrf.mxu2 }
 0x24e   :  { %v2130_v15 = vadd.f32 %v2129_v62, %v7089_v14  ;;  %v2178_v36 = vpop.f32.mrf.mxu3  ;;  %v2033_v49 = vpop.f32.mrf.mxu0  ;;  %v5085_v62 = vld [vmem:[%s8005_s1 + $0xec] sm:$0xf] }
 0x24f   :  { %v2034_v19 = vadd.f32 %v2033_v49, %v6851_v1  ;;  %v2082_v33 = vpop.f32.mrf.mxu1  ;;  %v4363_v1 = vld [vmem:[%s8005_s1 + $0x2f8] sm:$0xf0]  ;;  %v2941_v49 = vsel %vm2813_vm6, %v2081_v59, %v2877_v23  ;;  %v5113_v59 = vld [vmem:[%s8005_s1 + $0x1cc] sm:$0xf] }
 0x250   :  { %v7128_v13 = vadd.f32 %v2178_v36, %v2130_v15  ;;  %v4366_v35 = vor.u32 %v5149_v20, %v4363_v1  ;;  %v4110_v36 = vor.u32 %v5085_v62, %v4107_v0 }
 0x251   :  { %v2083_v60 = vadd.f32 %v2082_v33, %v2034_v19 }
 0x252   :  { %2551 = vmatpush.bf16.msrb.mxu3 %v4366_v35  ;;  %2453 = vmatpush.bf16.msrb.mxu1 %v4110_v36 }
 0x253   :  { %vm2817_vm7 = vcmp.gt.f32.partialorder %v2083_v60, 0.0  ;;  %v2881_v32 = vmul.f32 0.01, %v2083_v60 }
 0x255   :  { %v2131_v15 = vpop.f32.mrf.mxu2  ;;  %v2945_v19 = vsel %vm2817_vm7, %v2083_v60, %v2881_v32 }
 0x256   :  { %v2132_v33 = vadd.f32 %v2131_v15, %v7089_v14  ;;  %v2180_v17 = vpop.f32.mrf.mxu3  ;;  %v2036_v24 = vpop.f32.mrf.mxu0  ;;  %v7149_v20 = vpack.c.bf16 %v2945_v19, %v2941_v49  ;;  %v5145_v19 = vld [vmem:[%s8005_s1 + $0x2cc] sm:$0xf] }
 0x257   :  { %v2037_v38 = vadd.f32 %v2036_v24, %v6866_v58  ;;  %v2085_v1 = vpop.f32.mrf.mxu1  ;;  %v4219_v58 = vld [vmem:[%s8005_s1 + $0x1d8] sm:$0xf0] }
 0x258   :  { %8165 = vst [vmem:[#allocation33_spill] sm:$0xff] %v7149_v20  ;;  %v7152_v41 = vadd.f32 %v2180_v17, %v2132_v33  ;;  %v4222_v60 = vor.u32 %v5113_v59, %v4219_v58  ;;  %v4347_v33 = vld [vmem:[%s8005_s1 + $0x2d8] sm:$0xf0] }
 0x259   :  { %v2086_v35 = vadd.f32 %v2085_v1, %v2037_v38  ;;  %2231 = vmatmul.bf16.gmra.mxu0 %v5777_v26  ;;  %v4350_v38 = vor.u32 %v5145_v19, %v4347_v33  ;;  %v4091_v59 = vld [vmem:[%s8005_s1 + $0xd8] sm:$0xf0] }
 0x25a   :  { %2280 = vmatmul.bf16.gmra.mxu1 %v5779_v27  ;;  %2329 = vmatmul.bf16.gmra.mxu2 %v6205_v45 }
 0x25b   :  { %2378 = vmatmul.bf16.gmra.mxu3 %v8151_v12  ;;  %2503 = vmatpush.bf16.msrb.mxu2 %v4222_v60  ;;  %v2885_v17 = vmul.f32 0.01, %v2086_v35  ;;  %vm2821_vm8 = vcmp.gt.f32.partialorder %v2086_v35, 0.0 }
 0x25c   :  { %2552 = vmatpush.bf16.msrb.mxu3 %v4350_v38 }
 0x25d   :  { %v2134_v23 = vpop.f32.mrf.mxu2  ;;  %v2949_v60 = vsel %vm2821_vm8, %v2086_v35, %v2885_v17  ;;  %v5109_v35 = vld [vmem:[%s8005_s1 + $0x1ac] sm:$0xf] }
 0x25e   :  { %v2135_v32 = vadd.f32 %v2134_v23, %v7089_v14  ;;  %v2183_v62 = vpop.f32.mrf.mxu3  ;;  %v2038_v0 = vpop.f32.mrf.mxu0 }
 0x25f   :  { %v2039_v15 = vadd.f32 %v2038_v0, %v6888_v4  ;;  %v2087_v36 = vpop.f32.mrf.mxu1  ;;  %v5081_v4 = vld [vmem:[%s8005_s1 + $0xcc] sm:$0xf] }
 0x260   :  { %v7166_v49 = vadd.f32 %v2183_v62, %v2135_v32  ;;  %v4094_v23 = vor.u32 %v5081_v4, %v4091_v59  ;;  %v8167_v4 = vld [vmem:[#allocation35_spill] sm:$0xff] }
 0x261   :  { %v2088_v24 = vadd.f32 %v2087_v36, %v2039_v15 }
 0x262   :  { %2454 = vmatpush.bf16.msrb.mxu1 %v4094_v23 }
 0x263   :  { %vm2825_vm9 = vcmp.gt.f32.partialorder %v2088_v24, 0.0  ;;  %v2889_v1 = vmul.f32 0.01, %v2088_v24 }
 0x265   :  { %v2136_v58 = vpop.f32.mrf.mxu2  ;;  %v2953_v32 = vsel %vm2825_vm9, %v2088_v24, %v2889_v1 }
 0x266   :  { %v2137_v62 = vadd.f32 %v2136_v58, %v7089_v14  ;;  %v2185_v0 = vpop.f32.mrf.mxu3  ;;  %v2041_v15 = vpop.f32.mrf.mxu0  ;;  %v7181_v36 = vpack.c.bf16 %v2953_v32, %v2949_v60 }
 0x267   :  { %v2042_v19 = vadd.f32 %v2041_v15, %v6903_v53  ;;  %v2090_v33 = vpop.f32.mrf.mxu1  ;;  %v4203_v53 = vld [vmem:[%s8005_s1 + $0x1b8] sm:$0xf0] }
 0x268   :  { %8166 = vst [vmem:[#allocation36_spill] sm:$0xff] %v7181_v36  ;;  %v7184_v38 = vadd.f32 %v2185_v0, %v2137_v62  ;;  %v4206_v24 = vor.u32 %v5109_v35, %v4203_v53  ;;  %v5141_v62 = vld [vmem:[%s8005_s1 + $0x2ac] sm:$0xf]  ;;  %v4331_v0 = vld [vmem:[%s8005_s1 + $0x2b8] sm:$0xf0] }
 0x269   :  { %v2091_v20 = vadd.f32 %v2090_v33, %v2042_v19  ;;  %2236 = vmatmul.bf16.gmra.mxu0 %v5831_v51  ;;  %v4334_v33 = vor.u32 %v5141_v62, %v4331_v0  ;;  %v5077_v35 = vld [vmem:[%s8005_s1 + $0xac] sm:$0xf]  ;;  %v4315_v36 = vld [vmem:[%s8005_s1 + $0x298] sm:$0xf0] }
 0x26a   :  { %2285 = vmatmul.bf16.gmra.mxu1 %v5833_v56  ;;  %2334 = vmatmul.bf16.gmra.mxu2 %v8167_v4 }
 0x26b   :  { %2383 = vmatmul.bf16.gmra.mxu3 %v8154_v52  ;;  %2504 = vmatpush.bf16.msrb.mxu2 %v4206_v24  ;;  %v2893_v15 = vmul.f32 0.01, %v2091_v20  ;;  %vm2829_vm10 = vcmp.gt.f32.partialorder %v2091_v20, 0.0 }
 0x26c   :  { %2553 = vmatpush.bf16.msrb.mxu3 %v4334_v33 }
 0x26d   :  { %v2139_v17 = vpop.f32.mrf.mxu2 }
 0x26e   :  { %v2140_v1 = vadd.f32 %v2139_v17, %v7089_v14  ;;  %v2188_v59 = vpop.f32.mrf.mxu3  ;;  %v2043_v58 = vpop.f32.mrf.mxu0 }
 0x26f   :  { %v2044_v23 = vadd.f32 %v2043_v58, %v6949_v40  ;;  %v2092_v60 = vpop.f32.mrf.mxu1  ;;  %v4075_v40 = vld [vmem:[%s8005_s1 + $0xb8] sm:$0xf0]  ;;  %v5105_v58 = vld [vmem:[%s8005_s1 + $0x18c] sm:$0xf] }
 0x270   :  { %v7198_v32 = vadd.f32 %v2188_v59, %v2140_v1  ;;  %v4078_v53 = vor.u32 %v5077_v35, %v4075_v40  ;;  %v5073_v1 = vld [vmem:[%s8005_s1 + $0x8c] sm:$0xf]  ;;  %v4059_v59 = vld [vmem:[%s8005_s1 + $0x98] sm:$0xf0] }
 0x271   :  { %v2093_v19 = vadd.f32 %v2092_v60, %v2044_v23  ;;  %v2957_v23 = vsel %vm2829_vm10, %v2091_v20, %v2893_v15  ;;  %v4062_v35 = vor.u32 %v5073_v1, %v4059_v59  ;;  %v4187_v40 = vld [vmem:[%s8005_s1 + $0x198] sm:$0xf0]  ;;  %v5069_v59 = vld [vmem:[%s8005_s1 + $0x6c] sm:$0xf] }
 0x272   :  { %2455 = vmatpush.bf16.msrb.mxu1 %v4078_v53  ;;  %v5137_v53 = vld [vmem:[%s8005_s1 + $0x28c] sm:$0xf] }
 0x273   :  { %vm2833_vm11 = vcmp.gt.f32.partialorder %v2093_v19, 0.0  ;;  %v2897_v17 = vmul.f32 0.01, %v2093_v19 }
 0x275   :  { %v2141_v24 = vpop.f32.mrf.mxu2  ;;  %v2961_v60 = vsel %vm2833_vm11, %v2093_v19, %v2897_v17  ;;  %v4190_v19 = vor.u32 %v5105_v58, %v4187_v40  ;;  %v8169_v58 = vld [vmem:[#allocation38_spill] sm:$0xff] }
 0x276   :  { %v2142_v62 = vadd.f32 %v2141_v24, %v7089_v14  ;;  %v2190_v0 = vpop.f32.mrf.mxu3  ;;  %v2046_v33 = vpop.f32.mrf.mxu0  ;;  %v7231_v28 = vpack.c.bf16 %v2961_v60, %v2957_v23  ;;  %2456 = vmatpush.bf16.msrb.mxu1 %v4062_v35  ;;  %v4318_v24 = vor.u32 %v5137_v53, %v4315_v36  ;;  %v4043_v23 = vld [vmem:[%s8005_s1 + $0x78] sm:$0xf0]  ;;  %v5065_v53 = vld [vmem:[%s8005_s1 + $0x4c] sm:$0xf] }
 0x277   :  { %v2047_v20 = vadd.f32 %v2046_v33, %v7006_v21  ;;  %v2095_v15 = vpop.f32.mrf.mxu1  ;;  %2505 = vmatpush.bf16.msrb.mxu2 %v4190_v19  ;;  %v5101_v21 = vld [vmem:[%s8005_s1 + $0x16c] sm:$0xf]  ;;  %v4046_v36 = vor.u32 %v5069_v59, %v4043_v23  ;;  %v4171_v60 = vld [vmem:[%s8005_s1 + $0x178] sm:$0xf0] }
 0x278   :  { %8168 = vst [vmem:[#allocation44_spill] sm:$0xff] %v7231_v28  ;;  %v7234_v17 = vadd.f32 %v2190_v0, %v2142_v62  ;;  %v5133_v62 = vld [vmem:[%s8005_s1 + $0x26c] sm:$0xf]  ;;  %v4299_v0 = vld [vmem:[%s8005_s1 + $0x278] sm:$0xf0]  ;;  %v4174_v33 = vor.u32 %v5101_v21, %v4171_v60  ;;  %2554 = vmatpush.bf16.msrb.mxu3 %v4318_v24 }
 0x279   :  { %v2096_v1 = vadd.f32 %v2095_v15, %v2047_v20  ;;  %2241 = vmatmul.bf16.gmra.mxu0 %v5903_v29  ;;  %v4302_v35 = vor.u32 %v5133_v62, %v4299_v0  ;;  %v4027_v20 = vld [vmem:[%s8005_s1 + $0x58] sm:$0xf0]  ;;  %v5097_v15 = vld [vmem:[%s8005_s1 + $0x14c] sm:$0xf] }
 0x27a   :  { %2290 = vmatmul.bf16.gmra.mxu1 %v5905_v30  ;;  %2339 = vmatmul.bf16.gmra.mxu2 %v8169_v58  ;;  %v4030_v23 = vor.u32 %v5065_v53, %v4027_v20  ;;  %v4155_v21 = vld [vmem:[%s8005_s1 + $0x158] sm:$0xf0]  ;;  %v8172_v30 = vld [vmem:[#allocation41_spill] sm:$0xff] }
 0x27b   :  { %2388 = vmatmul.bf16.gmra.mxu3 %v8157_v44  ;;  %2457 = vmatpush.bf16.msrb.mxu1 %v4046_v36  ;;  %v5129_v36 = vld [vmem:[%s8005_s1 + $0x24c] sm:$0xf]  ;;  %v4283_v60 = vld [vmem:[%s8005_s1 + $0x258] sm:$0xf0]  ;;  %vm2837_vm12 = vcmp.gt.f32.partialorder %v2096_v1, 0.0 }
 0x27c   :  { %2506 = vmatpush.bf16.msrb.mxu2 %v4174_v33  ;;  %v4158_v33 = vor.u32 %v5097_v15, %v4155_v21  ;;  %2555 = vmatpush.bf16.msrb.mxu3 %v4302_v35  ;;  %v4286_v53 = vor.u32 %v5129_v36, %v4283_v60  ;;  %v5061_v44 = vld [vmem:[%s8005_s1 + $0x2c] sm:$0xf]  ;;  %v4011_v58 = vld [vmem:[%s8005_s1 + $0x38] sm:$0xf0] }
 0x27d   :  { %v2144_v40 = vpop.f32.mrf.mxu2  ;;  %v4014_v15 = vor.u32 %v5061_v44, %v4011_v58  ;;  %v4139_v35 = vld [vmem:[%s8005_s1 + $0x138] sm:$0xf0]  ;;  %v5057_v44 = vld [vmem:[%s8005_s1 + $0xc] sm:$0xf] }
 0x27e   :  { %v2145_v19 = vadd.f32 %v2144_v40, %v7089_v14  ;;  %v2193_v59 = vpop.f32.mrf.mxu3  ;;  %v2048_v24 = vpop.f32.mrf.mxu0  ;;  %v2901_v40 = vmul.f32 0.01, %v2096_v1  ;;  %v3995_v58 = vld [vmem:[%s8005_s1 + $0x18] sm:$0xf0]  ;;  %v5089_v60 = vld [vmem:[%s8005_s1 + $0x10c] sm:$0xf] }
 0x27f   :  { %v2049_v62 = vadd.f32 %v2048_v24, %v7058_v25  ;;  %v2097_v0 = vpop.f32.mrf.mxu1  ;;  %2458 = vmatpush.bf16.msrb.mxu1 %v4030_v23  ;;  %v5093_v25 = vld [vmem:[%s8005_s1 + $0x12c] sm:$0xf] }
 0x280   :  { %v7278_v28 = vadd.f32 %v2193_v59, %v2145_v19  ;;  %2507 = vmatpush.bf16.msrb.mxu2 %v4158_v33  ;;  %v5125_v19 = vld [vmem:[%s8005_s1 + $0x22c] sm:$0xf]  ;;  %v4267_v59 = vld [vmem:[%s8005_s1 + $0x238] sm:$0xf0]  ;;  %v4142_v23 = vor.u32 %v5093_v25, %v4139_v35  ;;  %2556 = vmatpush.bf16.msrb.mxu3 %v4286_v53 }
 0x281   :  { %v2098_v20 = vadd.f32 %v2097_v0, %v2049_v62  ;;  %v4270_v21 = vor.u32 %v5125_v19, %v4267_v59  ;;  %v2965_v62 = vsel %vm2837_vm12, %v2096_v1, %v2901_v40  ;;  %v4123_v35 = vld [vmem:[%s8005_s1 + $0x118] sm:$0xf0]  ;;  %v5121_v19 = vld [vmem:[%s8005_s1 + $0x20c] sm:$0xf] }
 0x282   :  { %v4251_v59 = vld [vmem:[%s8005_s1 + $0x218] sm:$0xf0] }
 0x283   :  { %vm2841_vm13 = vcmp.gt.f32.partialorder %v2098_v20, 0.0  ;;  %v2905_v24 = vmul.f32 0.01, %v2098_v20  ;;  %2459 = vmatpush.bf16.msrb.mxu1 %v4014_v15  ;;  %v3998_v15 = vor.u32 %v5057_v44, %v3995_v58  ;;  %v8171_v58 = vld [vmem:[#allocation22_spill] sm:$0xff] }
 0x284   :  { %2508 = vmatpush.bf16.msrb.mxu2 %v4142_v23  ;;  %2557 = vmatpush.bf16.msrb.mxu3 %v4270_v21 }
 0x285   :  { %v2146_v36 = vpop.f32.mrf.mxu2  ;;  %v2969_v0 = vsel %vm2841_vm13, %v2098_v20, %v2905_v24  ;;  %v4126_v20 = vor.u32 %v5089_v60, %v4123_v35 }
 0x286   :  { %v2147_v33 = vadd.f32 %v2146_v36, %v7089_v14  ;;  %v2195_v53 = vpop.f32.mrf.mxu3  ;;  %v2051_v25 = vpop.f32.mrf.mxu0  ;;  %v7318_v23 = vpack.c.bf16 %v2969_v0, %v2965_v62  ;;  %v4254_v36 = vor.u32 %v5121_v19, %v4251_v59 }
 0x287   :  { %v2052_v1 = vadd.f32 %v2051_v25, %v7067_v7  ;;  %v2100_v40 = vpop.f32.mrf.mxu1  ;;  %2460 = vmatpush.bf16.msrb.mxu1 %v3998_v15 }
 0x288   :  { %8170 = vst [vmem:[#allocation35_spill] sm:$0xff] %v7318_v23  ;;  %v7321_v24 = vadd.f32 %v2195_v53, %v2147_v33  ;;  %2509 = vmatpush.bf16.msrb.mxu2 %v4126_v20  ;;  %2558 = vmatpush.bf16.msrb.mxu3 %v4254_v36 }
 0x289   :  { %v2101_v44 = vadd.f32 %v2100_v40, %v2052_v1  ;;  %2246 = vmatmul.bf16.gmra.mxu0 %v6002_v31 }
 0x28a   :  { %2295 = vmatmul.bf16.gmra.mxu1 %v8171_v58  ;;  %2344 = vmatmul.bf16.gmra.mxu2 %v8172_v30 }
 0x28b   :  { %2393 = vmatmul.bf16.gmra.mxu3 %v6465_v46  ;;  %v2909_v25 = vmul.f32 0.01, %v2101_v44  ;;  %vm2845_vm14 = vcmp.gt.f32.partialorder %v2101_v44, 0.0 }
 0x28d   :  { %v2149_v62 = vpop.f32.mrf.mxu2  ;;  %v2973_v59 = vsel %vm2845_vm14, %v2101_v44, %v2909_v25 }
 0x28e   :  { %v2150_v7 = vadd.f32 %v2149_v62, %v7089_v14  ;;  %v2198_v60 = vpop.f32.mrf.mxu3  ;;  %v2053_v0 = vpop.f32.mrf.mxu0 }
 0x28f   :  { %v2054_v21 = vadd.f32 %v2053_v0, %v7071_v5  ;;  %v2102_v33 = vpop.f32.mrf.mxu1 }
 0x290   :  { %v7329_v53 = vadd.f32 %v2198_v60, %v2150_v7  ;;  %v8174_v60 = vld [vmem:[#allocation25_spill] sm:$0xff] }
 0x291   :  { %v2103_v15 = vadd.f32 %v2102_v33, %v2054_v21  ;;  %v8175_v21 = vld [vmem:[#allocation26_spill] sm:$0xff] }
 0x292   :  { %v8176_v33 = vld [vmem:[#allocation42_spill] sm:$0xff] }
 0x293   :  { %vm2849_vm15 = vcmp.gt.f32.partialorder %v2103_v15, 0.0  ;;  %v2913_v35 = vmul.f32 0.01, %v2103_v15 }
 0x295   :  { %v2151_v19 = vpop.f32.mrf.mxu2  ;;  %v2977_v1 = vsel %vm2849_vm15, %v2103_v15, %v2913_v35 }
 0x296   :  { %v2152_v40 = vadd.f32 %v2151_v19, %v7089_v14  ;;  %v2200_v20 = vpop.f32.mrf.mxu3  ;;  %v2056_v36 = vpop.f32.mrf.mxu0  ;;  %v7332_v62 = vpack.c.bf16 %v2977_v1, %v2973_v59 }
 0x297   :  { %v2057_v23 = vadd.f32 %v2056_v36, %v7080_v61  ;;  %v2105_v5 = vpop.f32.mrf.mxu1 }
 0x298   :  { %8173 = vst [vmem:[#allocation22_spill] sm:$0xff] %v7332_v62  ;;  %v7335_v0 = vadd.f32 %v2200_v20, %v2152_v40 }
 0x299   :  { %v2106_v7 = vadd.f32 %v2105_v5, %v2057_v23  ;;  %2251 = vmatmul.bf16.gmra.mxu0 %v8174_v60 }
 0x29a   :  { %2300 = vmatmul.bf16.gmra.mxu1 %v8175_v21  ;;  %2349 = vmatmul.bf16.gmra.mxu2 %v8176_v33 }
 0x29b   :  { %2398 = vmatmul.bf16.gmra.mxu3 %v8160_v50  ;;  %v2917_v1 = vmul.f32 0.01, %v2106_v7  ;;  %vm2853_vm1 = vcmp.gt.f32.partialorder %v2106_v7, 0.0 }
 0x29d   :  { %v2154_v44 = vpop.f32.mrf.mxu2  ;;  %v2981_v36 = vsel %vm2853_vm1, %v2106_v7, %v2917_v1 }
 0x29e   :  { %v2155_v25 = vadd.f32 %v2154_v44, %v7089_v14  ;;  %v2203_v15 = vpop.f32.mrf.mxu3  ;;  %v2058_v35 = vpop.f32.mrf.mxu0 }
 0x29f   :  { %v2059_v19 = vadd.f32 %v2058_v35, %v7083_v34  ;;  %v2107_v61 = vpop.f32.mrf.mxu1 }
 0x2a0   :  { %v7343_v59 = vadd.f32 %v2203_v15, %v2155_v25  ;;  %v8177_v15 = vld [vmem:[#allocation28_spill] sm:$0xff] }
 0x2a1   :  { %v2108_v23 = vadd.f32 %v2107_v61, %v2059_v19  ;;  %v8178_v19 = vld [vmem:[#allocation9_spill] sm:$0xff]  ;;  %v8179_v61 = vld [vmem:[#allocation10_spill] sm:$0xff] }
 0x2a3   :  { %vm2857_vm2 = vcmp.gt.f32.partialorder %v2108_v23, 0.0  ;;  %v2921_v40 = vmul.f32 0.01, %v2108_v23 }
 0x2a5   :  { %v2156_v20 = vpop.f32.mrf.mxu2  ;;  %v2985_v5 = vsel %vm2857_vm2, %v2108_v23, %v2921_v40 }
 0x2a6   :  { %v2157_v62 = vadd.f32 %v2156_v20, %v7089_v14  ;;  %v2205_v50 = vpop.f32.mrf.mxu3  ;;  %v2217_v33 = vpop.f32.mrf.mxu0  ;;  %v7346_v44 = vpack.c.bf16 %v2985_v5, %v2981_v36 }
 0x2a7   :  { %v2218_v21 = vadd.f32 %v2217_v33, %v7094_v37  ;;  %v2266_v34 = vpop.f32.mrf.mxu1 }
 0x2a8   :  { %v7349_v35 = vadd.f32 %v2205_v50, %v2157_v62 }
 0x2a9   :  { %v2267_v25 = vadd.f32 %v2266_v34, %v2218_v21  ;;  %4783 = vmatmul.msk.bf16.vlgmr.msrb.gmra.mxu0 %vm1399_vm0, %v8177_v15 }
 0x2aa   :  { %2461 = vmatmul.bf16.vlgmr.msrb.gmra.mxu1 %v8178_v19  ;;  %2510 = vmatmul.bf16.vlgmr.msrb.gmra.mxu2 %v8179_v61  ;;  %v8180_v61 = vld [vmem:[#allocation30_spill] sm:$0xff] }
 0x2ab   :  { %2559 = vmatmul.bf16.vlgmr.msrb.gmra.mxu3 %v5645_v42 }
 0x2ad   :  { %v2315_v14 = vpop.f32.mrf.mxu2 }
 0x2ae   :  { %v2316_v7 = vadd.f32 %v2315_v14, %v2267_v25  ;;  %v2364_v1 = vpop.f32.mrf.mxu3  ;;  %v2219_v23 = vpop.f32.mrf.mxu0  ;;  %v8181_v25 = vld [vmem:[#allocation11_spill] sm:$0xff] }
 0x2af   :  { %v2220_v40 = vadd.f32 %v2219_v23, %v7100_v10  ;;  %v2268_v37 = vpop.f32.mrf.mxu1  ;;  %v8182_v10 = vld [vmem:[#allocation12_spill] sm:$0xff] }
 0x2b0   :  { %v7357_v33 = vadd.f32 %v2364_v1, %v2316_v7 }
 0x2b1   :  { %v2269_v50 = vadd.f32 %v2268_v37, %v2220_v40 }
 0x2b5   :  { %v2317_v62 = vpop.f32.mrf.mxu2 }
 0x2b6   :  { %v2318_v21 = vadd.f32 %v2317_v62, %v2269_v50  ;;  %v2366_v20 = vpop.f32.mrf.mxu3  ;;  %v2222_v36 = vpop.f32.mrf.mxu0 }
 0x2b7   :  { %v2223_v5 = vadd.f32 %v2222_v36, %v7108_v48  ;;  %v2271_v34 = vpop.f32.mrf.mxu1 }
 0x2b8   :  { %v7360_v19 = vadd.f32 %v2366_v20, %v2318_v21 }
 0x2b9   :  { %v2272_v42 = vadd.f32 %v2271_v34, %v2223_v5  ;;  %4784 = vmatmul.msk.bf16.gmra.mxu0 %vm1399_vm0, %v8180_v61 }
 0x2ba   :  { %2466 = vmatmul.bf16.gmra.mxu1 %v8181_v25  ;;  %2515 = vmatmul.bf16.gmra.mxu2 %v8182_v10  ;;  %v8183_v10 = vld [vmem:[#allocation32_spill] sm:$0xff] }
 0x2bb   :  { %2564 = vmatmul.bf16.gmra.mxu3 %v5681_v54 }
 0x2bd   :  { %v2320_v14 = vpop.f32.mrf.mxu2 }
 0x2be   :  { %v2321_v7 = vadd.f32 %v2320_v14, %v2272_v42  ;;  %v2369_v1 = vpop.f32.mrf.mxu3  ;;  %v2224_v23 = vpop.f32.mrf.mxu0  ;;  %v8184_v42 = vld [vmem:[#allocation13_spill] sm:$0xff]  ;;  %v5245_v14 = vld [vmem:[%s8005_s1 + $0x5ec] sm:$0xf] }
 0x2bf   :  { %v2225_v40 = vadd.f32 %v2224_v23, %v7114_v39  ;;  %v2273_v48 = vpop.f32.mrf.mxu1  ;;  %v8185_v39 = vld [vmem:[#allocation14_spill] sm:$0xff] }
 0x2c0   :  { %v7368_v37 = vadd.f32 %v2369_v1, %v2321_v7 }
 0x2c1   :  { %v2274_v50 = vadd.f32 %v2273_v48, %v2225_v40 }
 0x2c5   :  { %v2322_v62 = vpop.f32.mrf.mxu2 }
 0x2c6   :  { %v2323_v21 = vadd.f32 %v2322_v62, %v2274_v50  ;;  %v2371_v20 = vpop.f32.mrf.mxu3  ;;  %v2227_v36 = vpop.f32.mrf.mxu0 }
 0x2c7   :  { %v2228_v5 = vadd.f32 %v2227_v36, %v7128_v13  ;;  %v2276_v34 = vpop.f32.mrf.mxu1  ;;  %v4747_v13 = vld [vmem:[%s8005_s1 + $0x5f8] sm:$0xf0]  ;;  %v5249_v36 = vld [vmem:[%s8005_s1 + $0x60c] sm:$0xf] }
 0x2c8   :  { %v7371_v25 = vadd.f32 %v2371_v20, %v2323_v21  ;;  %v4750_v7 = vor.u32 %v5245_v14, %v4747_v13  ;;  %v4491_v20 = vld [vmem:[%s8005_s1 + $0x3f8] sm:$0xf0] }
 0x2c9   :  { %v2277_v54 = vadd.f32 %v2276_v34, %v2228_v5  ;;  %4785 = vmatmul.msk.bf16.gmra.mxu0 %vm1399_vm0, %v8183_v10 }
 0x2ca   :  { %2471 = vmatmul.bf16.gmra.mxu1 %v8184_v42  ;;  %2520 = vmatmul.bf16.gmra.mxu2 %v8185_v39  ;;  %v4619_v42 = vld [vmem:[%s8005_s1 + $0x4f8] sm:$0xf0] }
 0x2cb   :  { %2569 = vmatmul.bf16.gmra.mxu3 %v5717_v2  ;;  %2698 = vmatpush.bf16.msra.mxu2 %v4750_v7  ;;  %v5181_v2 = vld [vmem:[%s8005_s1 + $0x3ec] sm:$0xf] }
 0x2cc   :  { %v4494_v34 = vor.u32 %v5181_v2, %v4491_v20  ;;  %v8186_v2 = vld [vmem:[#allocation34_spill] sm:$0xff]  ;;  %v8187_v20 = vld [vmem:[#allocation15_spill] sm:$0xff] }
 0x2cd   :  { %v2325_v1 = vpop.f32.mrf.mxu2 }
 0x2ce   :  { %v2326_v23 = vadd.f32 %v2325_v1, %v2277_v54  ;;  %v2374_v40 = vpop.f32.mrf.mxu3  ;;  %v2229_v48 = vpop.f32.mrf.mxu0  ;;  %v5213_v54 = vld [vmem:[%s8005_s1 + $0x4ec] sm:$0xf]  ;;  %2600 = vmatpush.bf16.msra.mxu0 %v4494_v34 }
 0x2cf   :  { %v2230_v50 = vadd.f32 %v2229_v48, %v7152_v41  ;;  %v2278_v62 = vpop.f32.mrf.mxu1  ;;  %v4763_v41 = vld [vmem:[%s8005_s1 + $0x618] sm:$0xf0]  ;;  %v4622_v14 = vor.u32 %v5213_v54, %v4619_v42 }
 0x2d0   :  { %v7385_v21 = vadd.f32 %v2374_v40, %v2326_v23  ;;  %v4766_v39 = vor.u32 %v5249_v36, %v4763_v41  ;;  %v8188_v36 = vld [vmem:[#allocation16_spill] sm:$0xff] }
 0x2d1   :  { %v2279_v5 = vadd.f32 %v2278_v62, %v2230_v50  ;;  %2649 = vmatpush.bf16.msra.mxu1 %v4622_v14 }
 0x2d2   :  { %2754 = vmatpush.bf16.msra.mxu3 %v4766_v39 }
 0x2d5   :  { %v2327_v13 = vpop.f32.mrf.mxu2 }
 0x2d6   :  { %v2328_v7 = vadd.f32 %v2327_v13, %v2279_v5  ;;  %v2376_v1 = vpop.f32.mrf.mxu3  ;;  %v2232_v23 = vpop.f32.mrf.mxu0  ;;  %v5241_v5 = vld [vmem:[%s8005_s1 + $0x5cc] sm:$0xf] }
 0x2d7   :  { %v2233_v40 = vadd.f32 %v2232_v23, %v7166_v49  ;;  %v2281_v48 = vpop.f32.mrf.mxu1  ;;  %v4731_v49 = vld [vmem:[%s8005_s1 + $0x5d8] sm:$0xf0] }
 0x2d8   :  { %v7406_v50 = vadd.f32 %v2376_v1, %v2328_v7  ;;  %v4734_v34 = vor.u32 %v5241_v5, %v4731_v49  ;;  %v4475_v1 = vld [vmem:[%s8005_s1 + $0x3d8] sm:$0xf0] }
 0x2d9   :  { %v2282_v62 = vadd.f32 %v2281_v48, %v2233_v40  ;;  %4786 = vmatmul.msk.bf16.gmra.mxu0 %vm1399_vm0, %v8186_v2  ;;  %v5209_v48 = vld [vmem:[%s8005_s1 + $0x4cc] sm:$0xf] }
 0x2da   :  { %2476 = vmatmul.bf16.gmra.mxu1 %v8187_v20  ;;  %2525 = vmatmul.bf16.gmra.mxu2 %v8188_v36 }
 0x2db   :  { %2574 = vmatmul.bf16.gmra.mxu3 %v5777_v26  ;;  %2699 = vmatpush.bf16.msra.mxu2 %v4734_v34  ;;  %v5177_v26 = vld [vmem:[%s8005_s1 + $0x3cc] sm:$0xf] }
 0x2dc   :  { %v4478_v40 = vor.u32 %v5177_v26, %v4475_v1  ;;  %v5237_v26 = vld [vmem:[%s8005_s1 + $0x5ac] sm:$0xf] }
 0x2dd   :  { %v2330_v41 = vpop.f32.mrf.mxu2 }
 0x2de   :  { %v2331_v54 = vadd.f32 %v2330_v41, %v2282_v62  ;;  %v2379_v42 = vpop.f32.mrf.mxu3  ;;  %v2234_v39 = vpop.f32.mrf.mxu0  ;;  %2601 = vmatpush.bf16.msra.mxu0 %v4478_v40 }
 0x2df   :  { %v2235_v14 = vadd.f32 %v2234_v39, %v7184_v38  ;;  %v2283_v13 = vpop.f32.mrf.mxu1  ;;  %v4603_v38 = vld [vmem:[%s8005_s1 + $0x4d8] sm:$0xf0]  ;;  %v8189_v39 = vld [vmem:[#allocation37_spill] sm:$0xff] }
 0x2e0   :  { %v7420_v7 = vadd.f32 %v2379_v42, %v2331_v54  ;;  %v4606_v62 = vor.u32 %v5209_v48, %v4603_v38 }
 0x2e1   :  { %v2284_v23 = vadd.f32 %v2283_v13, %v2235_v14  ;;  %v8190_v14 = vld [vmem:[#allocation17_spill] sm:$0xff]  ;;  %v8191_v13 = vld [vmem:[#allocation18_spill] sm:$0xff] }
 0x2e2   :  { %2650 = vmatpush.bf16.msra.mxu1 %v4606_v62 }
 0x2e5   :  { %v2332_v20 = vpop.f32.mrf.mxu2 }
 0x2e6   :  { %v2333_v36 = vadd.f32 %v2332_v20, %v2284_v23  ;;  %v2381_v5 = vpop.f32.mrf.mxu3  ;;  %v2237_v49 = vpop.f32.mrf.mxu0 }
 0x2e7   :  { %v2238_v34 = vadd.f32 %v2237_v49, %v7198_v32  ;;  %v2286_v41 = vpop.f32.mrf.mxu1  ;;  %v4715_v32 = vld [vmem:[%s8005_s1 + $0x5b8] sm:$0xf0] }
 0x2e8   :  { %v7435_v54 = vadd.f32 %v2381_v5, %v2333_v36  ;;  %v4718_v1 = vor.u32 %v5237_v26, %v4715_v32  ;;  %v4459_v5 = vld [vmem:[%s8005_s1 + $0x3b8] sm:$0xf0]  ;;  %v5201_v32 = vld [vmem:[%s8005_s1 + $0x48c] sm:$0xf] }
 0x2e9   :  { %v2287_v42 = vadd.f32 %v2286_v41, %v2238_v34  ;;  %4787 = vmatmul.msk.bf16.gmra.mxu0 %vm1399_vm0, %v8189_v39  ;;  %v5205_v41 = vld [vmem:[%s8005_s1 + $0x4ac] sm:$0xf]  ;;  %v4443_v26 = vld [vmem:[%s8005_s1 + $0x398] sm:$0xf0] }
 0x2ea   :  { %2481 = vmatmul.bf16.gmra.mxu1 %v8190_v14  ;;  %2530 = vmatmul.bf16.gmra.mxu2 %v8191_v13  ;;  %v5169_v13 = vld [vmem:[%s8005_s1 + $0x38c] sm:$0xf] }
 0x2eb   :  { %2579 = vmatmul.bf16.gmra.mxu3 %v5831_v51  ;;  %2700 = vmatpush.bf16.msra.mxu2 %v4718_v1  ;;  %v5173_v51 = vld [vmem:[%s8005_s1 + $0x3ac] sm:$0xf] }
 0x2ec   :  { %v4462_v34 = vor.u32 %v5173_v51, %v4459_v5 }
 0x2ed   :  { %v2335_v23 = vpop.f32.mrf.mxu2 }
 0x2ee   :  { %v2336_v40 = vadd.f32 %v2335_v23, %v2287_v42  ;;  %v2384_v48 = vpop.f32.mrf.mxu3  ;;  %v2239_v38 = vpop.f32.mrf.mxu0  ;;  %2602 = vmatpush.bf16.msra.mxu0 %v4462_v34 }
 0x2ef   :  { %v2240_v62 = vadd.f32 %v2239_v38, %v7234_v17  ;;  %v2288_v20 = vpop.f32.mrf.mxu1  ;;  %v4587_v17 = vld [vmem:[%s8005_s1 + $0x4b8] sm:$0xf0] }
 0x2f0   :  { %v7449_v36 = vadd.f32 %v2384_v48, %v2336_v40  ;;  %v4590_v42 = vor.u32 %v5205_v41, %v4587_v17  ;;  %v4446_v48 = vor.u32 %v5169_v13, %v4443_v26  ;;  %v4571_v38 = vld [vmem:[%s8005_s1 + $0x498] sm:$0xf0]  ;;  %v8193_v26 = vld [vmem:[#allocation19_spill] sm:$0xff] }
 0x2f1   :  { %v2289_v49 = vadd.f32 %v2288_v20, %v2240_v62  ;;  %v5233_v62 = vld [vmem:[%s8005_s1 + $0x58c] sm:$0xf]  ;;  %v4699_v20 = vld [vmem:[%s8005_s1 + $0x598] sm:$0xf0]  ;;  %v4574_v34 = vor.u32 %v5201_v32, %v4571_v38 }
 0x2f2   :  { %2651 = vmatpush.bf16.msra.mxu1 %v4590_v42  ;;  %2603 = vmatpush.bf16.msra.mxu0 %v4446_v48  ;;  %v8192_v42 = vld [vmem:[#allocation40_spill] sm:$0xff] }
 0x2f3   :  { %v4427_v13 = vld [vmem:[%s8005_s1 + $0x378] sm:$0xf0] }
 0x2f4   :  { %v8194_v32 = vld [vmem:[#allocation20_spill] sm:$0xff] }
 0x2f5   :  { %v2337_v14 = vpop.f32.mrf.mxu2  ;;  %v4683_v48 = vld [vmem:[%s8005_s1 + $0x578] sm:$0xf0] }
 0x2f6   :  { %v2338_v1 = vadd.f32 %v2337_v14, %v2289_v49  ;;  %v2386_v23 = vpop.f32.mrf.mxu3  ;;  %v2242_v40 = vpop.f32.mrf.mxu0  ;;  %v4702_v49 = vor.u32 %v5233_v62, %v4699_v20  ;;  %2652 = vmatpush.bf16.msra.mxu1 %v4574_v34  ;;  %v5165_v14 = vld [vmem:[%s8005_s1 + $0x36c] sm:$0xf] }
 0x2f7   :  { %v2243_v51 = vadd.f32 %v2242_v40, %v7278_v28  ;;  %v2291_v5 = vpop.f32.mrf.mxu1  ;;  %v5197_v28 = vld [vmem:[%s8005_s1 + $0x46c] sm:$0xf] }
 0x2f8   :  { %v7482_v41 = vadd.f32 %v2386_v23, %v2338_v1  ;;  %v4430_v1 = vor.u32 %v5165_v14, %v4427_v13  ;;  %v4555_v23 = vld [vmem:[%s8005_s1 + $0x478] sm:$0xf0]  ;;  %v5229_v40 = vld [vmem:[%s8005_s1 + $0x56c] sm:$0xf]  ;;  %2701 = vmatpush.bf16.msra.mxu2 %v4702_v49 }
 0x2f9   :  { %v2292_v17 = vadd.f32 %v2291_v5, %v2243_v51  ;;  %4788 = vmatmul.msk.bf16.gmra.mxu0 %vm1399_vm0, %v8192_v42  ;;  %v4558_v38 = vor.u32 %v5197_v28, %v4555_v23  ;;  %v4686_v62 = vor.u32 %v5229_v40, %v4683_v48  ;;  %v5161_v51 = vld [vmem:[%s8005_s1 + $0x34c] sm:$0xf]  ;;  %v4411_v5 = vld [vmem:[%s8005_s1 + $0x358] sm:$0xf0] }
 0x2fa   :  { %2486 = vmatmul.bf16.gmra.mxu1 %v8193_v26  ;;  %2535 = vmatmul.bf16.gmra.mxu2 %v8194_v32  ;;  %v5193_v34 = vld [vmem:[%s8005_s1 + $0x44c] sm:$0xf]  ;;  %v4414_v13 = vor.u32 %v5161_v51, %v4411_v5  ;;  %v4539_v28 = vld [vmem:[%s8005_s1 + $0x458] sm:$0xf0] }
 0x2fb   :  { %2584 = vmatmul.bf16.gmra.mxu3 %v5903_v29  ;;  %2604 = vmatpush.bf16.msra.mxu0 %v4430_v1  ;;  %v5225_v26 = vld [vmem:[%s8005_s1 + $0x54c] sm:$0xf]  ;;  %v4667_v32 = vld [vmem:[%s8005_s1 + $0x558] sm:$0xf0] }
 0x2fc   :  { %2653 = vmatpush.bf16.msra.mxu1 %v4558_v38  ;;  %2702 = vmatpush.bf16.msra.mxu2 %v4686_v62  ;;  %v4670_v40 = vor.u32 %v5225_v26, %v4667_v32  ;;  %v4395_v51 = vld [vmem:[%s8005_s1 + $0x338] sm:$0xf0]  ;;  %v5185_v32 = vld [vmem:[%s8005_s1 + $0x40c] sm:$0xf] }
 0x2fd   :  { %v2340_v20 = vpop.f32.mrf.mxu2  ;;  %v4523_v5 = vld [vmem:[%s8005_s1 + $0x438] sm:$0xf0] }
 0x2fe   :  { %v2341_v14 = vadd.f32 %v2340_v20, %v2292_v17  ;;  %v2389_v29 = vpop.f32.mrf.mxu3  ;;  %v2244_v49 = vpop.f32.mrf.mxu0  ;;  %v4542_v17 = vor.u32 %v5193_v34, %v4539_v28  ;;  %v5157_v20 = vld [vmem:[%s8005_s1 + $0x32c] sm:$0xf]  ;;  %v4379_v26 = vld [vmem:[%s8005_s1 + $0x318] sm:$0xf0] }
 0x2ff   :  { %v2245_v1 = vadd.f32 %v2244_v49, %v7321_v24  ;;  %v2293_v23 = vpop.f32.mrf.mxu1  ;;  %2605 = vmatpush.bf16.msra.mxu0 %v4414_v13  ;;  %v5189_v24 = vld [vmem:[%s8005_s1 + $0x42c] sm:$0xf]  ;;  %v4398_v62 = vor.u32 %v5157_v20, %v4395_v51  ;;  %v4507_v20 = vld [vmem:[%s8005_s1 + $0x418] sm:$0xf0] }
 0x300   :  { %v7526_v48 = vadd.f32 %v2389_v29, %v2341_v14  ;;  %2654 = vmatpush.bf16.msra.mxu1 %v4542_v17  ;;  %v5221_v34 = vld [vmem:[%s8005_s1 + $0x52c] sm:$0xf]  ;;  %v4651_v14 = vld [vmem:[%s8005_s1 + $0x538] sm:$0xf0]  ;;  %2703 = vmatpush.bf16.msra.mxu2 %v4670_v40  ;;  %v4526_v29 = vor.u32 %v5189_v24, %v4523_v5 }
 0x301   :  { %v2294_v38 = vadd.f32 %v2293_v23, %v2245_v1  ;;  %v4654_v49 = vor.u32 %v5221_v34, %v4651_v14  ;;  %v5153_v28 = vld [vmem:[%s8005_s1 + $0x30c] sm:$0xf]  ;;  %v4635_v24 = vld [vmem:[%s8005_s1 + $0x518] sm:$0xf0] }
 0x302   :  { %v4382_v40 = vor.u32 %v5153_v28, %v4379_v26  ;;  %v5217_v51 = vld [vmem:[%s8005_s1 + $0x50c] sm:$0xf] }
 0x303   :  { %2606 = vmatpush.bf16.msra.mxu0 %v4398_v62  ;;  %v4638_v34 = vor.u32 %v5217_v51, %v4635_v24 }
 0x304   :  { %2655 = vmatpush.bf16.msra.mxu1 %v4526_v29  ;;  %2704 = vmatpush.bf16.msra.mxu2 %v4654_v49 }
 0x305   :  { %v2342_v13 = vpop.f32.mrf.mxu2 }
 0x306   :  { %v2343_v1 = vadd.f32 %v2342_v13, %v2294_v38  ;;  %v2391_v23 = vpop.f32.mrf.mxu3  ;;  %v2247_v17 = vpop.f32.mrf.mxu0  ;;  %v4510_v38 = vor.u32 %v5185_v32, %v4507_v20 }
 0x307   :  { %v2248_v62 = vadd.f32 %v2247_v17, %v7329_v53  ;;  %v2296_v5 = vpop.f32.mrf.mxu1  ;;  %2607 = vmatpush.bf16.msra.mxu0 %v4382_v40 }
 0x308   :  { %v7565_v14 = vadd.f32 %v2391_v23, %v2343_v1  ;;  %2656 = vmatpush.bf16.msra.mxu1 %v4510_v38  ;;  %2705 = vmatpush.bf16.msra.mxu2 %v4638_v34 }
 0x309   :  { %v2297_v29 = vadd.f32 %v2296_v5, %v2248_v62  ;;  %4789 = vmatmul.msk.bf16.gmra.mxu0 %vm1399_vm0, %v6467_v16  ;;  %v8195_v62 = vld [vmem:[#allocation23_spill] sm:$0xff] }
 0x30a   :  { %2491 = vmatmul.bf16.gmra.mxu1 %v5989_v18  ;;  %2540 = vmatmul.bf16.gmra.mxu2 %v6000_v22 }
 0x30b   :  { %2589 = vmatmul.bf16.gmra.mxu3 %v6002_v31 }
 0x30d   :  { %v2345_v53 = vpop.f32.mrf.mxu2 }
 0x30e   :  { %v2346_v13 = vadd.f32 %v2345_v53, %v2297_v29  ;;  %v2394_v49 = vpop.f32.mrf.mxu3  ;;  %v2249_v28 = vpop.f32.mrf.mxu0 }
 0x30f   :  { %v2250_v26 = vadd.f32 %v2249_v28, %v7335_v0  ;;  %v2298_v32 = vpop.f32.mrf.mxu1  ;;  %v8196_v0 = vld [vmem:[#allocation24_spill] sm:$0xff] }
 0x310   :  { %v7573_v1 = vadd.f32 %v2394_v49, %v2346_v13 }
 0x311   :  { %v2299_v23 = vadd.f32 %v2298_v32, %v2250_v26 }
 0x315   :  { %v2347_v17 = vpop.f32.mrf.mxu2 }
 0x316   :  { %v2348_v40 = vadd.f32 %v2347_v17, %v2299_v23  ;;  %v2396_v20 = vpop.f32.mrf.mxu3  ;;  %v2252_v51 = vpop.f32.mrf.mxu0  ;;  %v5325_v17 = vld [vmem:[%s8006_s2] sm:$0xf] }
 0x317   :  { %v2253_v18 = vadd.f32 %v2252_v51, %v7343_v59  ;;  %v2301_v22 = vpop.f32.mrf.mxu1 }
 0x318   :  { %v7576_v24 = vadd.f32 %v2396_v20, %v2348_v40  ;;  %v7589_v40 = vperm.slane %v5325_v17, 3 }
 0x319   :  { %v2302_v31 = vadd.f32 %v2301_v22, %v2253_v18  ;;  %4790 = vmatmul.msk.bf16.gmra.mxu0 %vm1399_vm0, %v8161_v8 }
 0x31a   :  { %2496 = vmatmul.bf16.gmra.mxu1 %v8195_v62  ;;  %2545 = vmatmul.bf16.gmra.mxu2 %v8196_v0 }
 0x31b   :  { %2594 = vmatmul.bf16.gmra.mxu3 %v8174_v60 }
 0x31d   :  { %v2350_v5 = vpop.f32.mrf.mxu2 }
 0x31e   :  { %v2351_v38 = vadd.f32 %v2350_v5, %v2302_v31  ;;  %v2399_v34 = vpop.f32.mrf.mxu3  ;;  %v2254_v29 = vpop.f32.mrf.mxu0 }
 0x31f   :  { %v2255_v53 = vadd.f32 %v2254_v29, %v7349_v35  ;;  %v2303_v59 = vpop.f32.mrf.mxu1 }
 0x320   :  { %v7584_v13 = vadd.f32 %v2399_v34, %v2351_v38 }
 0x321   :  { %v2304_v49 = vadd.f32 %v2303_v59, %v2255_v53 }
 0x325   :  { %v2352_v28 = vpop.f32.mrf.mxu2 }
 0x326   :  { %v2353_v26 = vadd.f32 %v2352_v28, %v2304_v49  ;;  %v2401_v32 = vpop.f32.mrf.mxu3  ;;  %v2413_v23 = vpop.f32.mrf.mxu0 }
 0x327   :  { %v2414_v60 = vadd.f32 %v2413_v23, %v7357_v33  ;;  %v2462_v20 = vpop.f32.mrf.mxu1 }
 0x328   :  { %v7592_v51 = vadd.f32 %v2401_v32, %v2353_v26  ;;  %v2463_v35 = vadd.f32 %v2462_v20, %v7589_v40 }
 0x329   :  { %2608 = vmatmul.bf16.vlgmr.msra.gmra.mxu0 %v5647_v43  ;;  %v2862_v0 = vmul.f32 0.01, %v2414_v60  ;;  %vm2798_vm3 = vcmp.gt.f32.partialorder %v2414_v60, 0.0 }
 0x32a   :  { %2657 = vmatmul.bf16.vlgmr.msra.gmra.mxu1 %v6078_v11  ;;  %2706 = vmatmul.bf16.vlgmr.msra.gmra.mxu2 %v8141_v63 }
 0x32b   :  { %4791 = vmatmul.msk.bf16.vlgmr.msra.gmra.mxu3 %vm1399_vm0, %v8177_v15  ;;  %v2926_v34 = vsel %vm2798_vm3, %v2414_v60, %v2862_v0 }
 0x32d   :  { %v2511_v18 = vpop.f32.mrf.mxu2 }
 0x32e   :  { %v2512_v22 = vadd.f32 %v2511_v18, %v2463_v35  ;;  %v2560_v31 = vpop.f32.mrf.mxu3  ;;  %v2415_v62 = vpop.f32.mrf.mxu0 }
 0x32f   :  { %v2416_v33 = vadd.f32 %v2415_v62, %v7360_v19  ;;  %v2464_v5 = vpop.f32.mrf.mxu1 }
 0x330   :  { %v7601_v38 = vadd.f32 %v2560_v31, %v2512_v22  ;;  %v2465_v63 = vadd.f32 %v2464_v5, %v7589_v40 }
 0x331   :  { %vm2802_vm4 = vcmp.gt.f32.partialorder %v2416_v33, 0.0  ;;  %v2866_v43 = vmul.f32 0.01, %v2416_v33 }
 0x333   :  { %v2930_v11 = vsel %vm2802_vm4, %v2416_v33, %v2866_v43 }
 0x334   :  { %v7603_v29 = vpack.c.bf16 %v2930_v11, %v2926_v34 }
 0x335   :  { %v2513_v15 = vpop.f32.mrf.mxu2 }
 0x336   :  { %v2514_v53 = vadd.f32 %v2513_v15, %v2465_v63  ;;  %v2562_v59 = vpop.f32.mrf.mxu3  ;;  %v2418_v49 = vpop.f32.mrf.mxu0 }
 0x337   :  { %v2419_v28 = vadd.f32 %v2418_v49, %v7368_v37  ;;  %v2467_v26 = vpop.f32.mrf.mxu1 }
 0x338   :  { %v7607_v19 = vadd.f32 %v2562_v59, %v2514_v53  ;;  %v2468_v32 = vadd.f32 %v2467_v26, %v7589_v40 }
 0x339   :  { %2613 = vmatmul.bf16.gmra.mxu0 %v5683_v55  ;;  %v2870_v35 = vmul.f32 0.01, %v2419_v28  ;;  %vm2806_vm5 = vcmp.gt.f32.partialorder %v2419_v28, 0.0 }
 0x33a   :  { %2662 = vmatmul.bf16.gmra.mxu1 %v6111_v57  ;;  %2711 = vmatmul.bf16.gmra.mxu2 %v8145_v6 }
 0x33b   :  { %4792 = vmatmul.msk.bf16.gmra.mxu3 %vm1399_vm0, %v8180_v61  ;;  %v2934_v31 = vsel %vm2806_vm5, %v2419_v28, %v2870_v35 }
 0x33d   :  { %v2516_v23 = vpop.f32.mrf.mxu2 }
 0x33e   :  { %v2517_v17 = vadd.f32 %v2516_v23, %v2468_v32  ;;  %v2565_v60 = vpop.f32.mrf.mxu3  ;;  %v2420_v20 = vpop.f32.mrf.mxu0 }
 0x33f   :  { %v2421_v37 = vadd.f32 %v2420_v20, %v7371_v25  ;;  %v2469_v18 = vpop.f32.mrf.mxu1 }
 0x340   :  { %v7616_v22 = vadd.f32 %v2565_v60, %v2517_v17  ;;  %v2470_v6 = vadd.f32 %v2469_v18, %v7589_v40 }
 0x341   :  { %vm2810_vm6 = vcmp.gt.f32.partialorder %v2421_v37, 0.0  ;;  %v2874_v55 = vmul.f32 0.01, %v2421_v37 }
 0x343   :  { %v2938_v57 = vsel %vm2810_vm6, %v2421_v37, %v2874_v55 }
 0x344   :  { %v7619_v62 = vpack.c.bf16 %v2938_v57, %v2934_v31 }
 0x345   :  { %v2518_v61 = vpop.f32.mrf.mxu2 }
 0x346   :  { %v2519_v0 = vadd.f32 %v2518_v61, %v2470_v6  ;;  %v2567_v33 = vpop.f32.mrf.mxu3  ;;  %v2423_v5 = vpop.f32.mrf.mxu0 }
 0x347   :  { %v2424_v43 = vadd.f32 %v2423_v5, %v7385_v21  ;;  %v2472_v34 = vpop.f32.mrf.mxu1  ;;  %v5299_v5 = vld [vmem:[#allocation3 + $0x174] sm:$0xf0] }
 0x348   :  { %v7622_v25 = vadd.f32 %v2567_v33, %v2519_v0  ;;  %v2473_v11 = vadd.f32 %v2472_v34, %v7589_v40  ;;  %v5267_v34 = vld [vmem:[#allocation3 + $0x74] sm:$0xf0] }
 0x349   :  { %2618 = vmatmul.bf16.gmra.mxu0 %v5719_v3  ;;  %v2878_v49 = vmul.f32 0.01, %v2424_v43  ;;  %vm2814_vm7 = vcmp.gt.f32.partialorder %v2424_v43, 0.0 }
 0x34a   :  { %2667 = vmatmul.bf16.gmra.mxu1 %v6146_v47  ;;  %2716 = vmatmul.bf16.gmra.mxu2 %v8148_v9 }
 0x34b   :  { %4793 = vmatmul.msk.bf16.gmra.mxu3 %vm1399_vm0, %v8183_v10  ;;  %v2942_v32 = vsel %vm2814_vm7, %v2424_v43, %v2878_v49 }
 0x34d   :  { %v2521_v63 = vpop.f32.mrf.mxu2 }
 0x34e   :  { %v2522_v15 = vadd.f32 %v2521_v63, %v2473_v11  ;;  %v2570_v53 = vpop.f32.mrf.mxu3  ;;  %v2425_v59 = vpop.f32.mrf.mxu0  ;;  %v5049_v11 = vld [vmem:[#allocation3 + $0x1f0] sm:$0xf] }
 0x34f   :  { %v2426_v21 = vadd.f32 %v2425_v59, %v7406_v50  ;;  %v2474_v28 = vpop.f32.mrf.mxu1  ;;  %v5283_v59 = vld [vmem:[#allocation3 + $0xf4] sm:$0xf0] }
 0x350   :  { %v7631_v26 = vadd.f32 %v2570_v53, %v2522_v15  ;;  %v2475_v9 = vadd.f32 %v2474_v28, %v7589_v40  ;;  %v4921_v53 = vld [vmem:[#allocation3 + $0xf0] sm:$0xf] }
 0x351   :  { %vm2818_vm8 = vcmp.gt.f32.partialorder %v2426_v21, 0.0  ;;  %v2882_v3 = vmul.f32 0.01, %v2426_v21  ;;  %v4922_v28 = vor.u32 %v5283_v59, %v4921_v53  ;;  %v4905_v53 = vld [vmem:[#allocation3 + $0xd0] sm:$0xf] }
 0x352   :  { %v5279_v59 = vld [vmem:[#allocation3 + $0xd4] sm:$0xf0] }
 0x353   :  { %v2946_v47 = vsel %vm2818_vm8, %v2426_v21, %v2882_v3  ;;  %3459 = vmatpush.bf16.msrb.mxu1 %v4922_v28  ;;  %v4906_v28 = vor.u32 %v5279_v59, %v4905_v53  ;;  %v4817_v59 = vld [vmem:[#allocation3 + $0x20] sm:$0xf] }
 0x354   :  { %v7634_v23 = vpack.c.bf16 %v2946_v47, %v2942_v32 }
 0x355   :  { %v2523_v10 = vpop.f32.mrf.mxu2 }
 0x356   :  { %v2524_v17 = vadd.f32 %v2523_v10, %v2475_v9  ;;  %v2572_v60 = vpop.f32.mrf.mxu3  ;;  %v2428_v20 = vpop.f32.mrf.mxu0 }
 0x357   :  { %v2429_v35 = vadd.f32 %v2428_v20, %v7420_v7  ;;  %v2477_v37 = vpop.f32.mrf.mxu1 }
 0x358   :  { %v7637_v50 = vadd.f32 %v2572_v60, %v2524_v17  ;;  %v2478_v18 = vadd.f32 %v2477_v37, %v7589_v40 }
 0x359   :  { %2623 = vmatmul.bf16.gmra.mxu0 %v5779_v27  ;;  %v2886_v61 = vmul.f32 0.01, %v2429_v35  ;;  %vm2822_vm9 = vcmp.gt.f32.partialorder %v2429_v35, 0.0  ;;  %v4985_v27 = vld [vmem:[#allocation3 + $0x170] sm:$0xf] }
 0x35a   :  { %2672 = vmatmul.bf16.gmra.mxu1 %v6205_v45  ;;  %2721 = vmatmul.bf16.gmra.mxu2 %v8151_v12  ;;  %v4986_v43 = vor.u32 %v5299_v5, %v4985_v27  ;;  %v4857_v12 = vld [vmem:[#allocation3 + $0x70] sm:$0xf] }
 0x35b   :  { %4794 = vmatmul.msk.bf16.gmra.mxu3 %vm1399_vm0, %v8186_v2  ;;  %v5315_v2 = vld [vmem:[#allocation3 + $0x1f4] sm:$0xf0]  ;;  %v4858_v63 = vor.u32 %v5267_v34, %v4857_v12  ;;  %v5041_v12 = vld [vmem:[#allocation3 + $0x1e0] sm:$0xf]  ;;  %v5313_v34 = vld [vmem:[#allocation3 + $0x1e4] sm:$0xf0] }
 0x35c   :  { %3508 = vmatpush.bf16.msrb.mxu2 %v4986_v43  ;;  %v5050_v15 = vor.u32 %v5315_v2, %v5049_v11  ;;  %v4841_v11 = vld [vmem:[#allocation3 + $0x50] sm:$0xf]  ;;  %v5263_v2 = vld [vmem:[#allocation3 + $0x54] sm:$0xf0] }
 0x35d   :  { %v2526_v55 = vpop.f32.mrf.mxu2  ;;  %3410 = vmatpush.bf16.msrb.mxu0 %v4858_v63  ;;  %v5042_v63 = vor.u32 %v5313_v34, %v5041_v12  ;;  %v4889_v12 = vld [vmem:[#allocation3 + $0xb0] sm:$0xf]  ;;  %v5275_v34 = vld [vmem:[#allocation3 + $0xb4] sm:$0xf0] }
 0x35e   :  { %v2527_v31 = vadd.f32 %v2526_v55, %v2478_v18  ;;  %v2575_v57 = vpop.f32.mrf.mxu3  ;;  %v2430_v6 = vpop.f32.mrf.mxu0  ;;  %3557 = vmatpush.bf16.msrb.mxu3 %v5050_v15  ;;  %v4977_v18 = vld [vmem:[#allocation3 + $0x160] sm:$0xf]  ;;  %v5297_v55 = vld [vmem:[#allocation3 + $0x164] sm:$0xf0]  ;;  %v4842_v15 = vor.u32 %v5263_v2, %v4841_v11  ;;  %v4953_v11 = vld [vmem:[#allocation3 + $0x130] sm:$0xf] }
 0x35f   :  { %v2431_v7 = vadd.f32 %v2430_v6, %v7435_v54  ;;  %v2479_v0 = vpop.f32.mrf.mxu1  ;;  %v2950_v54 = vsel %vm2822_vm9, %v2429_v35, %v2886_v61  ;;  %v4978_v61 = vor.u32 %v5297_v55, %v4977_v18  ;;  %v5291_v2 = vld [vmem:[#allocation3 + $0x134] sm:$0xf0] }
 0x360   :  { %v7646_v33 = vadd.f32 %v2575_v57, %v2527_v31  ;;  %v2480_v21 = vadd.f32 %v2479_v0, %v7589_v40  ;;  %v4849_v31 = vld [vmem:[#allocation3 + $0x60] sm:$0xf] }
 0x361   :  { %vm2826_vm10 = vcmp.gt.f32.partialorder %v2431_v7, 0.0  ;;  %v2890_v45 = vmul.f32 0.01, %v2431_v7  ;;  %v4913_v0 = vld [vmem:[#allocation3 + $0xe0] sm:$0xf]  ;;  %3509 = vmatpush.bf16.msrb.mxu2 %v4978_v61 }
 0x362   :  { %3558 = vmatpush.bf16.msrb.mxu3 %v5042_v63  ;;  %v4890_v63 = vor.u32 %v5275_v34, %v4889_v12 }
 0x363   :  { %v2954_v49 = vsel %vm2826_vm10, %v2431_v7, %v2890_v45  ;;  %v5265_v7 = vld [vmem:[#allocation3 + $0x64] sm:$0xf0] }
 0x364   :  { %v7650_v3 = vpack.c.bf16 %v2954_v49, %v2950_v54  ;;  %v4850_v45 = vor.u32 %v5265_v7, %v4849_v31 }
 0x365   :  { %v2528_v32 = vpop.f32.mrf.mxu2 }
 0x366   :  { %v2529_v47 = vadd.f32 %v2528_v32, %v2480_v21  ;;  %v2577_v9 = vpop.f32.mrf.mxu3  ;;  %v2433_v10 = vpop.f32.mrf.mxu0  ;;  %3411 = vmatpush.bf16.msrb.mxu0 %v4850_v45  ;;  %v5295_v32 = vld [vmem:[#allocation3 + $0x154] sm:$0xf0]  ;;  %v8198_v45 = vld [vmem:[#allocation38_spill] sm:$0xff] }
 0x367   :  { %v2434_v17 = vadd.f32 %v2433_v10, %v7449_v36  ;;  %v2482_v60 = vpop.f32.mrf.mxu1 }
 0x368   :  { %v7653_v20 = vadd.f32 %v2577_v9, %v2529_v47  ;;  %v2483_v35 = vadd.f32 %v2482_v60, %v7589_v40  ;;  %v4833_v60 = vld [vmem:[#allocation3 + $0x40] sm:$0xf] }
 0x369   :  { %2628 = vmatmul.bf16.gmra.mxu0 %v5833_v56  ;;  %v5281_v56 = vld [vmem:[#allocation3 + $0xe4] sm:$0xf0]  ;;  %v2894_v27 = vmul.f32 0.01, %v2434_v17  ;;  %vm2830_vm11 = vcmp.gt.f32.partialorder %v2434_v17, 0.0 }
 0x36a   :  { %2677 = vmatmul.bf16.gmra.mxu1 %v8167_v4  ;;  %2726 = vmatmul.bf16.gmra.mxu2 %v8154_v52  ;;  %v4914_v52 = vor.u32 %v5281_v56, %v4913_v0 }
 0x36b   :  { %4795 = vmatmul.msk.bf16.gmra.mxu3 %vm1399_vm0, %v8189_v39  ;;  %v2958_v54 = vsel %vm2830_vm11, %v2434_v17, %v2894_v27  ;;  %3412 = vmatpush.bf16.msrb.mxu0 %v4842_v15  ;;  %v5277_v17 = vld [vmem:[#allocation3 + $0xc4] sm:$0xf0]  ;;  %v4954_v15 = vor.u32 %v5291_v2, %v4953_v11 }
 0x36c   :  { %3460 = vmatpush.bf16.msrb.mxu1 %v4914_v52  ;;  %v8197_v27 = vld [vmem:[#allocation21_spill] sm:$0xff]  ;;  %v8199_v52 = vld [vmem:[#allocation39_spill] sm:$0xff] }
 0x36d   :  { %v2531_v37 = vpop.f32.mrf.mxu2 }
 0x36e   :  { %v2532_v57 = vadd.f32 %v2531_v37, %v2483_v35  ;;  %v2580_v36 = vpop.f32.mrf.mxu3  ;;  %v2435_v6 = vpop.f32.mrf.mxu0  ;;  %v5261_v35 = vld [vmem:[#allocation3 + $0x44] sm:$0xf0]  ;;  %v4897_v37 = vld [vmem:[#allocation3 + $0xc0] sm:$0xf] }
 0x36f   :  { %v2436_v5 = vadd.f32 %v2435_v6, %v7482_v41  ;;  %v2484_v4 = vpop.f32.mrf.mxu1  ;;  %v4969_v41 = vld [vmem:[#allocation3 + $0x150] sm:$0xf]  ;;  %v4834_v7 = vor.u32 %v5261_v35, %v4833_v60  ;;  %v4898_v0 = vor.u32 %v5277_v17, %v4897_v37 }
 0x370   :  { %v7662_v43 = vadd.f32 %v2580_v36, %v2532_v57  ;;  %v2485_v21 = vadd.f32 %v2484_v4, %v7589_v40  ;;  %v4970_v10 = vor.u32 %v5295_v32, %v4969_v41  ;;  %3461 = vmatpush.bf16.msrb.mxu1 %v4906_v28  ;;  %v4961_v57 = vld [vmem:[#allocation3 + $0x140] sm:$0xf]  ;;  %v5293_v36 = vld [vmem:[#allocation3 + $0x144] sm:$0xf0] }
 0x371   :  { %vm2834_vm12 = vcmp.gt.f32.partialorder %v2436_v5, 0.0  ;;  %v2898_v39 = vmul.f32 0.01, %v2436_v5  ;;  %v4962_v56 = vor.u32 %v5293_v36, %v4961_v57  ;;  %3413 = vmatpush.bf16.msrb.mxu0 %v4834_v7  ;;  %v5257_v41 = vld [vmem:[#allocation3 + $0x24] sm:$0xf0] }
 0x372   :  { %3510 = vmatpush.bf16.msrb.mxu2 %v4970_v10  ;;  %v5273_v32 = vld [vmem:[#allocation3 + $0xa4] sm:$0xf0]  ;;  %v4818_v37 = vor.u32 %v5257_v41, %v4817_v59  ;;  %v5311_v7 = vld [vmem:[#allocation3 + $0x1d4] sm:$0xf0]  ;;  %v4865_v59 = vld [vmem:[#allocation3 + $0x80] sm:$0xf] }
 0x373   :  { %v2962_v49 = vsel %vm2834_vm12, %v2436_v5, %v2898_v39  ;;  %v4825_v5 = vld [vmem:[#allocation3 + $0x30] sm:$0xf]  ;;  %v5259_v39 = vld [vmem:[#allocation3 + $0x34] sm:$0xf0]  ;;  %v5289_v10 = vld [vmem:[#allocation3 + $0x124] sm:$0xf0] }
 0x374   :  { %v7666_v47 = vpack.c.bf16 %v2962_v49, %v2958_v54  ;;  %3462 = vmatpush.bf16.msrb.mxu1 %v4898_v0  ;;  %v4881_v54 = vld [vmem:[#allocation3 + $0xa0] sm:$0xf]  ;;  %v4809_v0 = vld [vmem:[#allocation3 + $0x10] sm:$0xf] }
 0x375   :  { %v2533_v9 = vpop.f32.mrf.mxu2  ;;  %v4882_v17 = vor.u32 %v5273_v32, %v4881_v54 }
 0x376   :  { %v7668_v18 = vadd.f32 %v2533_v9, %v2485_v21  ;;  %v7670_v55 = vpop.f32.mrf.mxu3  ;;  %v2438_v31 = vpop.f32.mrf.mxu0  ;;  %3511 = vmatpush.bf16.msrb.mxu2 %v4962_v56  ;;  %v4945_v9 = vld [vmem:[#allocation3 + $0x120] sm:$0xf]  ;;  %v5255_v56 = vld [vmem:[#allocation3 + $0x14] sm:$0xf0] }
 0x377   :  { %v2439_v6 = vadd.f32 %v2438_v31, %v7526_v48  ;;  %v2487_v61 = vpop.f32.mrf.mxu1  ;;  %v4826_v48 = vor.u32 %v5259_v39, %v4825_v5  ;;  %v4946_v57 = vor.u32 %v5289_v10, %v4945_v9  ;;  %v4810_v5 = vor.u32 %v5255_v56, %v4809_v0  ;;  %v5307_v0 = vld [vmem:[#allocation3 + $0x1b4] sm:$0xf0] }
 0x378   :  { %v2488_v4 = vadd.f32 %v2487_v61, %v7589_v40  ;;  %3463 = vmatpush.bf16.msrb.mxu1 %v4890_v63  ;;  %v5033_v61 = vld [vmem:[#allocation3 + $0x1d0] sm:$0xf] }
 0x379   :  { %2633 = vmatmul.bf16.gmra.mxu0 %v8197_v27  ;;  %v2902_v60 = vmul.f32 0.01, %v2439_v6  ;;  %vm2838_vm13 = vcmp.gt.f32.partialorder %v2439_v6, 0.0  ;;  %v5034_v27 = vor.u32 %v5311_v7, %v5033_v61  ;;  %v5017_v7 = vld [vmem:[#allocation3 + $0x1b0] sm:$0xf] }
 0x37a   :  { %2682 = vmatmul.bf16.gmra.mxu1 %v8198_v45  ;;  %2731 = vmatmul.bf16.gmra.mxu2 %v8199_v52  ;;  %v4937_v45 = vld [vmem:[#allocation3 + $0x110] sm:$0xf] }
 0x37b   :  { %4796 = vmatmul.msk.bf16.gmra.mxu3 %vm1399_vm0, %v8192_v42  ;;  %3414 = vmatpush.bf16.msrb.mxu0 %v4826_v48  ;;  %v2966_v52 = vsel %vm2838_vm13, %v2439_v6, %v2902_v60  ;;  %v5287_v48 = vld [vmem:[#allocation3 + $0x114] sm:$0xf0] }
 0x37c   :  { %3512 = vmatpush.bf16.msrb.mxu2 %v4954_v15  ;;  %3464 = vmatpush.bf16.msrb.mxu1 %v4882_v17  ;;  %v4938_v63 = vor.u32 %v5287_v48, %v4937_v45  ;;  %v4801_v15 = vld [vmem:[#allocation3] sm:$0xf]  ;;  %v5309_v17 = vld [vmem:[#allocation3 + $0x1c4] sm:$0xf0] }
 0x37d   :  { %v2536_v53 = vpop.f32.mrf.mxu2  ;;  %3559 = vmatpush.bf16.msrb.mxu3 %v5034_v27  ;;  %v5018_v27 = vor.u32 %v5307_v0, %v5017_v7 }
 0x37e   :  { %v2537_v49 = vadd.f32 %v2536_v53, %v2488_v4  ;;  %v2585_v21 = vpop.f32.mrf.mxu3  ;;  %v2440_v28 = vpop.f32.mrf.mxu0  ;;  %v5271_v4 = vld [vmem:[#allocation3 + $0x94] sm:$0xf0]  ;;  %v5253_v53 = vld [vmem:[#allocation3 + $0x4] sm:$0xf0] }
 0x37f   :  { %v2441_v42 = vadd.f32 %v2440_v28, %v7565_v14  ;;  %v2489_v35 = vpop.f32.mrf.mxu1  ;;  %3415 = vmatpush.bf16.msrb.mxu0 %v4818_v37  ;;  %v4873_v14 = vld [vmem:[#allocation3 + $0x90] sm:$0xf]  ;;  %v5285_v28 = vld [vmem:[#allocation3 + $0x104] sm:$0xf0]  ;;  %v4802_v10 = vor.u32 %v5253_v53, %v4801_v15  ;;  %v5025_v37 = vld [vmem:[#allocation3 + $0x1c0] sm:$0xf] }
 0x380   :  { %v7680_v31 = vadd.f32 %v2585_v21, %v2537_v49  ;;  %v2490_v12 = vadd.f32 %v2489_v35, %v7589_v40  ;;  %3513 = vmatpush.bf16.msrb.mxu2 %v4946_v57  ;;  %v4874_v34 = vor.u32 %v5271_v4, %v4873_v14  ;;  %v5269_v49 = vld [vmem:[#allocation3 + $0x84] sm:$0xf0]  ;;  %v4929_v21 = vld [vmem:[#allocation3 + $0x100] sm:$0xf]  ;;  %v5001_v15 = vld [vmem:[#allocation3 + $0x190] sm:$0xf] }
 0x381   :  { %vm2842_vm14 = vcmp.gt.f32.partialorder %v2441_v42, 0.0  ;;  %v2906_v36 = vmul.f32 0.01, %v2441_v42  ;;  %v4866_v60 = vor.u32 %v5269_v49, %v4865_v59  ;;  %v5009_v14 = vld [vmem:[#allocation3 + $0x1a0] sm:$0xf] }
 0x382   :  { %3465 = vmatpush.bf16.msrb.mxu1 %v4874_v34  ;;  %v5305_v4 = vld [vmem:[#allocation3 + $0x1a4] sm:$0xf0]  ;;  %v5303_v53 = vld [vmem:[#allocation3 + $0x194] sm:$0xf0] }
 0x383   :  { %v2970_v39 = vsel %vm2842_vm14, %v2441_v42, %v2906_v36  ;;  %3416 = vmatpush.bf16.msrb.mxu0 %v4810_v5  ;;  %v4930_v42 = vor.u32 %v5285_v28, %v4929_v21  ;;  %v5010_v45 = vor.u32 %v5305_v4, %v5009_v14  ;;  %v5002_v49 = vor.u32 %v5303_v53, %v5001_v15  ;;  %v8200_v21 = vld [vmem:[#allocation26_spill] sm:$0xff] }
 0x384   :  { %v7684_v11 = vpack.c.bf16 %v2970_v39, %v2966_v52  ;;  %3514 = vmatpush.bf16.msrb.mxu2 %v4938_v63 }
 0x385   :  { %v2538_v2 = vpop.f32.mrf.mxu2 }
 0x386   :  { %v7686_v41 = vadd.f32 %v2538_v2, %v2490_v12  ;;  %v7688_v54 = vpop.f32.mrf.mxu3  ;;  %v2443_v6 = vpop.f32.mrf.mxu0  ;;  %3466 = vmatpush.bf16.msrb.mxu1 %v4866_v60  ;;  %v5301_v60 = vld [vmem:[#allocation3 + $0x184] sm:$0xf0] }
 0x387   :  { %v2444_v32 = vadd.f32 %v2443_v6, %v7573_v1  ;;  %v2492_v9 = vpop.f32.mrf.mxu1  ;;  %3417 = vmatpush.bf16.msrb.mxu0 %v4802_v10  ;;  %v5026_v1 = vor.u32 %v5309_v17, %v5025_v37  ;;  %v4993_v10 = vld [vmem:[#allocation3 + $0x180] sm:$0xf] }
 0x388   :  { %v2493_v35 = vadd.f32 %v2492_v9, %v7589_v40  ;;  %3515 = vmatpush.bf16.msrb.mxu2 %v4930_v42  ;;  %v8202_v9 = vld [vmem:[#allocation43_spill] sm:$0xff]  ;;  %v4994_v42 = vor.u32 %v5301_v60, %v4993_v10  ;;  %v8205_v10 = vld [vmem:[#allocation46_spill] sm:$0xff] }
 0x389   :  { %2638 = vmatmul.bf16.gmra.mxu0 %v8171_v58  ;;  %3560 = vmatpush.bf16.msrb.mxu3 %v5026_v1  ;;  %v2910_v56 = vmul.f32 0.01, %v2444_v32  ;;  %vm2846_vm15 = vcmp.gt.f32.partialorder %v2444_v32, 0.0 }
 0x38a   :  { %2687 = vmatmul.bf16.gmra.mxu1 %v8172_v30  ;;  %2736 = vmatmul.bf16.gmra.mxu2 %v6465_v46 }
 0x38b   :  { %4797 = vmatmul.msk.bf16.gmra.mxu3 %vm1399_vm0, %v6467_v16  ;;  %v2974_v52 = vsel %vm2846_vm15, %v2444_v32, %v2910_v56  ;;  %v8201_v32 = vld [vmem:[#allocation42_spill] sm:$0xff] }
 0x38d   :  { %v2541_v57 = vpop.f32.mrf.mxu2  ;;  %3561 = vmatpush.bf16.msrb.mxu3 %v5018_v27 }
 0x38e   :  { %v2542_v36 = vadd.f32 %v2541_v57, %v2493_v35  ;;  %v2590_v61 = vpop.f32.mrf.mxu3  ;;  %v2445_v58 = vpop.f32.mrf.mxu0 }
 0x38f   :  { %v2446_v30 = vadd.f32 %v2445_v58, %v7576_v24  ;;  %v2494_v46 = vpop.f32.mrf.mxu1 }
 0x390   :  { %v7698_v5 = vadd.f32 %v2590_v61, %v2542_v36  ;;  %v2495_v12 = vadd.f32 %v2494_v46, %v7589_v40 }
 0x391   :  { %vm2850_vm1 = vcmp.gt.f32.partialorder %v2446_v30, 0.0  ;;  %v2914_v16 = vmul.f32 0.01, %v2446_v30  ;;  %3562 = vmatpush.bf16.msrb.mxu3 %v5010_v45  ;;  %v8204_v45 = vld [vmem:[#allocation29_spill] sm:$0xff] }
 0x393   :  { %v2978_v39 = vsel %vm2850_vm1, %v2446_v30, %v2914_v16 }
 0x394   :  { %v7701_v34 = vpack.c.bf16 %v2978_v39, %v2974_v52 }
 0x395   :  { %v2543_v48 = vpop.f32.mrf.mxu2  ;;  %3563 = vmatpush.bf16.msrb.mxu3 %v5002_v49 }
 0x396   :  { %v7703_v24 = vadd.f32 %v2543_v48, %v2495_v12  ;;  %v7705_v2 = vpop.f32.mrf.mxu3  ;;  %v2448_v63 = vpop.f32.mrf.mxu0 }
 0x397   :  { %v2449_v59 = vadd.f32 %v2448_v63, %v7584_v13  ;;  %v2497_v6 = vpop.f32.mrf.mxu1 }
 0x398   :  { %v2498_v28 = vadd.f32 %v2497_v6, %v7589_v40 }
 0x399   :  { %2643 = vmatmul.bf16.gmra.mxu0 %v8200_v21  ;;  %3564 = vmatpush.bf16.msrb.mxu3 %v4994_v42  ;;  %v2918_v1 = vmul.f32 0.01, %v2449_v59  ;;  %vm2854_vm2 = vcmp.gt.f32.partialorder %v2449_v59, 0.0 }
 0x39a   :  { %2692 = vmatmul.bf16.gmra.mxu1 %v8201_v32  ;;  %2741 = vmatmul.bf16.gmra.mxu2 %v8202_v9 }
 0x39b   :  { %4798 = vmatmul.msk.bf16.gmra.mxu3 %vm1399_vm0, %v8161_v8  ;;  %v2982_v7 = vsel %vm2854_vm2, %v2449_v59, %v2918_v1 }
 0x39d   :  { %v2546_v35 = vpop.f32.mrf.mxu2 }
 0x39e   :  { %v2547_v13 = vadd.f32 %v2546_v35, %v2498_v28  ;;  %v2595_v37 = vpop.f32.mrf.mxu3  ;;  %v2450_v17 = vpop.f32.mrf.mxu0  ;;  %v8206_v35 = vld [vmem:[#allocation31_spill] sm:$0xff] }
 0x39f   :  { %v2451_v57 = vadd.f32 %v2450_v17, %v7592_v51  ;;  %v2499_v36 = vpop.f32.mrf.mxu1  ;;  %v8203_v51 = vld [vmem:[#allocation45_spill] sm:$0xff] }
 0x3a0   :  { %v7715_v61 = vadd.f32 %v2595_v37, %v2547_v13  ;;  %v2500_v56 = vadd.f32 %v2499_v36, %v7589_v40 }
 0x3a1   :  { %vm2858_vm3 = vcmp.gt.f32.partialorder %v2451_v57, 0.0  ;;  %v2922_v58 = vmul.f32 0.01, %v2451_v57 }
 0x3a3   :  { %v2986_v0 = vsel %vm2858_vm3, %v2451_v57, %v2922_v58 }
 0x3a4   :  { %v7718_v8 = vpack.c.bf16 %v2986_v0, %v2982_v7 }
 0x3a5   :  { %v2548_v30 = vpop.f32.mrf.mxu2 }
 0x3a6   :  { %v7720_v46 = vadd.f32 %v2548_v30, %v2500_v56  ;;  %v7722_v27 = vpop.f32.mrf.mxu3  ;;  %v2609_v16 = vpop.f32.mrf.mxu0 }
 0x3a7   :  { %v2658_v14 = vpop.f32.mrf.mxu1  ;;  %v2610_v4 = vadd.f32 %v2609_v16, %v7601_v38 }
 0x3a9   :  { %3418 = vmatmul.bf16.vlgmr.msrb.gmra.mxu0 %v8203_v51  ;;  %v2659_v39 = vadd.f32 %v2658_v14, %v2610_v4 }
 0x3aa   :  { %3467 = vmatmul.bf16.vlgmr.msrb.gmra.mxu1 %v8204_v45  ;;  %3516 = vmatmul.bf16.vlgmr.msrb.gmra.mxu2 %v7603_v29 }
 0x3ad   :  { %v2707_v52 = vpop.f32.mrf.mxu2 }
 0x3ae   :  { %v2756_v40 = vpop.f32.mrf.mxu3  ;;  %v2611_v12 = vpop.f32.mrf.mxu0  ;;  %v2708_v63 = vadd.f32 %v2707_v52, %v2659_v39 }
 0x3af   :  { %v2660_v48 = vpop.f32.mrf.mxu1  ;;  %v2612_v15 = vadd.f32 %v2611_v12, %v7607_v19  ;;  %v8207_v12 = vld [vmem:[#allocation47_spill] sm:$0xff] }
 0x3b0   :  { %v2757_v53 = vadd.f32 %v2756_v40, %v2708_v63 }
 0x3b1   :  { %v2661_v59 = vadd.f32 %v2660_v48, %v2612_v15  ;;  %v8208_v15 = vld [vmem:[#allocation33_spill] sm:$0xff] }
 0x3b2   :  { %v2863_v38 = vmul.f32 0.01, %v2757_v53  ;;  %vm2799_vm0 = vcmp.gt.f32.partialorder %v2757_v53, 0.0 }
 0x3b4   :  { %v2927_v19 = vsel %vm2799_vm0, %v2757_v53, %v2863_v38 }
 0x3b5   :  { %v2709_v6 = vpop.f32.mrf.mxu2 }
 0x3b6   :  { %v2710_v49 = vadd.f32 %v2709_v6, %v2661_v59  ;;  %v2758_v21 = vpop.f32.mrf.mxu3  ;;  %v2614_v28 = vpop.f32.mrf.mxu0 }
 0x3b7   :  { %v2663_v32 = vpop.f32.mrf.mxu1  ;;  %v2615_v42 = vadd.f32 %v2614_v28, %v7616_v22 }
 0x3b8   :  { %v2759_v9 = vadd.f32 %v2758_v21, %v2710_v49 }
 0x3b9   :  { %3423 = vmatmul.bf16.gmra.mxu0 %v8205_v10  ;;  %v2664_v1 = vadd.f32 %v2663_v32, %v2615_v42 }
 0x3ba   :  { %vm2803_vm4 = vcmp.gt.f32.partialorder %v2759_v9, 0.0  ;;  %v2867_v60 = vmul.f32 0.01, %v2759_v9  ;;  %3472 = vmatmul.bf16.gmra.mxu1 %v8206_v35  ;;  %3521 = vmatmul.bf16.gmra.mxu2 %v7619_v62 }
 0x3bc   :  { %v2931_v13 = vsel %vm2803_vm4, %v2759_v9, %v2867_v60 }
 0x3bd   :  { %v7733_v37 = vpack.c.bf16 %v2931_v13, %v2927_v19  ;;  %v2712_v17 = vpop.f32.mrf.mxu2 }
 0x3be   :  { %v2761_v57 = vpop.f32.mrf.mxu3  ;;  %v2616_v36 = vpop.f32.mrf.mxu0  ;;  %v2713_v7 = vadd.f32 %v2712_v17, %v2664_v1 }
 0x3bf   :  { %v2665_v58 = vpop.f32.mrf.mxu1  ;;  %3565 = vmatmul.bf16.vlgmr.msrb.gmra.mxu3 %v7733_v37  ;;  %v2617_v0 = vadd.f32 %v2616_v36, %v7622_v25 }
 0x3c0   :  { %v2762_v56 = vadd.f32 %v2761_v57, %v2713_v7 }
 0x3c1   :  { %v2666_v22 = vadd.f32 %v2665_v58, %v2617_v0  ;;  %v8209_v58 = vld [vmem:[#allocation48_spill] sm:$0xff] }
 0x3c2   :  { %v2871_v39 = vmul.f32 0.01, %v2762_v56  ;;  %vm2807_vm5 = vcmp.gt.f32.partialorder %v2762_v56, 0.0 }
 0x3c4   :  { %v2935_v25 = vsel %vm2807_vm5, %v2762_v56, %v2871_v39  ;;  %v8210_v56 = vld [vmem:[#allocation36_spill] sm:$0xff] }
 0x3c5   :  { %v2714_v30 = vpop.f32.mrf.mxu2 }
 0x3c6   :  { %v2715_v16 = vadd.f32 %v2714_v30, %v2666_v22  ;;  %v2763_v14 = vpop.f32.mrf.mxu3  ;;  %v2619_v4 = vpop.f32.mrf.mxu0 }
 0x3c7   :  { %v2668_v52 = vpop.f32.mrf.mxu1  ;;  %v2620_v63 = vadd.f32 %v2619_v4, %v7631_v26 }
 0x3c8   :  { %v2764_v40 = vadd.f32 %v2763_v14, %v2715_v16 }
 0x3c9   :  { %3428 = vmatmul.bf16.gmra.mxu0 %v8207_v12  ;;  %v2669_v49 = vadd.f32 %v2668_v52, %v2620_v63  ;;  %v5298_v63 = vld [vmem:[#allocation3 + $0x174] sm:$0xf] }
 0x3ca   :  { %vm2811_vm6 = vcmp.gt.f32.partialorder %v2764_v40, 0.0  ;;  %v2875_v48 = vmul.f32 0.01, %v2764_v40  ;;  %3477 = vmatmul.bf16.gmra.mxu1 %v8208_v15  ;;  %3526 = vmatmul.bf16.gmra.mxu2 %v7634_v23 }
 0x3cc   :  { %v2939_v53 = vsel %vm2811_vm6, %v2764_v40, %v2875_v48 }
 0x3cd   :  { %v2717_v59 = vpop.f32.mrf.mxu2  ;;  %v7741_v6 = vpack.c.bf16 %v2939_v53, %v2935_v25  ;;  %v5266_v25 = vld [vmem:[#allocation3 + $0x74] sm:$0xf]  ;;  %v4859_v53 = vld [vmem:[#allocation3 + $0x78] sm:$0xf0] }
 0x3ce   :  { %v2766_v21 = vpop.f32.mrf.mxu3  ;;  %v2621_v28 = vpop.f32.mrf.mxu0  ;;  %v2718_v38 = vadd.f32 %v2717_v59, %v2669_v49 }
 0x3cf   :  { %v2670_v32 = vpop.f32.mrf.mxu1  ;;  %3570 = vmatmul.bf16.gmra.mxu3 %v7741_v6  ;;  %v2622_v9 = vadd.f32 %v2621_v28, %v7637_v50  ;;  %v4862_v28 = vor.u32 %v5266_v25, %v4859_v53 }
 0x3d0   :  { %v2767_v60 = vadd.f32 %v2766_v21, %v2718_v38  ;;  %v5051_v38 = vld [vmem:[#allocation3 + $0x1f8] sm:$0xf0] }
 0x3d1   :  { %v2671_v26 = vadd.f32 %v2670_v32, %v2622_v9  ;;  %v5314_v32 = vld [vmem:[#allocation3 + $0x1f4] sm:$0xf]  ;;  %3606 = vmatpush.bf16.msra.mxu0 %v4862_v28  ;;  %v4915_v28 = vld [vmem:[#allocation3 + $0xe8] sm:$0xf0] }
 0x3d2   :  { %v2879_v57 = vmul.f32 0.01, %v2767_v60  ;;  %vm2815_vm7 = vcmp.gt.f32.partialorder %v2767_v60, 0.0  ;;  %v5282_v9 = vld [vmem:[#allocation3 + $0xf4] sm:$0xf] }
 0x3d4   :  { %v2943_v50 = vsel %vm2815_vm7, %v2767_v60, %v2879_v57 }
 0x3d5   :  { %v2719_v42 = vpop.f32.mrf.mxu2 }
 0x3d6   :  { %v2720_v19 = vadd.f32 %v2719_v42, %v2671_v26  ;;  %v2768_v13 = vpop.f32.mrf.mxu3  ;;  %v2624_v17 = vpop.f32.mrf.mxu0  ;;  %v5054_v26 = vor.u32 %v5314_v32, %v5051_v38  ;;  %v4923_v42 = vld [vmem:[#allocation3 + $0xf8] sm:$0xf0] }
 0x3d7   :  { %v2673_v1 = vpop.f32.mrf.mxu1  ;;  %v2625_v0 = vadd.f32 %v2624_v17, %v7646_v33  ;;  %v4987_v33 = vld [vmem:[#allocation3 + $0x178] sm:$0xf0] }
 0x3d8   :  { %v2769_v36 = vadd.f32 %v2768_v13, %v2720_v19  ;;  %v4990_v21 = vor.u32 %v5298_v63, %v4987_v33  ;;  %3753 = vmatpush.bf16.msra.mxu3 %v5054_v26  ;;  %v2583_v63 = vadd.f32 %v7670_v55, %v7668_v18  ;;  %v5262_v26 = vld [vmem:[#allocation3 + $0x54] sm:$0xf]  ;;  %v5312_v55 = vld [vmem:[#allocation3 + $0x1e4] sm:$0xf] }
 0x3d9   :  { %3433 = vmatmul.bf16.gmra.mxu0 %v8209_v58  ;;  %v2674_v14 = vadd.f32 %v2673_v1, %v2625_v0  ;;  %v5278_v18 = vld [vmem:[#allocation3 + $0xd4] sm:$0xf] }
 0x3da   :  { %vm2819_vm8 = vcmp.gt.f32.partialorder %v2769_v36, 0.0  ;;  %v2883_v7 = vmul.f32 0.01, %v2769_v36  ;;  %3482 = vmatmul.bf16.gmra.mxu1 %v8210_v56  ;;  %3531 = vmatmul.bf16.gmra.mxu2 %v7650_v3 }
 0x3db   :  { %3704 = vmatpush.bf16.msra.mxu2 %v4990_v21  ;;  %v5280_v21 = vld [vmem:[#allocation3 + $0xe4] sm:$0xf] }
 0x3dc   :  { %v2947_v22 = vsel %vm2819_vm8, %v2769_v36, %v2883_v7  ;;  %v8211_v7 = vld [vmem:[#allocation49_spill] sm:$0xff]  ;;  %v4918_v38 = vor.u32 %v5280_v21, %v4915_v28 }
 0x3dd   :  { %v2722_v30 = vpop.f32.mrf.mxu2  ;;  %v7749_v16 = vpack.c.bf16 %v2947_v22, %v2943_v50  ;;  %v8212_v22 = vld [vmem:[#allocation44_spill] sm:$0xff] }
 0x3de   :  { %v2771_v4 = vpop.f32.mrf.mxu3  ;;  %v2626_v52 = vpop.f32.mrf.mxu0  ;;  %v2723_v40 = vadd.f32 %v2722_v30, %v2674_v14 }
 0x3df   :  { %v2675_v39 = vpop.f32.mrf.mxu1  ;;  %3575 = vmatmul.bf16.gmra.mxu3 %v7749_v16  ;;  %v2627_v48 = vadd.f32 %v2626_v52, %v7653_v20  ;;  %v4926_v20 = vor.u32 %v5282_v9, %v4923_v42  ;;  %v4843_v42 = vld [vmem:[#allocation3 + $0x58] sm:$0xf0] }
 0x3e0   :  { %v2772_v59 = vadd.f32 %v2771_v4, %v2723_v40  ;;  %v4979_v40 = vld [vmem:[#allocation3 + $0x168] sm:$0xf0] }
 0x3e1   :  { %v2676_v49 = vadd.f32 %v2675_v39, %v2627_v48  ;;  %3655 = vmatpush.bf16.msra.mxu1 %v4926_v20  ;;  %v5296_v39 = vld [vmem:[#allocation3 + $0x164] sm:$0xf]  ;;  %v5294_v20 = vld [vmem:[#allocation3 + $0x154] sm:$0xf] }
 0x3e2   :  { %v2887_v57 = vmul.f32 0.01, %v2772_v59  ;;  %vm2823_vm9 = vcmp.gt.f32.partialorder %v2772_v59, 0.0  ;;  %v5264_v48 = vld [vmem:[#allocation3 + $0x64] sm:$0xf] }
 0x3e4   :  { %v2951_v30 = vsel %vm2823_vm9, %v2772_v59, %v2887_v57 }
 0x3e5   :  { %v2724_v60 = vpop.f32.mrf.mxu2  ;;  %3656 = vmatpush.bf16.msra.mxu1 %v4918_v38 }
 0x3e6   :  { %v2725_v19 = vadd.f32 %v2724_v60, %v2676_v49  ;;  %v2773_v13 = vpop.f32.mrf.mxu3  ;;  %v2629_v17 = vpop.f32.mrf.mxu0  ;;  %v4982_v49 = vor.u32 %v5296_v39, %v4979_v40  ;;  %v4835_v39 = vld [vmem:[#allocation3 + $0x48] sm:$0xf0]  ;;  %v5276_v40 = vld [vmem:[#allocation3 + $0xc4] sm:$0xf] }
 0x3e7   :  { %v2678_v1 = vpop.f32.mrf.mxu1  ;;  %v2630_v50 = vadd.f32 %v2629_v17, %v7662_v43  ;;  %v4851_v43 = vld [vmem:[#allocation3 + $0x68] sm:$0xf0]  ;;  %v4907_v17 = vld [vmem:[#allocation3 + $0xd8] sm:$0xf0] }
 0x3e8   :  { %v2774_v36 = vadd.f32 %v2773_v13, %v2725_v19  ;;  %v4854_v59 = vor.u32 %v5264_v48, %v4851_v43  ;;  %3705 = vmatpush.bf16.msra.mxu2 %v4982_v49  ;;  %v4846_v19 = vor.u32 %v5262_v26, %v4843_v42  ;;  %v5043_v13 = vld [vmem:[#allocation3 + $0x1e8] sm:$0xf0]  ;;  %v5292_v49 = vld [vmem:[#allocation3 + $0x144] sm:$0xf]  ;;  %v5258_v26 = vld [vmem:[#allocation3 + $0x34] sm:$0xf] }
 0x3e9   :  { %3438 = vmatmul.bf16.gmra.mxu0 %v8211_v7  ;;  %v2679_v33 = vadd.f32 %v2678_v1, %v2630_v50  ;;  %v4971_v50 = vld [vmem:[#allocation3 + $0x158] sm:$0xf0]  ;;  %v4963_v43 = vld [vmem:[#allocation3 + $0x148] sm:$0xf0] }
 0x3ea   :  { %vm2827_vm10 = vcmp.gt.f32.partialorder %v2774_v36, 0.0  ;;  %v2891_v0 = vmul.f32 0.01, %v2774_v36  ;;  %3487 = vmatmul.bf16.gmra.mxu1 %v8212_v22  ;;  %3536 = vmatmul.bf16.gmra.mxu2 %v7666_v47  ;;  %v4966_v38 = vor.u32 %v5292_v49, %v4963_v43  ;;  %v4827_v42 = vld [vmem:[#allocation3 + $0x38] sm:$0xf0] }
 0x3eb   :  { %3607 = vmatpush.bf16.msra.mxu0 %v4854_v59  ;;  %v4883_v49 = vld [vmem:[#allocation3 + $0xa8] sm:$0xf0]  ;;  %v5288_v43 = vld [vmem:[#allocation3 + $0x124] sm:$0xf] }
 0x3ec   :  { %v2955_v14 = vsel %vm2827_vm10, %v2774_v36, %v2891_v0  ;;  %v5046_v36 = vor.u32 %v5312_v55, %v5043_v13  ;;  %v4910_v0 = vor.u32 %v5278_v18, %v4907_v17  ;;  %v5274_v18 = vld [vmem:[#allocation3 + $0xb4] sm:$0xf]  ;;  %v4891_v13 = vld [vmem:[#allocation3 + $0xb8] sm:$0xf0]  ;;  %v4830_v17 = vor.u32 %v5258_v26, %v4827_v42 }
 0x3ed   :  { %v2727_v4 = vpop.f32.mrf.mxu2  ;;  %v7757_v52 = vpack.c.bf16 %v2955_v14, %v2951_v30  ;;  %v4974_v14 = vor.u32 %v5294_v20, %v4971_v50  ;;  %v5290_v20 = vld [vmem:[#allocation3 + $0x134] sm:$0xf]  ;;  %v4811_v26 = vld [vmem:[#allocation3 + $0x18] sm:$0xf0] }
 0x3ee   :  { %v2776_v25 = vpop.f32.mrf.mxu3  ;;  %v2631_v53 = vpop.f32.mrf.mxu0  ;;  %v2728_v9 = vadd.f32 %v2727_v4, %v2679_v33  ;;  %v5260_v4 = vld [vmem:[#allocation3 + $0x44] sm:$0xf]  ;;  %3754 = vmatpush.bf16.msra.mxu3 %v5046_v36  ;;  %3657 = vmatpush.bf16.msra.mxu1 %v4910_v0  ;;  %v4894_v0 = vor.u32 %v5274_v18, %v4891_v13  ;;  %v5270_v42 = vld [vmem:[#allocation3 + $0x94] sm:$0xf]  ;;  %v5035_v18 = vld [vmem:[#allocation3 + $0x1d8] sm:$0xf0] }
 0x3ef   :  { %v2680_v32 = vpop.f32.mrf.mxu1  ;;  %3580 = vmatmul.bf16.gmra.mxu3 %v7757_v52  ;;  %v2632_v60 = vadd.f32 %v2631_v53, %v2583_v63  ;;  %3608 = vmatpush.bf16.msra.mxu0 %v4846_v19  ;;  %v4899_v53 = vld [vmem:[#allocation3 + $0xc8] sm:$0xf0]  ;;  %v8214_v19 = vld [vmem:[#allocation35_spill] sm:$0xff]  ;;  %v4875_v13 = vld [vmem:[#allocation3 + $0x98] sm:$0xf0] }
 0x3f0   :  { %v2777_v1 = vadd.f32 %v2776_v25, %v2728_v9  ;;  %3706 = vmatpush.bf16.msra.mxu2 %v4974_v14  ;;  %v4838_v25 = vor.u32 %v5260_v4, %v4835_v39  ;;  %v4902_v28 = vor.u32 %v5276_v40, %v4899_v53  ;;  %v5256_v39 = vld [vmem:[#allocation3 + $0x24] sm:$0xf]  ;;  %v4819_v40 = vld [vmem:[#allocation3 + $0x28] sm:$0xf0] }
 0x3f1   :  { %v2681_v57 = vadd.f32 %v2680_v32, %v2632_v60  ;;  %v8213_v60 = vld [vmem:[#allocation50_spill] sm:$0xff] }
 0x3f2   :  { %vm2831_vm11 = vcmp.gt.f32.partialorder %v2777_v1, 0.0  ;;  %v2895_v32 = vmul.f32 0.01, %v2777_v1  ;;  %3658 = vmatpush.bf16.msra.mxu1 %v4902_v28 }
 0x3f3   :  { %3609 = vmatpush.bf16.msra.mxu0 %v4838_v25  ;;  %v4947_v25 = vld [vmem:[#allocation3 + $0x128] sm:$0xf0] }
 0x3f4   :  { %v2959_v36 = vsel %vm2831_vm11, %v2777_v1, %v2895_v32  ;;  %3707 = vmatpush.bf16.msra.mxu2 %v4966_v38  ;;  %v4950_v38 = vor.u32 %v5288_v43, %v4947_v25  ;;  %v4931_v25 = vld [vmem:[#allocation3 + $0x108] sm:$0xf0] }
 0x3f5   :  { %v2729_v30 = vpop.f32.mrf.mxu2 }
 0x3f6   :  { %v2730_v48 = vadd.f32 %v2729_v30, %v2681_v57  ;;  %v2778_v63 = vpop.f32.mrf.mxu3  ;;  %v2634_v33 = vpop.f32.mrf.mxu0  ;;  %v4955_v57 = vld [vmem:[#allocation3 + $0x138] sm:$0xf0]  ;;  %3659 = vmatpush.bf16.msra.mxu1 %v4894_v0 }
 0x3f7   :  { %v2683_v21 = vpop.f32.mrf.mxu1  ;;  %v2635_v9 = vadd.f32 %v2634_v33, %v7680_v31  ;;  %v4958_v50 = vor.u32 %v5290_v20, %v4955_v57  ;;  %3610 = vmatpush.bf16.msra.mxu0 %v4830_v17  ;;  %v5286_v20 = vld [vmem:[#allocation3 + $0x114] sm:$0xf] }
 0x3f8   :  { %v2779_v59 = vadd.f32 %v2778_v63, %v2730_v48  ;;  %v5272_v48 = vld [vmem:[#allocation3 + $0xa4] sm:$0xf]  ;;  %v2588_v63 = vadd.f32 %v7688_v54, %v7686_v41  ;;  %v5310_v41 = vld [vmem:[#allocation3 + $0x1d4] sm:$0xf] }
 0x3f9   :  { %3443 = vmatmul.bf16.gmra.mxu0 %v8213_v60  ;;  %v2684_v30 = vadd.f32 %v2683_v21, %v2635_v9  ;;  %v4822_v21 = vor.u32 %v5256_v39, %v4819_v40  ;;  %3708 = vmatpush.bf16.msra.mxu2 %v4958_v50  ;;  %v5254_v9 = vld [vmem:[#allocation3 + $0x14] sm:$0xf]  ;;  %v5038_v17 = vor.u32 %v5310_v41, %v5035_v18  ;;  %v5268_v39 = vld [vmem:[#allocation3 + $0x84] sm:$0xf]  ;;  %v5027_v41 = vld [vmem:[#allocation3 + $0x1c8] sm:$0xf0] }
 0x3fa   :  { %vm2835_vm12 = vcmp.gt.f32.partialorder %v2779_v59, 0.0  ;;  %v2899_v55 = vmul.f32 0.01, %v2779_v59  ;;  %3492 = vmatmul.bf16.gmra.mxu1 %v8214_v19  ;;  %3541 = vmatmul.bf16.gmra.mxu2 %v7684_v11 }
 0x3fb   :  { %3611 = vmatpush.bf16.msra.mxu0 %v4822_v21  ;;  %3755 = vmatpush.bf16.msra.mxu3 %v5038_v17  ;;  %v2593_v17 = vadd.f32 %v7705_v2, %v7703_v24 }
 0x3fc   :  { %v2963_v31 = vsel %vm2835_vm12, %v2779_v59, %v2899_v55  ;;  %v4886_v59 = vor.u32 %v5272_v48, %v4883_v49  ;;  %v4814_v55 = vor.u32 %v5254_v9, %v4811_v26  ;;  %v8216_v26 = vld [vmem:[#allocation22_spill] sm:$0xff] }
 0x3fd   :  { %v2732_v14 = vpop.f32.mrf.mxu2  ;;  %v7767_v4 = vpack.c.bf16 %v2963_v31, %v2959_v36  ;;  %3709 = vmatpush.bf16.msra.mxu2 %v4950_v38  ;;  %v4878_v36 = vor.u32 %v5270_v42, %v4875_v13  ;;  %v4939_v31 = vld [vmem:[#allocation3 + $0x118] sm:$0xf0]  ;;  %v5308_v42 = vld [vmem:[#allocation3 + $0x1c4] sm:$0xf] }
 0x3fe   :  { %v2781_v33 = vpop.f32.mrf.mxu3  ;;  %v2636_v53 = vpop.f32.mrf.mxu0  ;;  %v2733_v1 = vadd.f32 %v2732_v14, %v2684_v30  ;;  %3660 = vmatpush.bf16.msra.mxu1 %v4886_v59  ;;  %v4942_v50 = vor.u32 %v5286_v20, %v4939_v31  ;;  %v5252_v30 = vld [vmem:[#allocation3 + $0x4] sm:$0xf]  ;;  %v4803_v14 = vld [vmem:[#allocation3 + $0x8] sm:$0xf0]  ;;  %v8215_v59 = vld [vmem:[#allocation51_spill] sm:$0xff]  ;;  %v5030_v13 = vor.u32 %v5308_v42, %v5027_v41 }
 0x3ff   :  { %v2685_v28 = vpop.f32.mrf.mxu1  ;;  %3585 = vmatmul.bf16.gmra.mxu3 %v7767_v4  ;;  %v2637_v32 = vadd.f32 %v2636_v53, %v2588_v63  ;;  %v5284_v53 = vld [vmem:[#allocation3 + $0x104] sm:$0xf]  ;;  %3612 = vmatpush.bf16.msra.mxu0 %v4814_v55  ;;  %v4806_v43 = vor.u32 %v5252_v30, %v4803_v14 }
 0x400   :  { %v2782_v54 = vadd.f32 %v2781_v33, %v2733_v1  ;;  %v4867_v33 = vld [vmem:[#allocation3 + $0x88] sm:$0xf0]  ;;  %3756 = vmatpush.bf16.msra.mxu3 %v5030_v13 }
 0x401   :  { %v2686_v57 = vadd.f32 %v2685_v28, %v2637_v32  ;;  %3710 = vmatpush.bf16.msra.mxu2 %v4942_v50  ;;  %v4870_v21 = vor.u32 %v5268_v39, %v4867_v33  ;;  %v4934_v32 = vor.u32 %v5284_v53, %v4931_v25  ;;  %v5019_v50 = vld [vmem:[#allocation3 + $0x1b8] sm:$0xf0]  ;;  %v5302_v25 = vld [vmem:[#allocation3 + $0x194] sm:$0xf] }
 0x402   :  { %v2903_v1 = vmul.f32 0.01, %v2782_v54  ;;  %3661 = vmatpush.bf16.msra.mxu1 %v4878_v36  ;;  %vm2839_vm13 = vcmp.gt.f32.partialorder %v2782_v54, 0.0 }
 0x403   :  { %3613 = vmatpush.bf16.msra.mxu0 %v4806_v43 }
 0x404   :  { %v2967_v18 = vsel %vm2839_vm13, %v2782_v54, %v2903_v1  ;;  %v5003_v1 = vld [vmem:[#allocation3 + $0x198] sm:$0xf0] }
 0x405   :  { %v2734_v0 = vpop.f32.mrf.mxu2  ;;  %3711 = vmatpush.bf16.msra.mxu2 %v4934_v32 }
 0x406   :  { %v2735_v40 = vadd.f32 %v2734_v0, %v2686_v57  ;;  %v2783_v48 = vpop.f32.mrf.mxu3  ;;  %v2639_v63 = vpop.f32.mrf.mxu0  ;;  %3662 = vmatpush.bf16.msra.mxu1 %v4870_v21  ;;  %v5306_v0 = vld [vmem:[#allocation3 + $0x1b4] sm:$0xf]  ;;  %v5006_v21 = vor.u32 %v5302_v25, %v5003_v1 }
 0x407   :  { %v2688_v49 = vpop.f32.mrf.mxu1  ;;  %v2640_v9 = vadd.f32 %v2639_v63, %v7698_v5  ;;  %v5022_v54 = vor.u32 %v5306_v0, %v5019_v50 }
 0x408   :  { %v2784_v28 = vadd.f32 %v2783_v48, %v2735_v40  ;;  %v5304_v40 = vld [vmem:[#allocation3 + $0x1a4] sm:$0xf]  ;;  %v5011_v48 = vld [vmem:[#allocation3 + $0x1a8] sm:$0xf0] }
 0x409   :  { %3448 = vmatmul.bf16.gmra.mxu0 %v8215_v59  ;;  %v2689_v36 = vadd.f32 %v2688_v49, %v2640_v9  ;;  %3757 = vmatpush.bf16.msra.mxu3 %v5022_v54  ;;  %v5014_v63 = vor.u32 %v5304_v40, %v5011_v48  ;;  %v8217_v9 = vld [vmem:[#allocation27_spill] sm:$0xff] }
 0x40a   :  { %vm2843_vm14 = vcmp.gt.f32.partialorder %v2784_v28, 0.0  ;;  %v2907_v38 = vmul.f32 0.01, %v2784_v28  ;;  %3497 = vmatmul.bf16.gmra.mxu1 %v8216_v26  ;;  %3546 = vmatmul.bf16.gmra.mxu2 %v7701_v34 }
 0x40c   :  { %v2971_v55 = vsel %vm2843_vm14, %v2784_v28, %v2907_v38 }
 0x40d   :  { %v2737_v20 = vpop.f32.mrf.mxu2  ;;  %v7776_v57 = vpack.c.bf16 %v2971_v55, %v2967_v18  ;;  %3758 = vmatpush.bf16.msra.mxu3 %v5014_v63  ;;  %v5300_v18 = vld [vmem:[#allocation3 + $0x184] sm:$0xf]  ;;  %v4995_v55 = vld [vmem:[#allocation3 + $0x188] sm:$0xf0] }
 0x40e   :  { %v2786_v5 = vpop.f32.mrf.mxu3  ;;  %v2641_v31 = vpop.f32.mrf.mxu0  ;;  %v2738_v14 = vadd.f32 %v2737_v20, %v2689_v36 }
 0x40f   :  { %v2690_v30 = vpop.f32.mrf.mxu1  ;;  %3590 = vmatmul.bf16.gmra.mxu3 %v7776_v57  ;;  %v2642_v39 = vadd.f32 %v2641_v31, %v2593_v17  ;;  %v4998_v17 = vor.u32 %v5300_v18, %v4995_v55  ;;  %v2598_v31 = vadd.f32 %v7722_v27, %v7720_v46 }
 0x410   :  { %v2787_v33 = vadd.f32 %v2786_v5, %v2738_v14 }
 0x411   :  { %v2691_v53 = vadd.f32 %v2690_v30, %v2642_v39  ;;  %3759 = vmatpush.bf16.msra.mxu3 %v5006_v21  ;;  %v7793_v39 = vld [vmem:[%s8008_s4] sm:$0x3] }
 0x412   :  { %v2911_v32 = vmul.f32 0.01, %v2787_v33  ;;  %vm2847_vm15 = vcmp.gt.f32.partialorder %v2787_v33, 0.0  ;;  %v7796_v40 = vperm.slane %v7793_v39, 0 }
 0x414   :  { %v2975_v13 = vsel %vm2847_vm15, %v2787_v33, %v2911_v32 }
 0x415   :  { %v2739_v43 = vpop.f32.mrf.mxu2  ;;  %3760 = vmatpush.bf16.msra.mxu3 %v4998_v17 }
 0x416   :  { %v2740_v24 = vadd.f32 %v2739_v43, %v2691_v53  ;;  %v2788_v2 = vpop.f32.mrf.mxu3  ;;  %v2644_v49 = vpop.f32.mrf.mxu0 }
 0x417   :  { %v2693_v28 = vpop.f32.mrf.mxu1  ;;  %v2645_v41 = vadd.f32 %v2644_v49, %v7715_v61 }
 0x418   :  { %v2789_v38 = vadd.f32 %v2788_v2, %v2740_v24 }
 0x419   :  { %3453 = vmatmul.bf16.gmra.mxu0 %v8217_v9  ;;  %v2694_v0 = vadd.f32 %v2693_v28, %v2645_v41 }
 0x41a   :  { %vm2851_vm1 = vcmp.gt.f32.partialorder %v2789_v38, 0.0  ;;  %v2915_v42 = vmul.f32 0.01, %v2789_v38  ;;  %3502 = vmatmul.bf16.gmra.mxu1 %v7346_v44  ;;  %3551 = vmatmul.bf16.gmra.mxu2 %v7718_v8 }
 0x41c   :  { %v2979_v20 = vsel %vm2851_vm1, %v2789_v38, %v2915_v42 }
 0x41d   :  { %v2742_v36 = vpop.f32.mrf.mxu2  ;;  %v7785_v5 = vpack.c.bf16 %v2979_v20, %v2975_v13 }
 0x41e   :  { %v2791_v50 = vpop.f32.mrf.mxu3  ;;  %v2646_v30 = vpop.f32.mrf.mxu0  ;;  %v2743_v54 = vadd.f32 %v2742_v36, %v2694_v0 }
 0x41f   :  { %v2695_v61 = vpop.f32.mrf.mxu1  ;;  %3595 = vmatmul.bf16.gmra.mxu3 %v7785_v5  ;;  %v2647_v14 = vadd.f32 %v2646_v30, %v2598_v31 }
 0x420   :  { %v2792_v48 = vadd.f32 %v2791_v50, %v2743_v54 }
 0x421   :  { %v2696_v63 = vadd.f32 %v2695_v61, %v2647_v14 }
 0x422   :  { %v2919_v2 = vmul.f32 0.01, %v2792_v48  ;;  %vm2855_vm2 = vcmp.gt.f32.partialorder %v2792_v48, 0.0 }
 0x424   :  { %v2983_v28 = vsel %vm2855_vm2, %v2792_v48, %v2919_v2 }
 0x425   :  { %v2744_v46 = vpop.f32.mrf.mxu2 }
 0x426   :  { %v2745_v27 = vadd.f32 %v2744_v46, %v2696_v63  ;;  %v3419_v33 = vpop.f32.mrf.mxu0  ;;  %v2793_v53 = vpop.f32.mrf.mxu3 }
 0x427   :  { %v3420_v43 = vadd.f32 %v3419_v33, %v7796_v40  ;;  %v3468_v24 = vpop.f32.mrf.mxu1 }
 0x428   :  { %v2794_v49 = vadd.f32 %v2793_v53, %v2745_v27 }
 0x429   :  { %v3469_v25 = vadd.f32 %v3468_v24, %v3420_v43  ;;  %3614 = vmatmul.bf16.vlgmr.msra.gmra.mxu0 %v8203_v51 }
 0x42a   :  { %vm2859_vm3 = vcmp.gt.f32.partialorder %v2794_v49, 0.0  ;;  %v2923_v1 = vmul.f32 0.01, %v2794_v49  ;;  %3663 = vmatmul.bf16.vlgmr.msra.gmra.mxu1 %v8204_v45  ;;  %3712 = vmatmul.bf16.vlgmr.msra.gmra.mxu2 %v7603_v29 }
 0x42c   :  { %v2987_v21 = vsel %vm2859_vm3, %v2794_v49, %v2923_v1 }
 0x42d   :  { %v3517_v32 = vpop.f32.mrf.mxu2  ;;  %v7802_v38 = vpack.c.bf16 %v2987_v21, %v2983_v28 }
 0x42e   :  { %v3518_v42 = vadd.f32 %v3517_v32, %v3469_v25  ;;  %v3421_v41 = vpop.f32.mrf.mxu0 }
 0x42f   :  { %v3422_v18 = vadd.f32 %v3421_v41, %v7796_v40  ;;  %v3470_v55 = vpop.f32.mrf.mxu1  ;;  %3600 = vmatmul.bf16.gmra.mxu3 %v7802_v38 }
 0x431   :  { %v3471_v13 = vadd.f32 %v3470_v55, %v3422_v18 }
 0x435   :  { %v3519_v51 = vpop.f32.mrf.mxu2 }
 0x436   :  { %v3520_v20 = vadd.f32 %v3519_v51, %v3471_v13  ;;  %v3424_v17 = vpop.f32.mrf.mxu0 }
 0x437   :  { %v3425_v45 = vadd.f32 %v3424_v17, %v7796_v40  ;;  %v3473_v36 = vpop.f32.mrf.mxu1 }
 0x439   :  { %v3474_v29 = vadd.f32 %v3473_v36, %v3425_v45  ;;  %3619 = vmatmul.bf16.gmra.mxu0 %v8205_v10 }
 0x43a   :  { %3668 = vmatmul.bf16.gmra.mxu1 %v8206_v35  ;;  %3717 = vmatmul.bf16.gmra.mxu2 %v7619_v62 }
 0x43d   :  { %v3522_v31 = vpop.f32.mrf.mxu2 }
 0x43e   :  { %v3523_v0 = vadd.f32 %v3522_v31, %v3474_v29  ;;  %v3426_v50 = vpop.f32.mrf.mxu0 }
 0x43f   :  { %v3427_v30 = vadd.f32 %v3426_v50, %v7796_v40  ;;  %v3475_v61 = vpop.f32.mrf.mxu1  ;;  %3761 = vmatmul.bf16.vlgmr.msra.gmra.mxu3 %v7733_v37 }
 0x441   :  { %v3476_v54 = vadd.f32 %v3475_v61, %v3427_v30 }
 0x442   :  { %v3566_v14 = vpop.f32.mrf.mxu3 }
 0x443   :  { %v7812_v48 = vadd.f32 %v3566_v14, %v3518_v42 }
 0x445   :  { %v3524_v63 = vpop.f32.mrf.mxu2  ;;  %vm3802_vm3 = vcmp.gt.f32.partialorder %v7812_v48, 0.0 }
 0x446   :  { %v3525_v46 = vadd.f32 %v3524_v63, %v3476_v54  ;;  %v3429_v27 = vpop.f32.mrf.mxu0 }
 0x447   :  { %v3430_v10 = vadd.f32 %v3429_v27, %v7796_v40  ;;  %v3478_v35 = vpop.f32.mrf.mxu1 }
 0x449   :  { %v3479_v33 = vadd.f32 %v3478_v35, %v3430_v10  ;;  %3624 = vmatmul.bf16.gmra.mxu0 %v8207_v12 }
 0x44a   :  { %v3568_v62 = vpop.f32.mrf.mxu3  ;;  %3673 = vmatmul.bf16.gmra.mxu1 %v8208_v15  ;;  %3722 = vmatmul.bf16.gmra.mxu2 %v7634_v23 }
 0x44b   :  { %v7818_v53 = vadd.f32 %v3568_v62, %v3520_v20 }
 0x44d   :  { %v3527_v37 = vpop.f32.mrf.mxu2  ;;  %vm3804_vm2 = vcmp.gt.f32.partialorder %v7818_v53, 0.0 }
 0x44e   :  { %v3528_v43 = vadd.f32 %v3527_v37, %v3479_v33  ;;  %v3431_v24 = vpop.f32.mrf.mxu0 }
 0x44f   :  { %v3432_v2 = vadd.f32 %v3431_v24, %v7796_v40  ;;  %v3480_v49 = vpop.f32.mrf.mxu1  ;;  %3766 = vmatmul.bf16.gmra.mxu3 %v7741_v6 }
 0x451   :  { %v3481_v25 = vadd.f32 %v3480_v49, %v3432_v2 }
 0x452   :  { %v3571_v1 = vpop.f32.mrf.mxu3 }
 0x453   :  { %v7822_v28 = vadd.f32 %v3571_v1, %v3523_v0 }
 0x455   :  { %v3529_v12 = vpop.f32.mrf.mxu2  ;;  %vm3806_vm1 = vcmp.gt.f32.partialorder %v7822_v28, 0.0 }
 0x456   :  { %v3530_v21 = vadd.f32 %v3529_v12, %v3481_v25  ;;  %v3434_v32 = vpop.f32.mrf.mxu0 }
 0x457   :  { %v3435_v15 = vadd.f32 %v3434_v32, %v7796_v40  ;;  %v3483_v23 = vpop.f32.mrf.mxu1 }
 0x459   :  { %v3484_v42 = vadd.f32 %v3483_v23, %v3435_v15  ;;  %3629 = vmatmul.bf16.gmra.mxu0 %v8209_v58 }
 0x45a   :  { %v3573_v41 = vpop.f32.mrf.mxu3  ;;  %3678 = vmatmul.bf16.gmra.mxu1 %v8210_v56  ;;  %3727 = vmatmul.bf16.gmra.mxu2 %v7650_v3 }
 0x45b   :  { %v7828_v18 = vadd.f32 %v3573_v41, %v3525_v46 }
 0x45d   :  { %v3532_v6 = vpop.f32.mrf.mxu2  ;;  %vm3808_vm15 = vcmp.gt.f32.partialorder %v7828_v18, 0.0 }
 0x45e   :  { %v3533_v55 = vadd.f32 %v3532_v6, %v3484_v42  ;;  %v3436_v13 = vpop.f32.mrf.mxu0 }
 0x45f   :  { %v3437_v51 = vadd.f32 %v3436_v13, %v7796_v40  ;;  %v3485_v20 = vpop.f32.mrf.mxu1  ;;  %3771 = vmatmul.bf16.gmra.mxu3 %v7749_v16 }
 0x461   :  { %v3486_v17 = vadd.f32 %v3485_v20, %v3437_v51 }
 0x462   :  { %v3576_v45 = vpop.f32.mrf.mxu3 }
 0x463   :  { %v7832_v36 = vadd.f32 %v3576_v45, %v3528_v43 }
 0x465   :  { %v3534_v58 = vpop.f32.mrf.mxu2  ;;  %vm3810_vm14 = vcmp.gt.f32.partialorder %v7832_v36, 0.0 }
 0x466   :  { %v3535_v29 = vadd.f32 %v3534_v58, %v3486_v17  ;;  %v3439_v31 = vpop.f32.mrf.mxu0 }
 0x467   :  { %v3488_v56 = vpop.f32.mrf.mxu1  ;;  %v3440_v10 = vadd.f32 %v3439_v31, %v7796_v40 }
 0x469   :  { %3634 = vmatmul.bf16.gmra.mxu0 %v8211_v7  ;;  %v3489_v62 = vadd.f32 %v3488_v56, %v3440_v10 }
 0x46a   :  { %v3578_v3 = vpop.f32.mrf.mxu3  ;;  %3683 = vmatmul.bf16.gmra.mxu1 %v8212_v22  ;;  %3732 = vmatmul.bf16.gmra.mxu2 %v7666_v47 }
 0x46b   :  { %v7837_v0 = vadd.f32 %v3578_v3, %v3530_v21 }
 0x46d   :  { %v3537_v50 = vpop.f32.mrf.mxu2  ;;  %vm3812_vm13 = vcmp.gt.f32.partialorder %v7837_v0, 0.0 }
 0x46e   :  { %v3441_v30 = vpop.f32.mrf.mxu0  ;;  %v3538_v43 = vadd.f32 %v3537_v50, %v3489_v62 }
 0x46f   :  { %v3442_v16 = vadd.f32 %v3441_v30, %v7796_v40  ;;  %v3490_v61 = vpop.f32.mrf.mxu1  ;;  %3776 = vmatmul.bf16.gmra.mxu3 %v7757_v52 }
 0x471   :  { %v3491_v54 = vadd.f32 %v3490_v61, %v3442_v16 }
 0x472   :  { %v3581_v14 = vpop.f32.mrf.mxu3 }
 0x473   :  { %v7841_v63 = vadd.f32 %v3581_v14, %v3533_v55 }
 0x475   :  { %v3539_v46 = vpop.f32.mrf.mxu2  ;;  %vm3814_vm12 = vcmp.gt.f32.partialorder %v7841_v63, 0.0 }
 0x476   :  { %v3540_v7 = vadd.f32 %v3539_v46, %v3491_v54  ;;  %v7843_v27 = vpop.f32.mrf.mxu0 }
 0x477   :  { %v7845_v22 = vpop.f32.mrf.mxu1 }
 0x479   :  { %3639 = vmatmul.bf16.gmra.mxu0 %v8213_v60 }
 0x47a   :  { %v3583_v47 = vpop.f32.mrf.mxu3  ;;  %3688 = vmatmul.bf16.gmra.mxu1 %v8214_v19  ;;  %3737 = vmatmul.bf16.gmra.mxu2 %v7684_v11 }
 0x47b   :  { %v7851_v52 = vadd.f32 %v3583_v47, %v3535_v29 }
 0x47d   :  { %v7853_v35 = vpop.f32.mrf.mxu2  ;;  %vm3816_vm11 = vcmp.gt.f32.partialorder %v7851_v52, 0.0 }
 0x47e   :  { %v7855_v33 = vpop.f32.mrf.mxu0 }
 0x47f   :  { %v7857_v37 = vpop.f32.mrf.mxu1  ;;  %3781 = vmatmul.bf16.gmra.mxu3 %v7767_v4 }
 0x482   :  { %v3586_v60 = vpop.f32.mrf.mxu3 }
 0x483   :  { %v7860_v24 = vadd.f32 %v3586_v60, %v3538_v43 }
 0x485   :  { %v7862_v19 = vpop.f32.mrf.mxu2  ;;  %vm3818_vm10 = vcmp.gt.f32.partialorder %v7860_v24, 0.0 }
 0x486   :  { %v3449_v11 = vpop.f32.mrf.mxu0 }
 0x487   :  { %v3498_v2 = vpop.f32.mrf.mxu1 }
 0x489   :  { %3644 = vmatmul.bf16.gmra.mxu0 %v8215_v59 }
 0x48a   :  { %v3588_v49 = vpop.f32.mrf.mxu3  ;;  %3693 = vmatmul.bf16.gmra.mxu1 %v8216_v26  ;;  %3742 = vmatmul.bf16.gmra.mxu2 %v7701_v34 }
 0x48b   :  { %v7867_v25 = vadd.f32 %v3588_v49, %v3540_v7 }
 0x48d   :  { %v7869_v1 = vpop.f32.mrf.mxu2  ;;  %vm3820_vm9 = vcmp.gt.f32.partialorder %v7867_v25, 0.0 }
 0x48e   :  { %v3451_v4 = vpop.f32.mrf.mxu0 }
 0x48f   :  { %v3500_v12 = vpop.f32.mrf.mxu1  ;;  %3786 = vmatmul.bf16.gmra.mxu3 %v7776_v57  ;;  %v7881_v57 = vperm.slane %v7793_v39, 1  ;;  %v3452_v30 = vadd.f32 %v3451_v4, %v7796_v40  ;;  %v3447_v4 = vadd.f32 %v7855_v33, %v7796_v40 }
 0x491   :  { %v3501_v62 = vadd.f32 %v3500_v12, %v3452_v30 }
 0x492   :  { %v7872_v21 = vpop.f32.mrf.mxu3 }
 0x495   :  { %v3549_v32 = vpop.f32.mrf.mxu2 }
 0x496   :  { %v3454_v15 = vpop.f32.mrf.mxu0  ;;  %v3550_v49 = vadd.f32 %v3549_v32, %v3501_v62 }
 0x497   :  { %v3503_v23 = vpop.f32.mrf.mxu1  ;;  %v3455_v39 = vadd.f32 %v3454_v15, %v7796_v40 }
 0x499   :  { %3649 = vmatmul.bf16.gmra.mxu0 %v8217_v9  ;;  %v3504_v16 = vadd.f32 %v3503_v23, %v3455_v39 }
 0x49a   :  { %v7875_v59 = vpop.f32.mrf.mxu3  ;;  %3698 = vmatmul.bf16.gmra.mxu1 %v7346_v44  ;;  %3747 = vmatmul.bf16.gmra.mxu2 %v7718_v8 }
 0x49d   :  { %v3552_v34 = vpop.f32.mrf.mxu2 }
 0x49e   :  { %v3456_v26 = vpop.f32.mrf.mxu0  ;;  %v3553_v46 = vadd.f32 %v3552_v34, %v3504_v16 }
 0x49f   :  { %v3505_v42 = vpop.f32.mrf.mxu1  ;;  %3791 = vmatmul.bf16.gmra.mxu3 %v7785_v5  ;;  %v3457_v31 = vadd.f32 %v3456_v26, %v7796_v40 }
 0x4a1   :  { %v3506_v61 = vadd.f32 %v3505_v42, %v3457_v31 }
 0x4a2   :  { %v3596_v41 = vpop.f32.mrf.mxu3 }
 0x4a5   :  { %v3554_v6 = vpop.f32.mrf.mxu2 }
 0x4a6   :  { %v3615_v55 = vpop.f32.mrf.mxu0  ;;  %v3555_v7 = vadd.f32 %v3554_v6, %v3506_v61 }
 0x4a7   :  { %v3616_v13 = vadd.f32 %v3615_v55, %v7881_v57  ;;  %v3664_v9 = vpop.f32.mrf.mxu1 }
 0x4a9   :  { %v3665_v51 = vadd.f32 %v3664_v9, %v3616_v13 }
 0x4aa   :  { %v3598_v20 = vpop.f32.mrf.mxu3 }
 0x4ab   :  { %v3599_v13 = vadd.f32 %v3598_v20, %v3550_v49  ;;  %v3850_v49 = vmul.f32 0.01, %v7860_v24 }
 0x4ad   :  { %v3713_v17 = vpop.f32.mrf.mxu2  ;;  %vm3828_vm5 = vcmp.gt.f32.partialorder %v3599_v13, 0.0 }
 0x4ae   :  { %v3714_v44 = vadd.f32 %v3713_v17, %v3665_v51  ;;  %v3617_v45 = vpop.f32.mrf.mxu0  ;;  %v3445_v51 = vadd.f32 %v7843_v27, %v7796_v40  ;;  %v3496_v17 = vadd.f32 %v7857_v37, %v3447_v4 }
 0x4af   :  { %v3618_v8 = vadd.f32 %v3617_v45, %v7881_v57  ;;  %v3666_v58 = vpop.f32.mrf.mxu1  ;;  %3796 = vmatmul.bf16.gmra.mxu3 %v7802_v38  ;;  %v3450_v38 = vadd.f32 %v3449_v11, %v7796_v40  ;;  %v3860_v45 = vmul.f32 0.01, %v3599_v13 }
 0x4b1   :  { %v3667_v5 = vadd.f32 %v3666_v58, %v3618_v8  ;;  %v3499_v23 = vadd.f32 %v3498_v2, %v3450_v38  ;;  %v3545_v58 = vadd.f32 %v7862_v19, %v3496_v17 }
 0x4b2   :  { %v3601_v29 = vpop.f32.mrf.mxu3 }
 0x4b3   :  { %v3602_v43 = vadd.f32 %v3601_v29, %v3553_v46  ;;  %v3548_v12 = vadd.f32 %v7869_v1, %v3499_v23  ;;  %v3494_v29 = vadd.f32 %v7845_v22, %v3445_v51  ;;  %v3594_v31 = vadd.f32 %v7875_v59, %v3545_v58 }
 0x4b5   :  { %v3715_v56 = vpop.f32.mrf.mxu2  ;;  %v3862_v34 = vmul.f32 0.01, %v3602_v43  ;;  %vm3830_vm4 = vcmp.gt.f32.partialorder %v3602_v43, 0.0  ;;  %v3597_v2 = vadd.f32 %v3596_v41, %v3548_v12  ;;  %v3892_v41 = vsel %vm3828_vm5, %v3599_v13, %v3860_v45 }
 0x4b6   :  { %v3716_v3 = vadd.f32 %v3715_v56, %v3667_v5  ;;  %v3620_v50 = vpop.f32.mrf.mxu0  ;;  %v3856_v30 = vmul.f32 0.01, %v3594_v31  ;;  %vm3824_vm7 = vcmp.gt.f32.partialorder %v3594_v31, 0.0  ;;  %v3882_v13 = vsel %vm3818_vm10, %v7860_v24, %v3850_v49 }
 0x4b7   :  { %v3621_v54 = vadd.f32 %v3620_v50, %v7881_v57  ;;  %v3669_v14 = vpop.f32.mrf.mxu1  ;;  %v3894_v20 = vsel %vm3830_vm4, %v3602_v43, %v3862_v34  ;;  %v3858_v40 = vmul.f32 0.01, %v3597_v2  ;;  %vm3826_vm6 = vcmp.gt.f32.partialorder %v3597_v2, 0.0 }
 0x4b8   :  { %v3848_v34 = vmul.f32 0.01, %v7851_v52  ;;  %v3846_v12 = vmul.f32 0.01, %v7841_v63  ;;  %v3844_v45 = vmul.f32 0.01, %v7837_v0 }
 0x4b9   :  { %v3670_v47 = vadd.f32 %v3669_v14, %v3621_v54  ;;  %v3890_v22 = vsel %vm3826_vm6, %v3597_v2, %v3858_v40 }
 0x4ba   :  { %v3603_v10 = vpop.f32.mrf.mxu3  ;;  %v3880_v51 = vsel %vm3816_vm11, %v7851_v52, %v3848_v34  ;;  %v3878_v2 = vsel %vm3814_vm12, %v7841_v63, %v3846_v12 }
 0x4bb   :  { %v3604_v60 = vadd.f32 %v3603_v10, %v3555_v7 }
 0x4bd   :  { %vm3832_vm0 = vcmp.gt.f32.partialorder %v3604_v60, 0.0  ;;  %v3864_v15 = vmul.f32 0.01, %v3604_v60  ;;  %v3718_v26 = vpop.f32.mrf.mxu2 }
 0x4be   :  { %v3719_v42 = vadd.f32 %v3718_v26, %v3670_v47  ;;  %v3622_v55 = vpop.f32.mrf.mxu0  ;;  %v3888_v47 = vsel %vm3824_vm7, %v3594_v31, %v3856_v30 }
 0x4bf   :  { %v3623_v6 = vadd.f32 %v3622_v55, %v7881_v57  ;;  %v3671_v9 = vpop.f32.mrf.mxu1  ;;  %v3896_v11 = vsel %vm3832_vm0, %v3604_v60, %v3864_v15 }
 0x4c0   :  { %3906 = vmatpush.xpose.msrb.mxu0 %v3896_v11 }
 0x4c1   :  { %v3672_v32 = vadd.f32 %v3671_v9, %v3623_v6 }
 0x4c2   :  { %v3762_v33 = vpop.f32.mrf.mxu3 }
 0x4c3   :  { %v7898_v8 = vadd.f32 %v3762_v33, %v3714_v44  ;;  %v3543_v44 = vadd.f32 %v7853_v35, %v3494_v29  ;;  %v3842_v29 = vmul.f32 0.01, %v7832_v36 }
 0x4c4   :  { %3907 = vmatpush.xpose.msrb.mxu0 %v3894_v20 }
 0x4c5   :  { %v3720_v5 = vpop.f32.mrf.mxu2  ;;  %v3592_v19 = vadd.f32 %v7872_v21, %v3543_v44  ;;  %v3852_v21 = vmul.f32 0.01, %v7867_v25 }
 0x4c6   :  { %v3721_v1 = vadd.f32 %v3720_v5, %v3672_v32  ;;  %v3625_v39 = vpop.f32.mrf.mxu0 }
 0x4c7   :  { %v3626_v27 = vadd.f32 %v3625_v39, %v7881_v57  ;;  %v3674_v37 = vpop.f32.mrf.mxu1  ;;  %v3854_v14 = vmul.f32 0.01, %v3592_v19  ;;  %vm3822_vm8 = vcmp.gt.f32.partialorder %v3592_v19, 0.0  ;;  %v3884_v4 = vsel %vm3820_vm9, %v7867_v25, %v3852_v21 }
 0x4c8   :  { %3908 = vmatpush.xpose.msrb.mxu0 %v3892_v41  ;;  %v3876_v39 = vsel %vm3812_vm13, %v7837_v0, %v3844_v45 }
 0x4c9   :  { %v3675_v56 = vadd.f32 %v3674_v37, %v3626_v27  ;;  %v3874_v27 = vsel %vm3810_vm14, %v7832_v36, %v3842_v29  ;;  %v3840_v37 = vmul.f32 0.01, %v7828_v18 }
 0x4ca   :  { %v3764_v50 = vpop.f32.mrf.mxu3 }
 0x4cb   :  { %v7906_v16 = vadd.f32 %v3764_v50, %v3716_v3  ;;  %v3886_v3 = vsel %vm3822_vm8, %v3592_v19, %v3854_v14  ;;  %v3838_v50 = vmul.f32 0.01, %v7822_v28  ;;  %v3872_v19 = vsel %vm3808_vm15, %v7828_v18, %v3840_v37 }
 0x4cc   :  { %3909 = vmatpush.xpose.msrb.mxu0 %v3890_v22 }
 0x4cd   :  { %v3723_v59 = vpop.f32.mrf.mxu2 }
 0x4ce   :  { %v3724_v61 = vadd.f32 %v3723_v59, %v3675_v56  ;;  %v3627_v54 = vpop.f32.mrf.mxu0 }
 0x4cf   :  { %v3628_v46 = vadd.f32 %v3627_v54, %v7881_v57  ;;  %v3676_v7 = vpop.f32.mrf.mxu1  ;;  %v3836_v54 = vmul.f32 0.01, %v7818_v53 }
 0x4d0   :  { %3910 = vmatpush.xpose.msrb.mxu0 %v3888_v47 }
 0x4d1   :  { %v3677_v35 = vadd.f32 %v3676_v7, %v3628_v46  ;;  %v3834_v7 = vmul.f32 0.01, %v7812_v48  ;;  %v3868_v18 = vsel %vm3804_vm2, %v7818_v53, %v3836_v54  ;;  %vm3805_vm2 = vcmp.gt.f32.partialorder %v7906_v16, 0.0 }
 0x4d2   :  { %v3767_v38 = vpop.f32.mrf.mxu3 }
 0x4d3   :  { %v7910_v10 = vadd.f32 %v3767_v38, %v3719_v42  ;;  %v3866_v38 = vsel %vm3802_vm3, %v7812_v48, %v3834_v7  ;;  %vm3803_vm3 = vcmp.gt.f32.partialorder %v7898_v8, 0.0 }
 0x4d4   :  { %3911 = vmatpush.xpose.msrb.mxu0 %v3886_v3 }
 0x4d5   :  { %v3725_v62 = vpop.f32.mrf.mxu2 }
 0x4d6   :  { %v3726_v43 = vadd.f32 %v3725_v62, %v3677_v35  ;;  %v3630_v60 = vpop.f32.mrf.mxu0 }
 0x4d7   :  { %v3631_v15 = vadd.f32 %v3630_v60, %v7881_v57  ;;  %v3679_v26 = vpop.f32.mrf.mxu1 }
 0x4d8   :  { %3912 = vmatpush.xpose.msrb.mxu0 %v3884_v4 }
 0x4d9   :  { %v3680_v23 = vadd.f32 %v3679_v26, %v3631_v15 }
 0x4da   :  { %v3769_v42 = vpop.f32.mrf.mxu3 }
 0x4db   :  { %v7917_v55 = vadd.f32 %v3769_v42, %v3721_v1 }
 0x4dc   :  { %3913 = vmatpush.xpose.msrb.mxu0 %v3882_v13 }
 0x4dd   :  { %v3728_v6 = vpop.f32.mrf.mxu2  ;;  %vm3809_vm15 = vcmp.gt.f32.partialorder %v7917_v55, 0.0 }
 0x4de   :  { %v3729_v9 = vadd.f32 %v3728_v6, %v3680_v23  ;;  %v3632_v11 = vpop.f32.mrf.mxu0 }
 0x4df   :  { %v3633_v25 = vadd.f32 %v3632_v11, %v7881_v57  ;;  %v3681_v32 = vpop.f32.mrf.mxu1 }
 0x4e0   :  { %3914 = vmatpush.xpose.msrb.mxu0 %v3880_v51 }
 0x4e1   :  { %v3682_v17 = vadd.f32 %v3681_v32, %v3633_v25 }
 0x4e2   :  { %v3772_v24 = vpop.f32.mrf.mxu3 }
 0x4e3   :  { %v7926_v33 = vadd.f32 %v3772_v24, %v3724_v61  ;;  %v3870_v61 = vsel %vm3806_vm1, %v7822_v28, %v3838_v50  ;;  %vm3807_vm1 = vcmp.gt.f32.partialorder %v7910_v10, 0.0 }
 0x4e4   :  { %3915 = vmatpush.xpose.msrb.mxu0 %v3878_v2 }
 0x4e5   :  { %v3730_v20 = vpop.f32.mrf.mxu2  ;;  %vm3811_vm14 = vcmp.gt.f32.partialorder %v7926_v33, 0.0 }
 0x4e6   :  { %v3731_v58 = vadd.f32 %v3730_v20, %v3682_v17  ;;  %v3635_v5 = vpop.f32.mrf.mxu0 }
 0x4e7   :  { %v3636_v52 = vadd.f32 %v3635_v5, %v7881_v57  ;;  %v3684_v1 = vpop.f32.mrf.mxu1 }
 0x4e8   :  { %3916 = vmatpush.xpose.msrb.mxu0 %v3876_v39 }
 0x4e9   :  { %v3685_v31 = vadd.f32 %v3684_v1, %v3636_v52 }
 0x4ea   :  { %v3774_v63 = vpop.f32.mrf.mxu3 }
 0x4eb   :  { %v7935_v40 = vadd.f32 %v3774_v63, %v3726_v43 }
 0x4ec   :  { %3917 = vmatpush.xpose.msrb.mxu0 %v3874_v27 }
 0x4ed   :  { %v3733_v41 = vpop.f32.mrf.mxu2  ;;  %vm3813_vm13 = vcmp.gt.f32.partialorder %v7935_v40, 0.0 }
 0x4ee   :  { %v3734_v44 = vadd.f32 %v3733_v41, %v3685_v31  ;;  %v3637_v56 = vpop.f32.mrf.mxu0 }
 0x4ef   :  { %v3638_v0 = vadd.f32 %v3637_v56, %v7881_v57  ;;  %v3686_v30 = vpop.f32.mrf.mxu1 }
 0x4f0   :  { %3918 = vmatpush.xpose.msrb.mxu0 %v3872_v19 }
 0x4f1   :  { %v3687_v22 = vadd.f32 %v3686_v30, %v3638_v0 }
 0x4f2   :  { %v3777_v36 = vpop.f32.mrf.mxu3 }
 0x4f3   :  { %v7944_v59 = vadd.f32 %v3777_v36, %v3729_v9 }
 0x4f4   :  { %3919 = vmatpush.xpose.msrb.mxu0 %v3870_v61 }
 0x4f5   :  { %v3735_v14 = vpop.f32.mrf.mxu2  ;;  %vm3815_vm12 = vcmp.gt.f32.partialorder %v7944_v59, 0.0 }
 0x4f6   :  { %v3736_v46 = vadd.f32 %v3735_v14, %v3687_v22  ;;  %v3640_v28 = vpop.f32.mrf.mxu0 }
 0x4f7   :  { %v3689_v3 = vpop.f32.mrf.mxu1  ;;  %v3641_v61 = vadd.f32 %v3640_v28, %v7881_v57 }
 0x4f8   :  { %3920 = vmatpush.xpose.msrb.mxu0 %v3868_v18 }
 0x4fa   :  { %v3779_v47 = vpop.f32.mrf.mxu3 }
 0x4fb   :  { %v7952_v35 = vadd.f32 %v3779_v47, %v3731_v58  ;;  %v3690_v47 = vadd.f32 %v3689_v3, %v3641_v61 }
 0x4fc   :  { %3921 = vmatpush.xpose.msrb.mxu0 %v3866_v38 }
 0x4fd   :  { %v3738_v43 = vpop.f32.mrf.mxu2  ;;  %vm3817_vm11 = vcmp.gt.f32.partialorder %v7952_v35, 0.0 }
 0x4fe   :  { %v3642_v60 = vpop.f32.mrf.mxu0 }
 0x4ff   :  { %v3691_v53 = vpop.f32.mrf.mxu1  ;;  %v3643_v50 = vadd.f32 %v3642_v60, %v7881_v57 }
 0x501   :  { %v3692_v54 = vadd.f32 %v3691_v53, %v3643_v50 }
 0x502   :  { %v3782_v21 = vpop.f32.mrf.mxu3 }
 0x503   :  { %v7955_v62 = vadd.f32 %v3782_v21, %v3734_v44 }
 0x505   :  { %v3740_v26 = vpop.f32.mrf.mxu2  ;;  %v3851_v3 = vmul.f32 0.01, %v7955_v62  ;;  %vm3819_vm10 = vcmp.gt.f32.partialorder %v7955_v62, 0.0 }
 0x506   :  { %v3645_v4 = vpop.f32.mrf.mxu0  ;;  %v3741_v18 = vadd.f32 %v3740_v26, %v3692_v54 }
 0x507   :  { %v3694_v42 = vpop.f32.mrf.mxu1  ;;  %v3646_v63 = vadd.f32 %v3645_v4, %v7881_v57 }
 0x509   :  { %v3695_v0 = vadd.f32 %v3694_v42, %v3646_v63 }
 0x50a   :  { %v3784_v49 = vpop.f32.mrf.mxu3 }
 0x50b   :  { %v7957_v15 = vadd.f32 %v3784_v49, %v3736_v46  ;;  %v3739_v49 = vadd.f32 %v3738_v43, %v3690_v47  ;;  %v3849_v43 = vmul.f32 0.01, %v7952_v35 }
 0x50d   :  { %v3743_v13 = vpop.f32.mrf.mxu2  ;;  %v3853_v53 = vmul.f32 0.01, %v7957_v15  ;;  %vm3821_vm9 = vcmp.gt.f32.partialorder %v7957_v15, 0.0 }
 0x50e   :  { %v3647_v6 = vpop.f32.mrf.mxu0  ;;  %v3744_v36 = vadd.f32 %v3743_v13, %v3695_v0 }
 0x50f   :  { %v3696_v48 = vpop.f32.mrf.mxu1  ;;  %v3648_v5 = vadd.f32 %v3647_v6, %v7881_v57  ;;  %v3885_v26 = vsel %vm3821_vm9, %v7957_v15, %v3853_v53  ;;  %v3881_v15 = vsel %vm3817_vm11, %v7952_v35, %v3849_v43 }
 0x511   :  { %v3697_v27 = vadd.f32 %v3696_v48, %v3648_v5 }
 0x512   :  { %v3787_v23 = vpop.f32.mrf.mxu3 }
 0x513   :  { %v3788_v4 = vadd.f32 %v3787_v23, %v3739_v49  ;;  %v3883_v23 = vsel %vm3819_vm10, %v7955_v62, %v3851_v3 }
 0x515   :  { %v3745_v9 = vpop.f32.mrf.mxu2  ;;  %vm3823_vm8 = vcmp.gt.f32.partialorder %v3788_v4, 0.0 }
 0x516   :  { %v3650_v12 = vpop.f32.mrf.mxu0  ;;  %v3746_v44 = vadd.f32 %v3745_v9, %v3697_v27  ;;  %v3847_v9 = vmul.f32 0.01, %v7944_v59 }
 0x517   :  { %v3699_v32 = vpop.f32.mrf.mxu1  ;;  %v3651_v2 = vadd.f32 %v3650_v12, %v7881_v57  ;;  %v3843_v12 = vmul.f32 0.01, %v7926_v33 }
 0x518   :  { %v3879_v62 = vsel %vm3815_vm12, %v7944_v59, %v3847_v9 }
 0x519   :  { %v3700_v29 = vadd.f32 %v3699_v32, %v3651_v2  ;;  %v3841_v32 = vmul.f32 0.01, %v7917_v55  ;;  %v3875_v35 = vsel %vm3811_vm14, %v7926_v33, %v3843_v12 }
 0x51a   :  { %v3789_v34 = vpop.f32.mrf.mxu3 }
 0x51b   :  { %v3790_v38 = vadd.f32 %v3789_v34, %v3741_v18  ;;  %v3898_v34 = vld [vmem:[%s8009_s5] sm:$0x3]  ;;  %v3873_v59 = vsel %vm3809_vm15, %v7917_v55, %v3841_v32 }
 0x51c   :  { %v3902_v48 = vperm.slane %v3898_v34, 0  ;;  %v3903_v55 = vperm.slane %v3898_v34, 1 }
 0x51d   :  { %v3748_v51 = vpop.f32.mrf.mxu2  ;;  %v3857_v42 = vmul.f32 0.01, %v3790_v38  ;;  %vm3825_vm7 = vcmp.gt.f32.partialorder %v3790_v38, 0.0 }
 0x51e   :  { %v3652_v17 = vpop.f32.mrf.mxu0  ;;  %v3749_v1 = vadd.f32 %v3748_v51, %v3700_v29  ;;  %3922 = vmatmul.f32.vlgmr.msrb.gmra.mxu0 %v3902_v48  ;;  %v3839_v51 = vmul.f32 0.01, %v7910_v10 }
 0x51f   :  { %v3653_v45 = vadd.f32 %v3652_v17, %v7881_v57  ;;  %v3701_v20 = vpop.f32.mrf.mxu1  ;;  %v3855_v57 = vmul.f32 0.01, %v3788_v4  ;;  %v3889_v28 = vsel %vm3825_vm7, %v3790_v38, %v3857_v42  ;;  %v3837_v17 = vmul.f32 0.01, %v7906_v16 }
 0x521   :  { %v3702_v52 = vadd.f32 %v3701_v20, %v3653_v45  ;;  %v3887_v13 = vsel %vm3823_vm8, %v3788_v4, %v3855_v57  ;;  %v3869_v33 = vsel %vm3805_vm2, %v7906_v16, %v3837_v17  ;;  %v3900_v45 = vstv %s8010_s6 }
 0x522   :  { %v3792_v11 = vpop.f32.mrf.mxu3 }
 0x523   :  { %v3793_v14 = vadd.f32 %v3792_v11, %v3744_v36  ;;  %v3845_v11 = vmul.f32 0.01, %v7935_v40 }
 0x525   :  { %v3750_v58 = vpop.f32.mrf.mxu2  ;;  %v3859_v21 = vmul.f32 0.01, %v3793_v14  ;;  %vm3827_vm6 = vcmp.gt.f32.partialorder %v3793_v14, 0.0 }
 0x526   :  { %v3751_v39 = vadd.f32 %v3750_v58, %v3702_v52 }
 0x527   :  { %v3891_v6 = vsel %vm3827_vm6, %v3793_v14, %v3859_v21 }
 0x52a   :  { %v3794_v25 = vpop.f32.mrf.mxu3 }
 0x52b   :  { %v3795_v19 = vadd.f32 %v3794_v25, %v3746_v44  ;;  %v3877_v25 = vsel %vm3813_vm13, %v7935_v40, %v3845_v11  ;;  %v3871_v40 = vsel %vm3807_vm1, %v7910_v10, %v3839_v51 }
 0x52d   :  { %v3861_v46 = vmul.f32 0.01, %v3795_v19  ;;  %vm3829_vm5 = vcmp.gt.f32.partialorder %v3795_v19, 0.0 }
 0x52f   :  { %v3893_v60 = vsel %vm3829_vm5, %v3795_v19, %v3861_v46 }
 0x532   :  { %v3797_v24 = vpop.f32.mrf.mxu3 }
 0x533   :  { %v3798_v37 = vadd.f32 %v3797_v24, %v3749_v1  ;;  %v3835_v24 = vmul.f32 0.01, %v7898_v8 }
 0x535   :  { %v3863_v30 = vmul.f32 0.01, %v3798_v37  ;;  %vm3831_vm4 = vcmp.gt.f32.partialorder %v3798_v37, 0.0  ;;  %v3867_v2 = vsel %vm3803_vm3, %v7898_v8, %v3835_v24 }
 0x537   :  { %v3895_v7 = vsel %vm3831_vm4, %v3798_v37, %v3863_v30 }
 0x53a   :  { %v3799_v31 = vpop.f32.mrf.mxu3 }
 0x53b   :  { %v3800_v41 = vadd.f32 %v3799_v31, %v3751_v39 }
 0x53d   :  { %vm3833_vm0 = vcmp.gt.f32.partialorder %v3800_v41, 0.0  ;;  %v3865_v56 = vmul.f32 0.01, %v3800_v41 }
 0x53f   :  { %v3897_v22 = vsel %vm3833_vm0, %v3800_v41, %v3865_v56 }
 0x540   :  { %3926 = vmatpush.xpose.msrb.mxu1 %v3897_v22 }
 0x544   :  { %3927 = vmatpush.xpose.msrb.mxu1 %v3895_v7 }
 0x548   :  { %3928 = vmatpush.xpose.msrb.mxu1 %v3893_v60 }
 0x54c   :  { %3929 = vmatpush.xpose.msrb.mxu1 %v3891_v6 }
 0x550   :  { %3930 = vmatpush.xpose.msrb.mxu1 %v3889_v28 }
 0x554   :  { %3931 = vmatpush.xpose.msrb.mxu1 %v3887_v13 }
 0x558   :  { %3932 = vmatpush.xpose.msrb.mxu1 %v3885_v26 }
 0x55c   :  { %3933 = vmatpush.xpose.msrb.mxu1 %v3883_v23 }
 0x560   :  { %3934 = vmatpush.xpose.msrb.mxu1 %v3881_v15 }
 0x564   :  { %3935 = vmatpush.xpose.msrb.mxu1 %v3879_v62 }
 0x568   :  { %3936 = vmatpush.xpose.msrb.mxu1 %v3877_v25 }
 0x56c   :  { %3937 = vmatpush.xpose.msrb.mxu1 %v3875_v35 }
 0x570   :  { %3938 = vmatpush.xpose.msrb.mxu1 %v3873_v59 }
 0x574   :  { %3939 = vmatpush.xpose.msrb.mxu1 %v3871_v40 }
 0x578   :  { %3940 = vmatpush.xpose.msrb.mxu1 %v3869_v33 }
 0x57c   :  { %3941 = vmatpush.xpose.msrb.mxu1 %v3867_v2 }
 0x57f   :  { %3942 = vmatmul.f32.vlgmr.msrb.gmra.mxu1 %v3903_v55 }
 0x59b   :  { %v3923_v10 = vpop.f32.mrf.mxu0 }
 0x59c   :  { %v3924_v20 = vadd.f32 %v3923_v10, %v3900_v45 }
 0x5fc   :  { %v3943_v58 = vpop.f32.mrf.mxu1 }
 0x5fd   :  { %v3944_v5 = vadd.f32 %v3943_v58, %v3924_v20 }
 0x5ff   :  { %v5055_v29 = vmul.f32 -1.442695, %v3944_v5 }
 0x601   :  { %5320 = vpow2.f32 %v5055_v29 }
 0x607   :  { %v5321_v52 = vpop.eup %5320 }
 0x608   :  { %v3949_v16 = vadd.f32 1.0, %v5321_v52 }
 0x60a   :  { %5322 = vrcp.f32 %v3949_v16  ;;  %v3961_v8 = vand.u32 2147483648, %v3949_v16  ;;  %v3959_v27 = vand.u32 2147483647, %v3949_v16  ;;  %vm3955_vm4 = vweird.f32 %v3949_v16 }
 0x60c   :  { %v3962_v41 = vor.u32 1.1754944e-38, %v3961_v8  ;;  %vm3960_vm6 = vcmp.eq.f32.partialorder %v3959_v27, 8.507059e+37 }
 0x610   :  { %v5323_v1 = vpop.eup %5322 }
 0x611   :  { %v3951_v39 = vmul.f32 %v5323_v1, %v3949_v16  ;;  %vm3956_vm0 = vweird.f32 %v5323_v1 }
 0x612   :  { %vm3957_vm5 = vmor %vm3955_vm4, %vm3956_vm0 }
 0x613   :  { %v3952_v31 = vsub.f32 1.0, %v3951_v39 }
 0x615   :  { %v3953_v63 = vmul.f32 %v5323_v1, %v3952_v31 }
 0x617   :  { %v3954_v37 = vadd.f32 %v5323_v1, %v3953_v63 }
 0x619   :  { %v3958_v44 = vsel %vm3957_vm5, %v5323_v1, %v3954_v37 }
 0x61a   :  { %v3963_v56 = vsel %vm3960_vm6, %v3962_v41, %v3958_v44 }
 0x61b   :  { %3965 = vst [vmem:[#allocation6] sm:$0x1] %v3963_v56 }
 0x61c   :  { %3976 = dma.vmem_to_hbm [thread:$0]  %s3972_s22, 16, %s3974_s24, [#allocation5]  }
 0x61d   :  { %5376 = dma.done.wait [#allocation5], 16  }
 0x61e   :  { %5377 = vsyncadd [#allocation5], 4294967280 }
 0x61f   :  { %3981 = vsyncpa [#allocation4], 1 }
 0x620   :  { %3982 = vsyncpa [#allocation5], 1 }

</bundles_post_ra>
